<compile_context>
chip_gen: v5e
topology: v5e:2x2
jax: 0.10.0
libtpu: 0.0.40
codegen_flags: <defaults>
</compile_context>

<pallas_src>
import functools

import jax
import jax.numpy as jnp
import numpy as np
from jax.experimental import pallas as pl
from jax.experimental.pallas import tpu as pltpu


# ---------------------------------------------------------------------------
# Fused per-batch-block kernel (block size BN = 8 samples)
# ---------------------------------------------------------------------------
def _lenet_block_kernel(
    x_ref,     # (BN*28, 28*Cin) f32   input rows, lanes = (x, ci)
    w1_ref,    # (5, 28*Cin, 144) bf16 banded conv1 weight (per kernel row)
    b1_ref,    # (1, 144) f32          conv1 bias tiled over x
    s1r_ref,   # (BN*12, BN*28) bf16   pool1 even-row selector
    s1ce_ref,  # (144, 72) bf16        pool1 even-column selector
    s1co_ref,  # (144, 72) bf16        pool1 odd-column selector
    w2_ref,    # (5, 72, 128) bf16     banded conv2 weight
    b2_ref,    # (1, 128) f32
    s2r_ref,   # (4*BN, BN*12) bf16    pool2 row selector (rows out = (yo, b))
    s2c_ref,   # (128, 64) bf16        pool2 even-column selector
    w3_ref,    # (4, 64, 120) bf16     fc1 weight, NCHW flatten pre-folded
    b3_ref,    # (1, 120) f32
    w4_ref,    # (120, 84) bf16
    b4_ref,    # (1, 84) f32
    w5_ref,    # (84, C) bf16
    b5_ref,    # (1, C) f32
    o_ref,     # (BN, C) f32
    *, bn, cin):
    f32 = jnp.float32
    bf16 = jnp.bfloat16
    r1 = bn * 28   # conv1 row count (rows = (b, y), y in 0..27, valid y < 24)
    r2 = bn * 12   # pool1/conv2 row count (rows = (b, y), valid y < 8 after conv2)

    x = x_ref[...]                                           # (r1, 28*cin) f32

    # ---- conv1 (5x5 valid) + bias + ReLU: 5 banded matmuls over rolled rows
    acc1 = jnp.zeros((r1, 24 * 6), f32)
    for i in range(5):
        xi = x if i == 0 else pltpu.roll(x, r1 - i, axis=0)   # row r -> x[r+i]
        acc1 = acc1 + jnp.dot(xi.astype(bf16), w1_ref[i],
                              preferred_element_type=f32)
    h1 = jnp.maximum(acc1 + b1_ref[...], 0.0)                 # (r1, 144), lanes (x, c)

    # ---- maxpool1 (2x2, stride 2)
    # vertical pair-max via sublane roll (XLU); horizontal via even/odd
    # 0/1 selector matmuls; even-row downsample via a row-selector matmul.
    hv1 = jnp.maximum(h1, pltpu.roll(h1, r1 - 1, axis=0)).astype(bf16)
    col1 = jnp.maximum(
        jnp.dot(hv1, s1ce_ref[...], preferred_element_type=f32),
        jnp.dot(hv1, s1co_ref[...], preferred_element_type=f32))        # (r1, 72)
    p1 = jnp.dot(s1r_ref[...], col1.astype(bf16),
                 preferred_element_type=f32)                            # (r2, 72)

    # ---- conv2 (5x5 valid) + bias + ReLU
    acc2 = jnp.zeros((r2, 8 * 16), f32)
    for i in range(5):
        pi = p1 if i == 0 else pltpu.roll(p1, r2 - i, axis=0)
        acc2 = acc2 + jnp.dot(pi.astype(bf16), w2_ref[i],
                              preferred_element_type=f32)
    h2 = jnp.maximum(acc2 + b2_ref[...], 0.0)                 # (r2, 128), lanes (x, c)

    # ---- maxpool2 (2x2, stride 2): rolls for both pair-maxes (lane dim = 128),
    # then one even-column selector and one row selector (rows out = (yo, b)).
    hv2 = jnp.maximum(h2, pltpu.roll(h2, r2 - 1, axis=0))
    hh2 = jnp.maximum(hv2, pltpu.roll(hv2, 128 - 16, axis=1)).astype(bf16)
    t2 = jnp.dot(hh2, s2c_ref[...], preferred_element_type=f32)         # (r2, 64)
    p2 = jnp.dot(s2r_ref[...], t2.astype(bf16),
                 preferred_element_type=f32).astype(bf16)               # (4*bn, 64)

    # ---- fc1 + ReLU (NCHW flatten folded into w3; 4 aligned 8-row matmuls)
    acc3 = jnp.zeros((bn, 120), f32)
    for yo in range(4):
        acc3 = acc3 + jnp.dot(p2[yo * bn:(yo + 1) * bn, :], w3_ref[yo],
                              preferred_element_type=f32)
    h3 = jnp.maximum(acc3 + b3_ref[...], 0.0)

    # ---- fc2 + ReLU, fc3
    h4 = jnp.maximum(jnp.dot(h3.astype(bf16), w4_ref[...],
                             preferred_element_type=f32) + b4_ref[...], 0.0)
    out = jnp.dot(h4.astype(bf16), w5_ref[...],
                  preferred_element_type=f32) + b5_ref[...]
    o_ref[...] = out.astype(o_ref.dtype)


# ---------------------------------------------------------------------------
# Host-side weight / selector preparation
# ---------------------------------------------------------------------------
def _banded_conv_weight(w, in_w, out_w):
    """w: (Cout, Cin, 5, 5) PyTorch OIHW -> (5, in_w*Cin, out_w*Cout) banded."""
    cout, cin, kh, kw = w.shape
    e = np.zeros((kw, out_w, in_w), np.float32)
    for j in range(kw):
        for xo in range(out_w):
            e[j, xo, xo + j] = 1.0
    # result[i, xin, ci, xo, co] = sum_j e[j, xo, xin] * w[co, ci, i, j]
    wb = jnp.einsum("jyx,uvij->ixvyu", jnp.asarray(e), w)
    return wb.reshape(kh, in_w * cin, out_w * cout)


def _pool_selectors(bn):
    # pool1 even-row selector: picks row b*28 + 2*yo  ->  row b*12 + yo
    s1r = np.zeros((bn * 12, bn * 28), np.float32)
    for b in range(bn):
        for yo in range(12):
            s1r[b * 12 + yo, b * 28 + 2 * yo] = 1.0
    # pool1 even/odd column selectors over lanes (x, c), c minor (6 channels)
    s1ce = np.zeros((144, 72), np.float32)
    s1co = np.zeros((144, 72), np.float32)
    for xo in range(12):
        for c in range(6):
            s1ce[(2 * xo) * 6 + c, xo * 6 + c] = 1.0
            s1co[(2 * xo + 1) * 6 + c, xo * 6 + c] = 1.0
    # pool2 row selector: rows out ordered (yo, b), picks row b*12 + 2*yo
    s2r = np.zeros((4 * bn, bn * 12), np.float32)
    for yo in range(4):
        for b in range(bn):
            s2r[yo * bn + b, b * 12 + 2 * yo] = 1.0
    # pool2 even-column selector over lanes (x, c), c minor (16 channels)
    s2c = np.zeros((128, 64), np.float32)
    for xo in range(4):
        for c in range(16):
            s2c[(2 * xo) * 16 + c, xo * 16 + c] = 1.0
    return tuple(jnp.asarray(a, jnp.bfloat16) for a in (s1r, s1ce, s1co, s2r, s2c))


def lenet_forward(params, x):
    n, cin, h, w = x.shape
    assert (h, w) == (28, 28), "LeNet fc head (16*4*4) requires 28x28 inputs"
    num_classes = params["fc3_b"].shape[0]
    f32, bf16 = jnp.float32, jnp.bfloat16

    BN = 8                                    # samples per grid block (full sublanes)
    n_pad = ((n + BN - 1) // BN) * BN
    nblocks = n_pad // BN

    # Input: NCHW -> rows = (batch, y), lanes = (x, ci); pad batch to n_pad.
    x_rows = jnp.transpose(x, (0, 2, 3, 1)).reshape(n, 28, 28 * cin)
    if n_pad != n:
        x_rows = jnp.concatenate(
            [x_rows, jnp.zeros((n_pad - n, 28, 28 * cin), x_rows.dtype)], axis=0)
    x2d = x_rows.reshape(n_pad * 28, 28 * cin).astype(f32)

    # One-time (tiny) weight re-layouts.
    w1 = _banded_conv_weight(params["conv1_w"], 28, 24).astype(bf16)   # (5, 28*cin, 144)
    w2 = _banded_conv_weight(params["conv2_w"], 12, 8).astype(bf16)    # (5, 72, 128)
    b1t = jnp.tile(params["conv1_b"], 24).reshape(1, 144).astype(f32)
    b2t = jnp.tile(params["conv2_b"], 8).reshape(1, 128).astype(f32)
    # fc1: PyTorch flatten index = c*16 + yo*4 + xo ; kernel lanes = (xo, c).
    w3 = jnp.transpose(params["fc1_w"].reshape(16, 4, 4, 120),
                       (1, 2, 0, 3)).reshape(4, 64, 120).astype(bf16)
    b3 = params["fc1_b"].reshape(1, 120).astype(f32)
    w4 = params["fc2_w"].astype(bf16)
    b4 = params["fc2_b"].reshape(1, 84).astype(f32)
    w5 = params["fc3_w"].astype(bf16)
    b5 = params["fc3_b"].reshape(1, num_classes).astype(f32)

    s1r, s1ce, s1co, s2r, s2c = _pool_selectors(BN)

    kernel = functools.partial(_lenet_block_kernel, bn=BN, cin=cin)

    def full_spec(a):
        return pl.BlockSpec(a.shape, lambda b, _nd=a.ndim: (0,) * _nd)

    out = pl.pallas_call(
        kernel,
        grid=(nblocks,),
        out_shape=jax.ShapeDtypeStruct((n_pad, num_classes), jnp.float32),
        in_specs=[
            pl.BlockSpec((BN * 28, 28 * cin), lambda b: (b, 0)),   # x2d per block
            full_spec(w1), full_spec(b1t),
            full_spec(s1r), full_spec(s1ce), full_spec(s1co),
            full_spec(w2), full_spec(b2t),
            full_spec(s2r), full_spec(s2c),
            full_spec(w3), full_spec(b3),
            full_spec(w4), full_spec(b4),
            full_spec(w5), full_spec(b5),
        ],
        out_specs=pl.BlockSpec((BN, num_classes), lambda b: (b, 0)),
        compiler_params=pltpu.CompilerParams(
            dimension_semantics=("parallel",)),
    )(x2d, w1, b1t, s1r, s1ce, s1co, w2, b2t, s2r, s2c,
      w3, b3, w4, b4, w5, b5)
    return out[:n]


# ---------------------------------------------------------------------------
# Parameters + main
# ---------------------------------------------------------------------------
def init_lenet_params(key, input_channels, output_channels):
    ks = jax.random.split(key, 10)
    scale = 0.1

    def norm(k, shape):
        return scale * jax.random.normal(k, shape, dtype=jnp.float32)

    return {
        "conv1_w": norm(ks[0], (6, input_channels, 5, 5)),
        "conv1_b": norm(ks[1], (6,)),
        "conv2_w": norm(ks[2], (16, 6, 5, 5)),
        "conv2_b": norm(ks[3], (16,)),
        "fc1_w": norm(ks[4], (16 * 4 * 4, 120)),
        "fc1_b": norm(ks[5], (120,)),
        "fc2_w": norm(ks[6], (120, 84)),
        "fc2_b": norm(ks[7], (84,)),
        "fc3_w": norm(ks[8], (84, output_channels)),
        "fc3_b": norm(ks[9], (output_channels,)),
    }


if __name__ == "__main__":
    key = jax.random.PRNGKey(0)
    k_param, k_x = jax.random.split(key)

    input_channels = 1
    output_channels = 10
    batch = 2
    # 28x28 input is required by the 16*4*4 FC layer (LeNet / MNIST geometry)
    x = jax.random.normal(k_x, (batch, input_channels, 28, 28), dtype=jnp.float32)

    params = init_lenet_params(k_param, input_channels, output_channels)

    out = jax.jit(lenet_forward)(params, x)
    out = jax.block_until_ready(out)
    assert out.shape == (batch, output_channels), out.shape
    print("KERNEL_OK")
</pallas_src>

<mosaic_0001>
module attributes {stable_mosaic.version = 11 : i64} {
  func.func @_lenet_block_kernel(%arg0: i32, %arg1: memref<224x28xf32, #tpu.memory_space<vmem>>, %arg2: memref<5x28x144xbf16, #tpu.memory_space<vmem>>, %arg3: memref<1x144xf32, #tpu.memory_space<vmem>>, %arg4: memref<96x224xbf16, #tpu.memory_space<vmem>>, %arg5: memref<144x72xbf16, #tpu.memory_space<vmem>>, %arg6: memref<144x72xbf16, #tpu.memory_space<vmem>>, %arg7: memref<5x72x128xbf16, #tpu.memory_space<vmem>>, %arg8: memref<1x128xf32, #tpu.memory_space<vmem>>, %arg9: memref<32x96xbf16, #tpu.memory_space<vmem>>, %arg10: memref<128x64xbf16, #tpu.memory_space<vmem>>, %arg11: memref<4x64x120xbf16, #tpu.memory_space<vmem>>, %arg12: memref<1x120xf32, #tpu.memory_space<vmem>>, %arg13: memref<120x84xbf16, #tpu.memory_space<vmem>>, %arg14: memref<1x84xf32, #tpu.memory_space<vmem>>, %arg15: memref<84x10xbf16, #tpu.memory_space<vmem>>, %arg16: memref<1x10xf32, #tpu.memory_space<vmem>>, %arg17: memref<8x10xf32, #tpu.memory_space<vmem>>) attributes {dimension_semantics = [#tpu.dimension_semantics<parallel>], iteration_bounds = array<i64: 1>, scalar_prefetch = 0 : i64, scratch_operands = 0 : i64, tpu.core_type = #tpu.core_type<tc>, window_params = [{transform_indices = @transform_0, window_bounds = array<i64: 224, 28>}, {pipeline_mode = #tpu.pipeline_mode<synchronous>, transform_indices = @transform_1, window_bounds = array<i64: 5, 28, 144>}, {pipeline_mode = #tpu.pipeline_mode<synchronous>, transform_indices = @transform_2, window_bounds = array<i64: 1, 144>}, {pipeline_mode = #tpu.pipeline_mode<synchronous>, transform_indices = @transform_3, window_bounds = array<i64: 96, 224>}, {pipeline_mode = #tpu.pipeline_mode<synchronous>, transform_indices = @transform_4, window_bounds = array<i64: 144, 72>}, {pipeline_mode = #tpu.pipeline_mode<synchronous>, transform_indices = @transform_5, window_bounds = array<i64: 144, 72>}, {pipeline_mode = #tpu.pipeline_mode<synchronous>, transform_indices = @transform_6, window_bounds = array<i64: 5, 72, 128>}, {pipeline_mode = #tpu.pipeline_mode<synchronous>, transform_indices = @transform_7, window_bounds = array<i64: 1, 128>}, {pipeline_mode = #tpu.pipeline_mode<synchronous>, transform_indices = @transform_8, window_bounds = array<i64: 32, 96>}, {pipeline_mode = #tpu.pipeline_mode<synchronous>, transform_indices = @transform_9, window_bounds = array<i64: 128, 64>}, {pipeline_mode = #tpu.pipeline_mode<synchronous>, transform_indices = @transform_10, window_bounds = array<i64: 4, 64, 120>}, {pipeline_mode = #tpu.pipeline_mode<synchronous>, transform_indices = @transform_11, window_bounds = array<i64: 1, 120>}, {pipeline_mode = #tpu.pipeline_mode<synchronous>, transform_indices = @transform_12, window_bounds = array<i64: 120, 84>}, {pipeline_mode = #tpu.pipeline_mode<synchronous>, transform_indices = @transform_13, window_bounds = array<i64: 1, 84>}, {pipeline_mode = #tpu.pipeline_mode<synchronous>, transform_indices = @transform_14, window_bounds = array<i64: 84, 10>}, {pipeline_mode = #tpu.pipeline_mode<synchronous>, transform_indices = @transform_15, window_bounds = array<i64: 1, 10>}, {transform_indices = @transform_16, window_bounds = array<i64: 8, 10>}]} {
    %c0 = arith.constant 0 : index
    %c0_0 = arith.constant 0 : index
    %0 = vector.load %arg1[%c0, %c0_0] : memref<224x28xf32, #tpu.memory_space<vmem>>, vector<224x28xf32>
    %cst = arith.constant 0.000000e+00 : f32
    %1 = vector.broadcast %cst : f32 to vector<224x144xf32>
    %2 = arith.truncf %0 : vector<224x28xf32> to vector<224x28xbf16>
    %c0_1 = arith.constant 0 : index
    %c0_2 = arith.constant 0 : index
    %c0_3 = arith.constant 0 : index
    %3 = vector.load %arg2[%c0_1, %c0_2, %c0_3] : memref<5x28x144xbf16, #tpu.memory_space<vmem>>, vector<1x28x144xbf16>
    %4 = vector.shape_cast %3 : vector<1x28x144xbf16> to vector<28x144xbf16>
    %cst_4 = arith.constant dense<0.000000e+00> : vector<224x144xf32>
    %5 = tpu.matmul %2, %4, %cst_4 {dimension_numbers = #tpu.dot_dimension_numbers<[1], [0], [0], [1], [0, 0, 1, 1], [], []>} : vector<224x28xbf16>, vector<28x144xbf16>, vector<224x144xf32> -> vector<224x144xf32>
    %6 = arith.addf %1, %5 : vector<224x144xf32>
    %c223_i32 = arith.constant 223 : i32
    %7 = tpu.dynamic_rotate %0 by %c223_i32 dim 0 : vector<224x28xf32>, i32 -> vector<224x28xf32>
    %8 = arith.truncf %7 : vector<224x28xf32> to vector<224x28xbf16>
    %c1 = arith.constant 1 : index
    %c0_5 = arith.constant 0 : index
    %c0_6 = arith.constant 0 : index
    %9 = vector.load %arg2[%c1, %c0_5, %c0_6] : memref<5x28x144xbf16, #tpu.memory_space<vmem>>, vector<1x28x144xbf16>
    %10 = vector.shape_cast %9 : vector<1x28x144xbf16> to vector<28x144xbf16>
    %cst_7 = arith.constant dense<0.000000e+00> : vector<224x144xf32>
    %11 = tpu.matmul %8, %10, %cst_7 {dimension_numbers = #tpu.dot_dimension_numbers<[1], [0], [0], [1], [0, 0, 1, 1], [], []>} : vector<224x28xbf16>, vector<28x144xbf16>, vector<224x144xf32> -> vector<224x144xf32>
    %12 = arith.addf %6, %11 : vector<224x144xf32>
    %c222_i32 = arith.constant 222 : i32
    %13 = tpu.dynamic_rotate %0 by %c222_i32 dim 0 : vector<224x28xf32>, i32 -> vector<224x28xf32>
    %14 = arith.truncf %13 : vector<224x28xf32> to vector<224x28xbf16>
    %c2 = arith.constant 2 : index
    %c0_8 = arith.constant 0 : index
    %c0_9 = arith.constant 0 : index
    %15 = vector.load %arg2[%c2, %c0_8, %c0_9] : memref<5x28x144xbf16, #tpu.memory_space<vmem>>, vector<1x28x144xbf16>
    %16 = vector.shape_cast %15 : vector<1x28x144xbf16> to vector<28x144xbf16>
    %cst_10 = arith.constant dense<0.000000e+00> : vector<224x144xf32>
    %17 = tpu.matmul %14, %16, %cst_10 {dimension_numbers = #tpu.dot_dimension_numbers<[1], [0], [0], [1], [0, 0, 1, 1], [], []>} : vector<224x28xbf16>, vector<28x144xbf16>, vector<224x144xf32> -> vector<224x144xf32>
    %18 = arith.addf %12, %17 : vector<224x144xf32>
    %c221_i32 = arith.constant 221 : i32
    %19 = tpu.dynamic_rotate %0 by %c221_i32 dim 0 : vector<224x28xf32>, i32 -> vector<224x28xf32>
    %20 = arith.truncf %19 : vector<224x28xf32> to vector<224x28xbf16>
    %c3 = arith.constant 3 : index
    %c0_11 = arith.constant 0 : index
    %c0_12 = arith.constant 0 : index
    %21 = vector.load %arg2[%c3, %c0_11, %c0_12] : memref<5x28x144xbf16, #tpu.memory_space<vmem>>, vector<1x28x144xbf16>
    %22 = vector.shape_cast %21 : vector<1x28x144xbf16> to vector<28x144xbf16>
    %cst_13 = arith.constant dense<0.000000e+00> : vector<224x144xf32>
    %23 = tpu.matmul %20, %22, %cst_13 {dimension_numbers = #tpu.dot_dimension_numbers<[1], [0], [0], [1], [0, 0, 1, 1], [], []>} : vector<224x28xbf16>, vector<28x144xbf16>, vector<224x144xf32> -> vector<224x144xf32>
    %24 = arith.addf %18, %23 : vector<224x144xf32>
    %c220_i32 = arith.constant 220 : i32
    %25 = tpu.dynamic_rotate %0 by %c220_i32 dim 0 : vector<224x28xf32>, i32 -> vector<224x28xf32>
    %26 = arith.truncf %25 : vector<224x28xf32> to vector<224x28xbf16>
    %c4 = arith.constant 4 : index
    %c0_14 = arith.constant 0 : index
    %c0_15 = arith.constant 0 : index
    %27 = vector.load %arg2[%c4, %c0_14, %c0_15] : memref<5x28x144xbf16, #tpu.memory_space<vmem>>, vector<1x28x144xbf16>
    %28 = vector.shape_cast %27 : vector<1x28x144xbf16> to vector<28x144xbf16>
    %cst_16 = arith.constant dense<0.000000e+00> : vector<224x144xf32>
    %29 = tpu.matmul %26, %28, %cst_16 {dimension_numbers = #tpu.dot_dimension_numbers<[1], [0], [0], [1], [0, 0, 1, 1], [], []>} : vector<224x28xbf16>, vector<28x144xbf16>, vector<224x144xf32> -> vector<224x144xf32>
    %30 = arith.addf %24, %29 : vector<224x144xf32>
    %c0_17 = arith.constant 0 : index
    %c0_18 = arith.constant 0 : index
    %31 = vector.load %arg3[%c0_17, %c0_18] : memref<1x144xf32, #tpu.memory_space<vmem>>, vector<1x144xf32>
    %32 = vector.broadcast %31 : vector<1x144xf32> to vector<224x144xf32>
    %33 = arith.addf %30, %32 : vector<224x144xf32>
    %cst_19 = arith.constant 0.000000e+00 : f32
    %34 = vector.broadcast %cst_19 : f32 to vector<224x144xf32>
    %35 = arith.maximumf %33, %34 : vector<224x144xf32>
    %c223_i32_20 = arith.constant 223 : i32
    %36 = tpu.dynamic_rotate %35 by %c223_i32_20 dim 0 : vector<224x144xf32>, i32 -> vector<224x144xf32>
    %37 = arith.maximumf %35, %36 : vector<224x144xf32>
    %38 = arith.truncf %37 : vector<224x144xf32> to vector<224x144xbf16>
    %c0_21 = arith.constant 0 : index
    %c0_22 = arith.constant 0 : index
    %39 = vector.load %arg5[%c0_21, %c0_22] : memref<144x72xbf16, #tpu.memory_space<vmem>>, vector<144x72xbf16>
    %cst_23 = arith.constant dense<0.000000e+00> : vector<224x72xf32>
    %40 = tpu.matmul %38, %39, %cst_23 {dimension_numbers = #tpu.dot_dimension_numbers<[1], [0], [0], [1], [0, 0, 1, 1], [], []>} : vector<224x144xbf16>, vector<144x72xbf16>, vector<224x72xf32> -> vector<224x72xf32>
    %c0_24 = arith.constant 0 : index
    %c0_25 = arith.constant 0 : index
    %41 = vector.load %arg6[%c0_24, %c0_25] : memref<144x72xbf16, #tpu.memory_space<vmem>>, vector<144x72xbf16>
    %cst_26 = arith.constant dense<0.000000e+00> : vector<224x72xf32>
    %42 = tpu.matmul %38, %41, %cst_26 {dimension_numbers = #tpu.dot_dimension_numbers<[1], [0], [0], [1], [0, 0, 1, 1], [], []>} : vector<224x144xbf16>, vector<144x72xbf16>, vector<224x72xf32> -> vector<224x72xf32>
    %43 = arith.maximumf %40, %42 : vector<224x72xf32>
    %c0_27 = arith.constant 0 : index
    %c0_28 = arith.constant 0 : index
    %44 = vector.load %arg4[%c0_27, %c0_28] : memref<96x224xbf16, #tpu.memory_space<vmem>>, vector<96x224xbf16>
    %45 = arith.truncf %43 : vector<224x72xf32> to vector<224x72xbf16>
    %cst_29 = arith.constant dense<0.000000e+00> : vector<96x72xf32>
    %46 = tpu.matmul %44, %45, %cst_29 {dimension_numbers = #tpu.dot_dimension_numbers<[1], [0], [0], [1], [0, 0, 1, 1], [], []>} : vector<96x224xbf16>, vector<224x72xbf16>, vector<96x72xf32> -> vector<96x72xf32>
    %cst_30 = arith.constant 0.000000e+00 : f32
    %47 = vector.broadcast %cst_30 : f32 to vector<96x128xf32>
    %48 = arith.truncf %46 : vector<96x72xf32> to vector<96x72xbf16>
    %c0_31 = arith.constant 0 : index
    %c0_32 = arith.constant 0 : index
    %c0_33 = arith.constant 0 : index
    %49 = vector.load %arg7[%c0_31, %c0_32, %c0_33] : memref<5x72x128xbf16, #tpu.memory_space<vmem>>, vector<1x72x128xbf16>
    %50 = vector.shape_cast %49 : vector<1x72x128xbf16> to vector<72x128xbf16>
    %cst_34 = arith.constant dense<0.000000e+00> : vector<96x128xf32>
    %51 = tpu.matmul %48, %50, %cst_34 {dimension_numbers = #tpu.dot_dimension_numbers<[1], [0], [0], [1], [0, 0, 1, 1], [], []>} : vector<96x72xbf16>, vector<72x128xbf16>, vector<96x128xf32> -> vector<96x128xf32>
    %52 = arith.addf %47, %51 : vector<96x128xf32>
    %c95_i32 = arith.constant 95 : i32
    %53 = tpu.dynamic_rotate %46 by %c95_i32 dim 0 : vector<96x72xf32>, i32 -> vector<96x72xf32>
    %54 = arith.truncf %53 : vector<96x72xf32> to vector<96x72xbf16>
    %c1_35 = arith.constant 1 : index
    %c0_36 = arith.constant 0 : index
    %c0_37 = arith.constant 0 : index
    %55 = vector.load %arg7[%c1_35, %c0_36, %c0_37] : memref<5x72x128xbf16, #tpu.memory_space<vmem>>, vector<1x72x128xbf16>
    %56 = vector.shape_cast %55 : vector<1x72x128xbf16> to vector<72x128xbf16>
    %cst_38 = arith.constant dense<0.000000e+00> : vector<96x128xf32>
    %57 = tpu.matmul %54, %56, %cst_38 {dimension_numbers = #tpu.dot_dimension_numbers<[1], [0], [0], [1], [0, 0, 1, 1], [], []>} : vector<96x72xbf16>, vector<72x128xbf16>, vector<96x128xf32> -> vector<96x128xf32>
    %58 = arith.addf %52, %57 : vector<96x128xf32>
    %c94_i32 = arith.constant 94 : i32
    %59 = tpu.dynamic_rotate %46 by %c94_i32 dim 0 : vector<96x72xf32>, i32 -> vector<96x72xf32>
    %60 = arith.truncf %59 : vector<96x72xf32> to vector<96x72xbf16>
    %c2_39 = arith.constant 2 : index
    %c0_40 = arith.constant 0 : index
    %c0_41 = arith.constant 0 : index
    %61 = vector.load %arg7[%c2_39, %c0_40, %c0_41] : memref<5x72x128xbf16, #tpu.memory_space<vmem>>, vector<1x72x128xbf16>
    %62 = vector.shape_cast %61 : vector<1x72x128xbf16> to vector<72x128xbf16>
    %cst_42 = arith.constant dense<0.000000e+00> : vector<96x128xf32>
    %63 = tpu.matmul %60, %62, %cst_42 {dimension_numbers = #tpu.dot_dimension_numbers<[1], [0], [0], [1], [0, 0, 1, 1], [], []>} : vector<96x72xbf16>, vector<72x128xbf16>, vector<96x128xf32> -> vector<96x128xf32>
    %64 = arith.addf %58, %63 : vector<96x128xf32>
    %c93_i32 = arith.constant 93 : i32
    %65 = tpu.dynamic_rotate %46 by %c93_i32 dim 0 : vector<96x72xf32>, i32 -> vector<96x72xf32>
    %66 = arith.truncf %65 : vector<96x72xf32> to vector<96x72xbf16>
    %c3_43 = arith.constant 3 : index
    %c0_44 = arith.constant 0 : index
    %c0_45 = arith.constant 0 : index
    %67 = vector.load %arg7[%c3_43, %c0_44, %c0_45] : memref<5x72x128xbf16, #tpu.memory_space<vmem>>, vector<1x72x128xbf16>
    %68 = vector.shape_cast %67 : vector<1x72x128xbf16> to vector<72x128xbf16>
    %cst_46 = arith.constant dense<0.000000e+00> : vector<96x128xf32>
    %69 = tpu.matmul %66, %68, %cst_46 {dimension_numbers = #tpu.dot_dimension_numbers<[1], [0], [0], [1], [0, 0, 1, 1], [], []>} : vector<96x72xbf16>, vector<72x128xbf16>, vector<96x128xf32> -> vector<96x128xf32>
    %70 = arith.addf %64, %69 : vector<96x128xf32>
    %c92_i32 = arith.constant 92 : i32
    %71 = tpu.dynamic_rotate %46 by %c92_i32 dim 0 : vector<96x72xf32>, i32 -> vector<96x72xf32>
    %72 = arith.truncf %71 : vector<96x72xf32> to vector<96x72xbf16>
    %c4_47 = arith.constant 4 : index
    %c0_48 = arith.constant 0 : index
    %c0_49 = arith.constant 0 : index
    %73 = vector.load %arg7[%c4_47, %c0_48, %c0_49] : memref<5x72x128xbf16, #tpu.memory_space<vmem>>, vector<1x72x128xbf16>
    %74 = vector.shape_cast %73 : vector<1x72x128xbf16> to vector<72x128xbf16>
    %cst_50 = arith.constant dense<0.000000e+00> : vector<96x128xf32>
    %75 = tpu.matmul %72, %74, %cst_50 {dimension_numbers = #tpu.dot_dimension_numbers<[1], [0], [0], [1], [0, 0, 1, 1], [], []>} : vector<96x72xbf16>, vector<72x128xbf16>, vector<96x128xf32> -> vector<96x128xf32>
    %76 = arith.addf %70, %75 : vector<96x128xf32>
    %c0_51 = arith.constant 0 : index
    %c0_52 = arith.constant 0 : index
    %77 = vector.load %arg8[%c0_51, %c0_52] : memref<1x128xf32, #tpu.memory_space<vmem>>, vector<1x128xf32>
    %78 = vector.broadcast %77 : vector<1x128xf32> to vector<96x128xf32>
    %79 = arith.addf %76, %78 : vector<96x128xf32>
    %cst_53 = arith.constant 0.000000e+00 : f32
    %80 = vector.broadcast %cst_53 : f32 to vector<96x128xf32>
    %81 = arith.maximumf %79, %80 : vector<96x128xf32>
    %c95_i32_54 = arith.constant 95 : i32
    %82 = tpu.dynamic_rotate %81 by %c95_i32_54 dim 0 : vector<96x128xf32>, i32 -> vector<96x128xf32>
    %83 = arith.maximumf %81, %82 : vector<96x128xf32>
    %c112_i32 = arith.constant 112 : i32
    %84 = tpu.dynamic_rotate %83 by %c112_i32 dim 1 : vector<96x128xf32>, i32 -> vector<96x128xf32>
    %85 = arith.maximumf %83, %84 : vector<96x128xf32>
    %86 = arith.truncf %85 : vector<96x128xf32> to vector<96x128xbf16>
    %c0_55 = arith.constant 0 : index
    %c0_56 = arith.constant 0 : index
    %87 = vector.load %arg10[%c0_55, %c0_56] : memref<128x64xbf16, #tpu.memory_space<vmem>>, vector<128x64xbf16>
    %cst_57 = arith.constant dense<0.000000e+00> : vector<96x64xf32>
    %88 = tpu.matmul %86, %87, %cst_57 {dimension_numbers = #tpu.dot_dimension_numbers<[1], [0], [0], [1], [0, 0, 1, 1], [], []>} : vector<96x128xbf16>, vector<128x64xbf16>, vector<96x64xf32> -> vector<96x64xf32>
    %c0_58 = arith.constant 0 : index
    %c0_59 = arith.constant 0 : index
    %89 = vector.load %arg9[%c0_58, %c0_59] : memref<32x96xbf16, #tpu.memory_space<vmem>>, vector<32x96xbf16>
    %90 = arith.truncf %88 : vector<96x64xf32> to vector<96x64xbf16>
    %cst_60 = arith.constant dense<0.000000e+00> : vector<32x64xf32>
    %91 = tpu.matmul %89, %90, %cst_60 {dimension_numbers = #tpu.dot_dimension_numbers<[1], [0], [0], [1], [0, 0, 1, 1], [], []>} : vector<32x96xbf16>, vector<96x64xbf16>, vector<32x64xf32> -> vector<32x64xf32>
    %92 = arith.truncf %91 : vector<32x64xf32> to vector<32x64xbf16>
    %cst_61 = arith.constant 0.000000e+00 : f32
    %93 = vector.broadcast %cst_61 : f32 to vector<8x120xf32>
    %94 = vector.extract_strided_slice %92 {offsets = [0, 0], sizes = [8, 64], strides = [1, 1]} : vector<32x64xbf16> to vector<8x64xbf16>
    %c0_62 = arith.constant 0 : index
    %c0_63 = arith.constant 0 : index
    %c0_64 = arith.constant 0 : index
    %95 = vector.load %arg11[%c0_62, %c0_63, %c0_64] : memref<4x64x120xbf16, #tpu.memory_space<vmem>>, vector<1x64x120xbf16>
    %96 = vector.shape_cast %95 : vector<1x64x120xbf16> to vector<64x120xbf16>
    %cst_65 = arith.constant dense<0.000000e+00> : vector<8x120xf32>
    %97 = tpu.matmul %94, %96, %cst_65 {dimension_numbers = #tpu.dot_dimension_numbers<[1], [0], [0], [1], [0, 0, 1, 1], [], []>} : vector<8x64xbf16>, vector<64x120xbf16>, vector<8x120xf32> -> vector<8x120xf32>
    %98 = arith.addf %93, %97 : vector<8x120xf32>
    %99 = vector.extract_strided_slice %92 {offsets = [8, 0], sizes = [8, 64], strides = [1, 1]} : vector<32x64xbf16> to vector<8x64xbf16>
    %c1_66 = arith.constant 1 : index
    %c0_67 = arith.constant 0 : index
    %c0_68 = arith.constant 0 : index
    %100 = vector.load %arg11[%c1_66, %c0_67, %c0_68] : memref<4x64x120xbf16, #tpu.memory_space<vmem>>, vector<1x64x120xbf16>
    %101 = vector.shape_cast %100 : vector<1x64x120xbf16> to vector<64x120xbf16>
    %cst_69 = arith.constant dense<0.000000e+00> : vector<8x120xf32>
    %102 = tpu.matmul %99, %101, %cst_69 {dimension_numbers = #tpu.dot_dimension_numbers<[1], [0], [0], [1], [0, 0, 1, 1], [], []>} : vector<8x64xbf16>, vector<64x120xbf16>, vector<8x120xf32> -> vector<8x120xf32>
    %103 = arith.addf %98, %102 : vector<8x120xf32>
    %104 = vector.extract_strided_slice %92 {offsets = [16, 0], sizes = [8, 64], strides = [1, 1]} : vector<32x64xbf16> to vector<8x64xbf16>
    %c2_70 = arith.constant 2 : index
    %c0_71 = arith.constant 0 : index
    %c0_72 = arith.constant 0 : index
    %105 = vector.load %arg11[%c2_70, %c0_71, %c0_72] : memref<4x64x120xbf16, #tpu.memory_space<vmem>>, vector<1x64x120xbf16>
    %106 = vector.shape_cast %105 : vector<1x64x120xbf16> to vector<64x120xbf16>
    %cst_73 = arith.constant dense<0.000000e+00> : vector<8x120xf32>
    %107 = tpu.matmul %104, %106, %cst_73 {dimension_numbers = #tpu.dot_dimension_numbers<[1], [0], [0], [1], [0, 0, 1, 1], [], []>} : vector<8x64xbf16>, vector<64x120xbf16>, vector<8x120xf32> -> vector<8x120xf32>
    %108 = arith.addf %103, %107 : vector<8x120xf32>
    %109 = vector.extract_strided_slice %92 {offsets = [24, 0], sizes = [8, 64], strides = [1, 1]} : vector<32x64xbf16> to vector<8x64xbf16>
    %c3_74 = arith.constant 3 : index
    %c0_75 = arith.constant 0 : index
    %c0_76 = arith.constant 0 : index
    %110 = vector.load %arg11[%c3_74, %c0_75, %c0_76] : memref<4x64x120xbf16, #tpu.memory_space<vmem>>, vector<1x64x120xbf16>
    %111 = vector.shape_cast %110 : vector<1x64x120xbf16> to vector<64x120xbf16>
    %cst_77 = arith.constant dense<0.000000e+00> : vector<8x120xf32>
    %112 = tpu.matmul %109, %111, %cst_77 {dimension_numbers = #tpu.dot_dimension_numbers<[1], [0], [0], [1], [0, 0, 1, 1], [], []>} : vector<8x64xbf16>, vector<64x120xbf16>, vector<8x120xf32> -> vector<8x120xf32>
    %113 = arith.addf %108, %112 : vector<8x120xf32>
    %c0_78 = arith.constant 0 : index
    %c0_79 = arith.constant 0 : index
    %114 = vector.load %arg12[%c0_78, %c0_79] : memref<1x120xf32, #tpu.memory_space<vmem>>, vector<1x120xf32>
    %115 = vector.broadcast %114 : vector<1x120xf32> to vector<8x120xf32>
    %116 = arith.addf %113, %115 : vector<8x120xf32>
    %cst_80 = arith.constant 0.000000e+00 : f32
    %117 = vector.broadcast %cst_80 : f32 to vector<8x120xf32>
    %118 = arith.maximumf %116, %117 : vector<8x120xf32>
    %119 = arith.truncf %118 : vector<8x120xf32> to vector<8x120xbf16>
    %c0_81 = arith.constant 0 : index
    %c0_82 = arith.constant 0 : index
    %120 = vector.load %arg13[%c0_81, %c0_82] : memref<120x84xbf16, #tpu.memory_space<vmem>>, vector<120x84xbf16>
    %cst_83 = arith.constant dense<0.000000e+00> : vector<8x84xf32>
    %121 = tpu.matmul %119, %120, %cst_83 {dimension_numbers = #tpu.dot_dimension_numbers<[1], [0], [0], [1], [0, 0, 1, 1], [], []>} : vector<8x120xbf16>, vector<120x84xbf16>, vector<8x84xf32> -> vector<8x84xf32>
    %c0_84 = arith.constant 0 : index
    %c0_85 = arith.constant 0 : index
    %122 = vector.load %arg14[%c0_84, %c0_85] : memref<1x84xf32, #tpu.memory_space<vmem>>, vector<1x84xf32>
    %123 = vector.broadcast %122 : vector<1x84xf32> to vector<8x84xf32>
    %124 = arith.addf %121, %123 : vector<8x84xf32>
    %cst_86 = arith.constant 0.000000e+00 : f32
    %125 = vector.broadcast %cst_86 : f32 to vector<8x84xf32>
    %126 = arith.maximumf %124, %125 : vector<8x84xf32>
    %127 = arith.truncf %126 : vector<8x84xf32> to vector<8x84xbf16>
    %c0_87 = arith.constant 0 : index
    %c0_88 = arith.constant 0 : index
    %128 = vector.load %arg15[%c0_87, %c0_88] : memref<84x10xbf16, #tpu.memory_space<vmem>>, vector<84x10xbf16>
    %cst_89 = arith.constant dense<0.000000e+00> : vector<8x10xf32>
    %129 = tpu.matmul %127, %128, %cst_89 {dimension_numbers = #tpu.dot_dimension_numbers<[1], [0], [0], [1], [0, 0, 1, 1], [], []>} : vector<8x84xbf16>, vector<84x10xbf16>, vector<8x10xf32> -> vector<8x10xf32>
    %c0_90 = arith.constant 0 : index
    %c0_91 = arith.constant 0 : index
    %130 = vector.load %arg16[%c0_90, %c0_91] : memref<1x10xf32, #tpu.memory_space<vmem>>, vector<1x10xf32>
    %131 = vector.broadcast %130 : vector<1x10xf32> to vector<8x10xf32>
    %132 = arith.addf %129, %131 : vector<8x10xf32>
    %c0_92 = arith.constant 0 : index
    %c0_93 = arith.constant 0 : index
    %133 = vector.load %arg17[%c0_92, %c0_93] : memref<8x10xf32, #tpu.memory_space<vmem>>, vector<8x10xf32>
    tpu.vector_store %arg17[%c0_92, %c0_93], %132 {strides = array<i32>} : memref<8x10xf32, #tpu.memory_space<vmem>>, vector<8x10xf32>,
    return
  }
  func.func @transform_0(%arg0: i32) -> (i32, i32) {
    %c0_i32 = arith.constant 0 : i32
    %c0_i32_0 = arith.constant 0 : i32
    return %arg0, %c0_i32 : i32, i32
  }
  func.func @transform_1(%arg0: i32) -> (i32, i32, i32) {
    %c0_i32 = arith.constant 0 : i32
    %c0_i32_0 = arith.constant 0 : i32
    %c0_i32_1 = arith.constant 0 : i32
    %c0_i32_2 = arith.constant 0 : i32
    return %c0_i32, %c0_i32_0, %c0_i32_1 : i32, i32, i32
  }
  func.func @transform_2(%arg0: i32) -> (i32, i32) {
    %c0_i32 = arith.constant 0 : i32
    %c0_i32_0 = arith.constant 0 : i32
    %c0_i32_1 = arith.constant 0 : i32
    return %c0_i32, %c0_i32_0 : i32, i32
  }
  func.func @transform_3(%arg0: i32) -> (i32, i32) {
    %c0_i32 = arith.constant 0 : i32
    %c0_i32_0 = arith.constant 0 : i32
    %c0_i32_1 = arith.constant 0 : i32
    return %c0_i32, %c0_i32_0 : i32, i32
  }
  func.func @transform_4(%arg0: i32) -> (i32, i32) {
    %c0_i32 = arith.constant 0 : i32
    %c0_i32_0 = arith.constant 0 : i32
    %c0_i32_1 = arith.constant 0 : i32
    return %c0_i32, %c0_i32_0 : i32, i32
  }
  func.func @transform_5(%arg0: i32) -> (i32, i32) {
    %c0_i32 = arith.constant 0 : i32
    %c0_i32_0 = arith.constant 0 : i32
    %c0_i32_1 = arith.constant 0 : i32
    return %c0_i32, %c0_i32_0 : i32, i32
  }
  func.func @transform_6(%arg0: i32) -> (i32, i32, i32) {
    %c0_i32 = arith.constant 0 : i32
    %c0_i32_0 = arith.constant 0 : i32
    %c0_i32_1 = arith.constant 0 : i32
    %c0_i32_2 = arith.constant 0 : i32
    return %c0_i32, %c0_i32_0, %c0_i32_1 : i32, i32, i32
  }
  func.func @transform_7(%arg0: i32) -> (i32, i32) {
    %c0_i32 = arith.constant 0 : i32
    %c0_i32_0 = arith.constant 0 : i32
    %c0_i32_1 = arith.constant 0 : i32
    return %c0_i32, %c0_i32_0 : i32, i32
  }
  func.func @transform_8(%arg0: i32) -> (i32, i32) {
    %c0_i32 = arith.constant 0 : i32
    %c0_i32_0 = arith.constant 0 : i32
    %c0_i32_1 = arith.constant 0 : i32
    return %c0_i32, %c0_i32_0 : i32, i32
  }
  func.func @transform_9(%arg0: i32) -> (i32, i32) {
    %c0_i32 = arith.constant 0 : i32
    %c0_i32_0 = arith.constant 0 : i32
    %c0_i32_1 = arith.constant 0 : i32
    return %c0_i32, %c0_i32_0 : i32, i32
  }
  func.func @transform_10(%arg0: i32) -> (i32, i32, i32) {
    %c0_i32 = arith.constant 0 : i32
    %c0_i32_0 = arith.constant 0 : i32
    %c0_i32_1 = arith.constant 0 : i32
    %c0_i32_2 = arith.constant 0 : i32
    return %c0_i32, %c0_i32_0, %c0_i32_1 : i32, i32, i32
  }
  func.func @transform_11(%arg0: i32) -> (i32, i32) {
    %c0_i32 = arith.constant 0 : i32
    %c0_i32_0 = arith.constant 0 : i32
    %c0_i32_1 = arith.constant 0 : i32
    return %c0_i32, %c0_i32_0 : i32, i32
  }
  func.func @transform_12(%arg0: i32) -> (i32, i32) {
    %c0_i32 = arith.constant 0 : i32
    %c0_i32_0 = arith.constant 0 : i32
    %c0_i32_1 = arith.constant 0 : i32
    return %c0_i32, %c0_i32_0 : i32, i32
  }
  func.func @transform_13(%arg0: i32) -> (i32, i32) {
    %c0_i32 = arith.constant 0 : i32
    %c0_i32_0 = arith.constant 0 : i32
    %c0_i32_1 = arith.constant 0 : i32
    return %c0_i32, %c0_i32_0 : i32, i32
  }
  func.func @transform_14(%arg0: i32) -> (i32, i32) {
    %c0_i32 = arith.constant 0 : i32
    %c0_i32_0 = arith.constant 0 : i32
    %c0_i32_1 = arith.constant 0 : i32
    return %c0_i32, %c0_i32_0 : i32, i32
  }
  func.func @transform_15(%arg0: i32) -> (i32, i32) {
    %c0_i32 = arith.constant 0 : i32
    %c0_i32_0 = arith.constant 0 : i32
    %c0_i32_1 = arith.constant 0 : i32
    return %c0_i32, %c0_i32_0 : i32, i32
  }
  func.func @transform_16(%arg0: i32) -> (i32, i32) {
    %c0_i32 = arith.constant 0 : i32
    %c0_i32_0 = arith.constant 0 : i32
    return %arg0, %c0_i32 : i32, i32
  }
}

</mosaic_0001>

<bundles_post_ra>
// kernel: tile.13
= control target key start
LH: loop header
LB: loop body
LE: loop exit
PB: predicated region body
PF: predicated region fallthrough
CT: control target
= control target key end

     0   :  { %s34_s0 = inlined_call_operand.vmem [shape: f32[6], index: 0, kind: input, shape index: {}]   ;;  %s35_s1 = inlined_call_operand.vmem [shape: f32[24,6], index: 1, kind: output, shape index: {}]  }
   0x1   :  { %v4_v0 = vld [vmem:[%s34_s0] ss:$0 sm:$0xff] }
   0x2   :  { %5 = vst [vmem:[%s35_s1] sm:$0xff] %v4_v0 }
   0x3   :  { %10 = vst [vmem:[%s35_s1 + $0x8] sm:$0xff] %v4_v0 }
   0x4   :  { %11 = vst [vmem:[%s35_s1 + $0x10] sm:$0xff] %v4_v0 }

// kernel: tile.14
= control target key start
LH: loop header
LB: loop body
LE: loop exit
PB: predicated region body
PF: predicated region fallthrough
CT: control target
= control target key end

     0   :  { %vm9_vm0 = vcmask 15360   ;;  %s212_s10 = smov 114   ;;  %s213_s13 = smov 126   ;;  %vm3_vm1 = vcmask 48128   ;;  %vm13_vm2 = vcmask 31744   ;;  %vm16_vm3 = vcmask 1048560   ;;  %s326_s0 = inlined_call_operand.vmem [shape: f32[24,6], index: 0, kind: input, shape index: {}]   ;;  %s327_s1 = inlined_call_operand.vmem [shape: f32[1,144], index: 1, kind: output, shape index: {}]  }
   0x1   :  { %v167_v0 = vld [vmem:[%s326_s0 + $0x13] sm:$0x1]   ;;  %v164_v1 = vld [vmem:[%s326_s0 + $0x15] sm:$0x1]   ;;  %v169_v4 = vld [vmem:[%s326_s0 + $0x11] sm:$0x1]  }
   0x2   :  { %26 = vrot.lane.b32.xlu1 %v167_v0, %s212_s10  ;;  %v165_v2 = vld [vmem:[%s326_s0 + $0x15] sm:$0x1]   ;;  %s214_s16 = smov 102   ;;  %v168_v5 = vld [vmem:[%s326_s0 + $0x12] sm:$0x1]   ;;  %s215_s21 = smov 108  }
   0x3   :  { %v10_v3 = vsel %vm9_vm0, %v165_v2, %v164_v1  ;;  %38 = vrot.lane.b32.xlu2 %v169_v4, %s214_s16  ;;  %v166_v6 = vld [vmem:[%s326_s0 + $0x14] sm:$0x1]   ;;  %v170_v7 = vld [vmem:[%s326_s0 + $0x10] sm:$0x1]   ;;  %s216_s24 = smov 120   ;;  %s217_s25 = smov 96  }
   0x4   :  { %11 = vrot.lane.b32.xlu0 %v10_v3, %s213_s13  ;;  %v172_v8 = vld [vmem:[%s326_s0 + $0xe] sm:$0x1]   ;;  %v171_v9 = vld [vmem:[%s326_s0 + $0xf] sm:$0x1]   ;;  %s218_s30 = smov 84   ;;  %s219_s4 = smov 90  }
   0x5   :  { %v173_v10 = vld [vmem:[%s326_s0 + $0xd] sm:$0x1]   ;;  %s220_s5 = smov 78   ;;  %v175_v11 = vld [vmem:[%s326_s0 + $0xb] sm:$0x1]   ;;  %s221_s10 = smov 66  }
   0x6   :  { %v174_v12 = vld [vmem:[%s326_s0 + $0xc] sm:$0x1]   ;;  %v176_v13 = vld [vmem:[%s326_s0 + $0xa] sm:$0x1]   ;;  %s222_s13 = smov 72   ;;  %s223_s14 = smov 60  }
   0x7   :  { %v178_v14 = vld [vmem:[%s326_s0 + $0x8] sm:$0x1]   ;;  %v177_v15 = vld [vmem:[%s326_s0 + $0x9] sm:$0x1]   ;;  %s224_s19 = smov 48   ;;  %s225_s22 = smov 54  }
   0x8   :  { %v179_v16 = vld [vmem:[%s326_s0 + $0x7] sm:$0x1]   ;;  %s226_s23 = smov 42   ;;  %v181_v17 = vld [vmem:[%s326_s0 + $0x5] sm:$0x1]   ;;  %s227_s28 = smov 30  }
   0x9   :  { %v180_v18 = vld [vmem:[%s326_s0 + $0x6] sm:$0x1]   ;;  %v182_v19 = vld [vmem:[%s326_s0 + $0x4] sm:$0x1]   ;;  %s228_s2 = smov 36   ;;  %s229_s3 = smov 24  }
   0xa   :  { %32 = vrot.lane.b32.xlu1 %v168_v5, %s215_s21  ;;  %v184_v20 = vld [vmem:[%s326_s0 + $0x2] sm:$0x1]   ;;  %v183_v21 = vld [vmem:[%s326_s0 + $0x3] sm:$0x1]   ;;  %s230_s8 = smov 12   ;;  %s231_s11 = smov 18  }
   0xb   :  { %44 = vrot.lane.b32.xlu2 %v170_v7, %s217_s25  ;;  %v185_v22 = vld [vmem:[%s326_s0 + $0x17] sm:$0x1]   ;;  %s232_s12 = smov 10   ;;  %v187_v23 = vld [vmem:[%s326_s0 + $0x16] sm:$0x1]   ;;  %s233_s17 = smov 4  }
   0xc   :  { %20 = vrot.lane.b32.xlu0 %v166_v6, %s216_s24  ;;  %v186_v24 = vld [vmem:[%s326_s0 + $0x1] sm:$0x1]   ;;  %s234_s18 = smov 6   ;;  %v2_v25 = vld [vmem:[%s326_s0] sm:$0x1]   ;;  %vm22_vm4 = vcmask 1032128  }
   0xd   :  { %4 = vst.msk [vmem:[#allocation0] sm:$0x1] %vm3_vm1, %v2_v25   ;;  %vm28_vm5 = vcmask 982928   ;;  %vm34_vm6 = vcmask 933728   ;;  %vm40_vm7 = vcmask 884528   ;;  %vm46_vm8 = vcmask 835328  }
   0xe   :  { %vm52_vm9 = vcmask 786128   ;;  %vm58_vm10 = vcmask 736928   ;;  %vm64_vm11 = vcmask 687728   ;;  %vm70_vm12 = vcmask 638528  }
   0xf   :  { %vm76_vm13 = vcmask 589328   ;;  %vm82_vm14 = vcmask 540128   ;;  %vm136_vm15 = vcmask 130128   ;;  %vm88_vm0 = vcmask 490928  }
  0x10   :  { %vm94_vm1 = vcmask 441728  }
  0x12   :  { %56 = vrot.lane.b32.xlu1 %v172_v8, %s218_s30 }
  0x13   :  { %62 = vrot.lane.b32.xlu2 %v173_v10, %s220_s5 }
  0x14   :  { %50 = vrot.lane.b32.xlu0 %v171_v9, %s219_s4 }
  0x1a   :  { %74 = vrot.lane.b32.xlu1 %v175_v11, %s221_s10 }
  0x1b   :  { %80 = vrot.lane.b32.xlu2 %v176_v13, %s223_s14 }
  0x1c   :  { %68 = vrot.lane.b32.xlu0 %v174_v12, %s222_s13 }
  0x22   :  { %92 = vrot.lane.b32.xlu1 %v178_v14, %s224_s19 }
  0x23   :  { %98 = vrot.lane.b32.xlu2 %v179_v16, %s226_s23 }
  0x24   :  { %86 = vrot.lane.b32.xlu0 %v177_v15, %s225_s22 }
  0x2a   :  { %110 = vrot.lane.b32.xlu1 %v181_v17, %s227_s28 }
  0x2b   :  { %116 = vrot.lane.b32.xlu2 %v182_v19, %s229_s3 }
  0x2c   :  { %104 = vrot.lane.b32.xlu0 %v180_v18, %s228_s2 }
  0x32   :  { %128 = vrot.lane.b32.xlu1 %v184_v20, %s230_s8 }
  0x33   :  { %134 = vrot.lane.b32.xlu2 %v185_v22, %s232_s12 }
  0x34   :  { %122 = vrot.lane.b32.xlu0 %v183_v21, %s231_s11 }
  0x3a   :  { %147 = vrot.lane.b32.xlu1 %v187_v23, %s233_s17 }
  0x3c   :  { %141 = vrot.lane.b32.xlu0 %v186_v24, %s234_s18 }
  0x5d   :  { %v39_v26 = vpop.permute.xlu2 %38  }
  0x65   :  { %v45_v27 = vpop.permute.xlu2 %44  }
  0x6d   :  { %v63_v28 = vpop.permute.xlu2 %62  }
  0x74   :  { %v27_v29 = vpop.permute.xlu1 %26  }
  0x75   :  { %v81_v31 = vpop.permute.xlu2 %80  }
  0x76   :  { %v12_v30 = vpop.permute.xlu0 %11  }
  0x77   :  { %15 = vst.msk [vmem:[#allocation0 + $0x8] sm:$0x1] %vm13_vm2, %v12_v30   ;;  %vm100_vm2 = vcmask 392528  }
  0x78   :  { %17 = vst.msk [vmem:[#allocation0] sm:$0x1] %vm16_vm3, %v12_v30   ;;  %vm106_vm3 = vcmask 343328  }
  0x7c   :  { %v33_v32 = vpop.permute.xlu1 %32  }
  0x7d   :  { %v99_v34 = vpop.permute.xlu2 %98  }
  0x7e   :  { %v21_v33 = vpop.permute.xlu0 %20  }
  0x7f   :  { %23 = vst.msk [vmem:[#allocation0] sm:$0x1] %vm22_vm4, %v21_v33   ;;  %vm112_vm4 = vcmask 294128  }
  0x80   :  { %29 = vst.msk [vmem:[#allocation0] sm:$0x1] %vm28_vm5, %v27_v29   ;;  %vm118_vm5 = vcmask 244928  }
  0x81   :  { %35 = vst.msk [vmem:[#allocation0] sm:$0x1] %vm34_vm6, %v33_v32   ;;  %vm124_vm6 = vcmask 195728  }
  0x82   :  { %41 = vst.msk [vmem:[#allocation0] sm:$0x1] %vm40_vm7, %v39_v26   ;;  %vm130_vm7 = vcmask 146528  }
  0x83   :  { %47 = vst.msk [vmem:[#allocation0] sm:$0x1] %vm46_vm8, %v45_v27   ;;  %vm149_vm8 = vcmask 80928  }
  0x84   :  { %v57_v35 = vpop.permute.xlu1 %56  }
  0x85   :  { %v117_v37 = vpop.permute.xlu2 %116  }
  0x86   :  { %v51_v36 = vpop.permute.xlu0 %50  }
  0x87   :  { %53 = vst.msk [vmem:[#allocation0] sm:$0x1] %vm52_vm9, %v51_v36   ;;  %vm143_vm9 = vcmask 97328  }
  0x88   :  { %59 = vst.msk [vmem:[#allocation0] sm:$0x1] %vm58_vm10, %v57_v35  }
  0x89   :  { %65 = vst.msk [vmem:[#allocation0] sm:$0x1] %vm64_vm11, %v63_v28  }
  0x8c   :  { %v75_v38 = vpop.permute.xlu1 %74  }
  0x8d   :  { %v135_v40 = vpop.permute.xlu2 %134  }
  0x8e   :  { %v69_v39 = vpop.permute.xlu0 %68   ;;  %138 = vst.msk [vmem:[#allocation0 + $0x8] sm:$0x1] %vm136_vm15, %v135_v40  }
  0x8f   :  { %71 = vst.msk [vmem:[#allocation0] sm:$0x1] %vm70_vm12, %v69_v39  }
  0x90   :  { %77 = vst.msk [vmem:[#allocation0] sm:$0x1] %vm76_vm13, %v75_v38  }
  0x91   :  { %83 = vst.msk [vmem:[#allocation0] sm:$0x1] %vm82_vm14, %v81_v31  }
  0x94   :  { %v93_v41 = vpop.permute.xlu1 %92  }
  0x96   :  { %v87_v42 = vpop.permute.xlu0 %86  }
  0x97   :  { %89 = vst.msk [vmem:[#allocation0] sm:$0x1] %vm88_vm0, %v87_v42  }
  0x98   :  { %95 = vst.msk [vmem:[#allocation0] sm:$0x1] %vm94_vm1, %v93_v41  }
  0x99   :  { %101 = vst.msk [vmem:[#allocation0] sm:$0x1] %vm100_vm2, %v99_v34  }
  0x9c   :  { %v111_v43 = vpop.permute.xlu1 %110  }
  0x9e   :  { %v105_v44 = vpop.permute.xlu0 %104  }
  0x9f   :  { %107 = vst.msk [vmem:[#allocation0] sm:$0x1] %vm106_vm3, %v105_v44  }
  0xa0   :  { %113 = vst.msk [vmem:[#allocation0] sm:$0x1] %vm112_vm4, %v111_v43  }
  0xa1   :  { %119 = vst.msk [vmem:[#allocation0] sm:$0x1] %vm118_vm5, %v117_v37  }
  0xa4   :  { %v129_v45 = vpop.permute.xlu1 %128  }
  0xa6   :  { %v123_v46 = vpop.permute.xlu0 %122  }
  0xa7   :  { %125 = vst.msk [vmem:[#allocation0] sm:$0x1] %vm124_vm6, %v123_v46  }
  0xa8   :  { %131 = vst.msk [vmem:[#allocation0] sm:$0x1] %vm130_vm7, %v129_v45  }
  0xac   :  { %v148_v47 = vpop.permute.xlu1 %147  }
  0xad   :  { %151 = vst.msk [vmem:[#allocation0 + $0x8] sm:$0x1] %vm149_vm8, %v148_v47  }
  0xae   :  { %v142_v48 = vpop.permute.xlu0 %141  }
  0xaf   :  { %144 = vst.msk [vmem:[#allocation0] sm:$0x1] %vm143_vm9, %v142_v48  }
  0xb4   :  { %v159_v49 = vld [vmem:[#allocation0 + $0x8] sm:$0x1] }
  0xb5   :  { %188 = vst [vmem:[%s327_s1 + $0x1] sm:$0x1] %v159_v49 }
  0xb6   :  { %v154_v50 = vld [vmem:[#allocation0] sm:$0x1] }
  0xb7   :  { %157 = vst [vmem:[%s327_s1] sm:$0x1] %v154_v50 }

// kernel: tile.18
= control target key start
LH: loop header
LB: loop body
LE: loop exit
PB: predicated region body
PF: predicated region fallthrough
CT: control target
= control target key end

     0   :  { %s22_s0 = inlined_call_operand.vmem [shape: f32[16], index: 0, kind: input, shape index: {}]   ;;  %s23_s1 = inlined_call_operand.vmem [shape: f32[8,16], index: 1, kind: output, shape index: {}]  }
   0x1   :  { %v4_v0 = vld [vmem:[%s22_s0] ss:$0 sm:$0xff] }
   0x2   :  { %5 = vst [vmem:[%s23_s1] sm:$0xff] %v4_v0 }

// kernel: tile.19
= control target key start
LH: loop header
LB: loop body
LE: loop exit
PB: predicated region body
PF: predicated region fallthrough
CT: control target
= control target key end

     0   :  { %s67_s10 = smov 112   ;;  %s68_s11 = smov 80   ;;  %vm3_vm0 = vcmask 130048   ;;  %vm9_vm1 = vcmask 1048448   ;;  %vm15_vm2 = vcmask 917248   ;;  %vm21_vm3 = vcmask 786048   ;;  %s111_s0 = inlined_call_operand.vmem [shape: f32[8,16], index: 0, kind: input, shape index: {}]   ;;  %s112_s1 = inlined_call_operand.vmem [shape: f32[1,128], index: 1, kind: output, shape index: {}]  }
   0x1   :  { %v53_v0 = vld [vmem:[%s111_s0 + $0x7] sm:$0x1]   ;;  %v55_v1 = vld [vmem:[%s111_s0 + $0x5] sm:$0x1]   ;;  %v57_v2 = vld [vmem:[%s111_s0 + $0x3] sm:$0x1]  }
   0x2   :  { %7 = vrot.lane.b32.xlu0 %v53_v0, %s67_s10  ;;  %19 = vrot.lane.b32.xlu1 %v55_v1, %s68_s11  ;;  %s69_s14 = smov 48   ;;  %v54_v3 = vld [vmem:[%s111_s0 + $0x6] sm:$0x1]   ;;  %v56_v4 = vld [vmem:[%s111_s0 + $0x4] sm:$0x1]   ;;  %s70_s21 = smov 96  }
   0x3   :  { %31 = vrot.lane.b32.xlu2 %v57_v2, %s69_s14  ;;  %v58_v5 = vld [vmem:[%s111_s0 + $0x2] sm:$0x1]   ;;  %s71_s22 = smov 64   ;;  %s72_s23 = smov 32   ;;  %v59_v6 = vld [vmem:[%s111_s0 + $0x1] sm:$0x1]  }
   0x4   :  { %s73_s26 = smov 16   ;;  %v2_v7 = vld [vmem:[%s111_s0] sm:$0x1]   ;;  %vm27_vm4 = vcmask 654848   ;;  %vm33_vm5 = vcmask 523648   ;;  %vm39_vm6 = vcmask 392448  }
   0x5   :  { %4 = vst.msk [vmem:[#allocation0] sm:$0x1] %vm3_vm0, %v2_v7   ;;  %vm45_vm7 = vcmask 261248  }
   0xa   :  { %13 = vrot.lane.b32.xlu0 %v54_v3, %s70_s21  ;;  %25 = vrot.lane.b32.xlu1 %v56_v4, %s71_s22 }
   0xb   :  { %37 = vrot.lane.b32.xlu2 %v58_v5, %s72_s23 }
  0x12   :  { %43 = vrot.lane.b32.xlu0 %v59_v6, %s73_s26 }
  0x5d   :  { %v32_v8 = vpop.permute.xlu2 %31  }
  0x65   :  { %v38_v9 = vpop.permute.xlu2 %37  }
  0x74   :  { %v8_v10 = vpop.permute.xlu0 %7   ;;  %v20_v11 = vpop.permute.xlu1 %19  }
  0x75   :  { %10 = vst.msk [vmem:[#allocation0] sm:$0x1] %vm9_vm1, %v8_v10  }
  0x7c   :  { %v14_v12 = vpop.permute.xlu0 %13   ;;  %v26_v13 = vpop.permute.xlu1 %25  }
  0x7d   :  { %16 = vst.msk [vmem:[#allocation0] sm:$0x1] %vm15_vm2, %v14_v12  }
  0x7e   :  { %22 = vst.msk [vmem:[#allocation0] sm:$0x1] %vm21_vm3, %v20_v11  }
  0x7f   :  { %28 = vst.msk [vmem:[#allocation0] sm:$0x1] %vm27_vm4, %v26_v13  }
  0x80   :  { %34 = vst.msk [vmem:[#allocation0] sm:$0x1] %vm33_vm5, %v32_v8  }
  0x81   :  { %40 = vst.msk [vmem:[#allocation0] sm:$0x1] %vm39_vm6, %v38_v9  }
  0x84   :  { %v44_v14 = vpop.permute.xlu0 %43  }
  0x85   :  { %46 = vst.msk [vmem:[#allocation0] sm:$0x1] %vm45_vm7, %v44_v14  }
  0x8c   :  { %v49_v15 = vld [vmem:[#allocation0] sm:$0x1] }
  0x8d   :  { %52 = vst [vmem:[%s112_s1] sm:$0x1] %v49_v15 }

// kernel: lenet_forward.1
= control target key start
LH: loop header
LB: loop body
LE: loop exit
PB: predicated region body
PF: predicated region fallthrough
CT: control target
= control target key end

     0   :  { %vm239_vm0 = vcmask 1045504   ;;  %v128_v12 = vlaneseq  ;;  %vm196_vm2 = vcmask 228352   ;;  %vm2082_vm6 = vcmask 130048   ;;  %s7472_s1 = inlined_call_operand.vmem [shape: bf16[5,28,144], index: 1, kind: input, shape index: {}]   ;;  %s7473_s0 = inlined_call_operand.vmem [shape: f32[224,28], index: 0, kind: input, shape index: {}]   ;;  %s7474_s4 = inlined_call_operand.vmem [shape: bf16[144,72], index: 4, kind: input, shape index: {}]   ;;  %s7475_s2 = inlined_call_operand.vmem [shape: f32[1,144], index: 2, kind: input, shape index: {}]   ;;  %s7476_s5 = inlined_call_operand.vmem [shape: bf16[144,72], index: 5, kind: input, shape index: {}]   ;;  %s7477_s3 = inlined_call_operand.vmem [shape: bf16[96,224], index: 3, kind: input, shape index: {}]   ;;  %s7478_s6 = inlined_call_operand.vmem [shape: bf16[5,72,128], index: 6, kind: input, shape index: {}]   ;;  %s7479_s7 = inlined_call_operand.vmem [shape: f32[1,128], index: 7, kind: input, shape index: {}]   ;;  %s7480_s9 = inlined_call_operand.vmem [shape: bf16[128,64], index: 9, kind: input, shape index: {}]   ;;  %s7481_s10 = inlined_call_operand.vmem [shape: bf16[4,64,120], index: 10, kind: input, shape index: {}]   ;;  %s7482_s8 = inlined_call_operand.vmem [shape: bf16[32,96], index: 8, kind: input, shape index: {}]   ;;  %s7483_s12 = inlined_call_operand.vmem [shape: bf16[120,84], index: 12, kind: input, shape index: {}]   ;;  %s7484_s11 = inlined_call_operand.vmem [shape: f32[1,120], index: 11, kind: input, shape index: {}]   ;;  %s7485_s13 = inlined_call_operand.vmem [shape: f32[1,84], index: 13, kind: input, shape index: {}]   ;;  %s7486_s14 = inlined_call_operand.vmem [shape: bf16[84,10], index: 14, kind: input, shape index: {}]   ;;  %s7487_s15 = inlined_call_operand.vmem [shape: f32[1,10], index: 15, kind: input, shape index: {}]   ;;  %s7488_s16 = inlined_call_operand.vmem [shape: f32[8,10], index: 16, kind: output, shape index: {}]  }
   0x1   :  { %7499 = sst [smem:[#allocation42_spill]] %s7472_s1  ;;  %v5004_v17 = vld [vmem:[%s7473_s0] sm:$0xff]  ;;  %v5024_v27 = vld [vmem:[%s7473_s0 + $0x8] sm:$0xff]  ;;  %v5032_v30 = vld [vmem:[%s7473_s0 + $0x10] sm:$0xff]  ;;  %vm2621_vm7 = vcmask 785408   ;;  %vm2819_vm8 = vcmask 1043456  }
   0x2   :  { %s7500_s23 = sld [smem:[#allocation42_spill]]  ;;  %v100_v31 = vrot.slane %v5004_v17, 1  ;;  %v101_v32 = vrot.slane %v5024_v27, 1  ;;  %v5036_v33 = vshrl.u32 %v128_v12, 7  ;;  %v102_v35 = vrot.slane %v5032_v30, 1  ;;  %v5055_v40 = vld [vmem:[%s7473_s0 + $0x18] sm:$0xff] }
   0x3   :  { %v82_v38 = vpack.c.bf16 %v5024_v27, %v5004_v17  ;;  %v5060_v41 = vld [vmem:[%s7473_s0 + $0x20] sm:$0xff]  ;;  %v103_v42 = vrot.slane %v5055_v40, 1  ;;  %v83_v47 = vpack.c.bf16 %v5055_v40, %v5032_v30  ;;  %v5077_v48 = vld [vmem:[%s7473_s0 + $0x28] sm:$0xff]  ;;  %v5082_v49 = vld [vmem:[%s7473_s0 + $0x30] sm:$0xff]  ;;  %vm2800_vm9 = vcmask 588800  }
   0x4   :  { %7501 = vst [vmem:[#allocation2_spill] sm:$0xff] %v5036_v33  ;;  %vm130_vm1 = vcmp.lt.s32.totalorder %v5036_v33, 7  ;;  %v104_v43 = vrot.slane %v5060_v41, 1  ;;  %v105_v50 = vrot.slane %v5077_v48, 1  ;;  %v106_v51 = vrot.slane %v5082_v49, 1  ;;  %v5099_v56 = vld [vmem:[%s7473_s0 + $0x38] sm:$0xff] }
   0x5   :  { %v156_v36 = vsel %vm130_vm1, %v101_v32, %v102_v35  ;;  %v157_v37 = vsel %vm130_vm1, %v100_v31, %v101_v32  ;;  %v155_v45 = vsel %vm130_vm1, %v102_v35, %v103_v42  ;;  %v84_v55 = vpack.c.bf16 %v5077_v48, %v5060_v41  ;;  %v5104_v57 = vld [vmem:[%s7473_s0 + $0x40] sm:$0xff] }
   0x6   :  { %v159_v39 = vpack.c.bf16 %v156_v36, %v157_v37  ;;  %v154_v44 = vsel %vm130_vm1, %v103_v42, %v104_v43  ;;  %v152_v52 = vsel %vm130_vm1, %v105_v50, %v106_v51  ;;  %v153_v53 = vsel %vm130_vm1, %v104_v43, %v105_v50  ;;  %v5209_v37 = vld [vmem:[%s7473_s0 + $0x88] sm:$0xff] }
   0x7   :  { %v160_v46 = vpack.c.bf16 %v154_v44, %v155_v45  ;;  %v161_v54 = vpack.c.bf16 %v152_v52, %v153_v53  ;;  %v107_v58 = vrot.slane %v5099_v56, 1  ;;  %v108_v59 = vrot.slane %v5104_v57, 1  ;;  %v5236_v52 = vld [vmem:[%s7473_s0 + $0xa0] sm:$0xff] }
   0x8   :  { %v4004_v0 = vld [vmem:[%s7500_s23 + $0x30] sm:$0xf]  ;;  %v4717_v1 = vld [vmem:[%s7500_s23 + $0x34] sm:$0x30]  ;;  %v4716_v2 = vld [vmem:[%s7500_s23 + $0x34] sm:$0xf]  ;;  %v85_v63 = vpack.c.bf16 %v5099_v56, %v5082_v49 }
   0x9   :  { %v4005_v3 = vor.u32 %v4717_v1, %v4004_v0  ;;  %v4006_v4 = vld [vmem:[%s7500_s23 + $0x38] sm:$0x30]  ;;  %v4048_v5 = vld [vmem:[%s7500_s23 + $0x10] sm:$0xf]  ;;  %v4713_v6 = vld [vmem:[%s7500_s23 + $0x14] sm:$0x30]  ;;  %v150_v60 = vsel %vm130_vm1, %v107_v58, %v108_v59  ;;  %v151_v61 = vsel %vm130_vm1, %v106_v51, %v107_v58 }
   0xa   :  { %v4009_v7 = vor.u32 %v4716_v2, %v4006_v4  ;;  %v4049_v8 = vor.u32 %v4713_v6, %v4048_v5  ;;  %v4712_v9 = vld [vmem:[%s7500_s23 + $0x14] sm:$0xf]  ;;  %v4050_v10 = vld [vmem:[%s7500_s23 + $0x18] sm:$0x30]  ;;  %v3996_v11 = vld [vmem:[%s7500_s23 + $0x20] sm:$0xf]  ;;  %v162_v62 = vpack.c.bf16 %v150_v60, %v151_v61 }
   0xb   :  { %v241_v13 = vsel %vm239_vm0, %v4005_v3, 0  ;;  %v4053_v14 = vor.u32 %v4712_v9, %v4050_v10  ;;  %v4715_v15 = vld [vmem:[%s7500_s23 + $0x24] sm:$0xf0]  ;;  %v4714_v16 = vld [vmem:[%s7500_s23 + $0x24] sm:$0xf]  ;;  %v5126_v1 = vld [vmem:[%s7473_s0 + $0x50] sm:$0xff] }
   0xc   :  { %252 = vmatpush.bf16.msra.mxu0 %v241_v13  ;;  %v244_v18 = vsel %vm239_vm0, %v4009_v7, 0  ;;  %v465_v19 = vsel %vm239_vm0, %v4049_v8, 0  ;;  %v3997_v20 = vor.u32 %v4715_v15, %v3996_v11  ;;  %v3998_v21 = vld [vmem:[%s7500_s23 + $0x28] sm:$0xf0]  ;;  %v4040_v22 = vld [vmem:[%s7500_s23] sm:$0xf] }
   0xd   :  { %331 = vmatpush.bf16.msra.mxu1 %v244_v18  ;;  %476 = vmatpush.bf16.msra.mxu2 %v465_v19  ;;  %v468_v23 = vsel %vm239_vm0, %v4053_v14, 0  ;;  %v4001_v24 = vor.u32 %v4714_v16, %v3998_v21  ;;  %v4711_v25 = vld [vmem:[%s7500_s23 + $0x4] sm:$0xf0]  ;;  %v4710_v26 = vld [vmem:[%s7500_s23 + $0x4] sm:$0xf]  ;;  %v110_v3 = vrot.slane %v5126_v1, 1 }
   0xe   :  { %555 = vmatpush.bf16.msra.mxu3 %v468_v23  ;;  %v4041_v28 = vor.u32 %v4711_v25, %v4040_v22  ;;  %v4042_v29 = vld [vmem:[%s7500_s23 + $0x8] sm:$0xf0]  ;;  %v5143_v8 = vld [vmem:[%s7473_s0 + $0x58] sm:$0xff]  ;;  %v5148_v9 = vld [vmem:[%s7473_s0 + $0x60] sm:$0xff]  ;;  %vm656_vm3 = vcmp.lt.s32.totalorder %v5036_v33, 6  ;;  %vm1012_vm4 = vcmp.lt.s32.totalorder %v5036_v33, 5 }
   0xf   :  { %v4045_v34 = vor.u32 %v4710_v26, %v4042_v29  ;;  %v5121_v0 = vld [vmem:[%s7473_s0 + $0x48] sm:$0xff]  ;;  %v111_v10 = vrot.slane %v5143_v8, 1  ;;  %v112_v11 = vrot.slane %v5148_v9, 1  ;;  %v87_v15 = vpack.c.bf16 %v5143_v8, %v5126_v1  ;;  %v5170_v18 = vld [vmem:[%s7473_s0 + $0x70] sm:$0xff]  ;;  %v5187_v25 = vld [vmem:[%s7473_s0 + $0x78] sm:$0xff] }
  0x10   :  { %253 = vmatpush.bf16.msra.mxu0 %v3997_v20  ;;  %v109_v2 = vrot.slane %v5121_v0, 1  ;;  %v86_v7 = vpack.c.bf16 %v5121_v0, %v5104_v57  ;;  %v5165_v16 = vld [vmem:[%s7473_s0 + $0x68] sm:$0xff]  ;;  %v114_v20 = vrot.slane %v5170_v18, 1  ;;  %v5192_v26 = vld [vmem:[%s7473_s0 + $0x80] sm:$0xff]  ;;  %v89_v36 = vpack.c.bf16 %v5187_v25, %v5170_v18  ;;  %v5231_v51 = vld [vmem:[%s7473_s0 + $0x98] sm:$0xff] }
  0x11   :  { %332 = vmatpush.bf16.msra.mxu1 %v4001_v24  ;;  %477 = vmatpush.bf16.msra.mxu2 %v4041_v28  ;;  %v146_v12 = vsel %vm130_vm1, %v111_v10, %v112_v11  ;;  %v147_v13 = vsel %vm130_vm1, %v110_v3, %v111_v10  ;;  %v113_v19 = vrot.slane %v5165_v16, 1  ;;  %v88_v24 = vpack.c.bf16 %v5165_v16, %v5148_v9 }
  0x12   :  { %556 = vmatpush.bf16.msra.mxu3 %v4045_v34  ;;  %v148_v4 = vsel %vm130_vm1, %v109_v2, %v110_v3  ;;  %v149_v5 = vsel %vm130_vm1, %v108_v59, %v109_v2  ;;  %v164_v14 = vpack.c.bf16 %v146_v12, %v147_v13  ;;  %v115_v28 = vrot.slane %v5187_v25, 1  ;;  %v5261_v13 = vld [vmem:[%s7473_s0 + $0xa8] sm:$0xff] }
  0x13   :  { %4010 = vmatmul.msk.bf16.vlgmr.msra.gmra.mxu0 %vm196_vm2, %v159_v39  ;;  %v163_v6 = vpack.c.bf16 %v148_v4, %v149_v5  ;;  %v144_v21 = vsel %vm130_vm1, %v113_v19, %v114_v20  ;;  %v145_v22 = vsel %vm130_vm1, %v112_v11, %v113_v19  ;;  %v116_v29 = vrot.slane %v5192_v26, 1 }
  0x14   :  { %4024 = vmatmul.msk.bf16.vlgmr.msra.gmra.mxu1 %vm196_vm2, %v159_v39  ;;  %4054 = vmatmul.msk.bf16.vlgmr.msra.gmra.mxu2 %vm196_vm2, %v82_v38  ;;  %v165_v23 = vpack.c.bf16 %v144_v21, %v145_v22  ;;  %v143_v34 = vsel %vm130_vm1, %v114_v20, %v115_v28  ;;  %v117_v39 = vrot.slane %v5209_v37, 1  ;;  %v90_v50 = vpack.c.bf16 %v5209_v37, %v5192_v26 }
  0x15   :  { %4068 = vmatmul.msk.bf16.vlgmr.msra.gmra.mxu3 %vm196_vm2, %v82_v38  ;;  %v142_v32 = vsel %vm130_vm1, %v115_v28, %v116_v29  ;;  %v5214_v38 = vld [vmem:[%s7473_s0 + $0x90] sm:$0xff]  ;;  %v119_v61 = vrot.slane %v5231_v51, 1  ;;  %vm1368_vm5 = vcmp.lt.s32.totalorder %v5036_v33, 4  ;;  %vm3665_vm10 = vcmask 523264  }
  0x16   :  { %v166_v35 = vpack.c.bf16 %v142_v32, %v143_v34  ;;  %v118_v42 = vrot.slane %v5214_v38, 1  ;;  %v141_v44 = vsel %vm130_vm1, %v116_v29, %v117_v39  ;;  %v91_v12 = vpack.c.bf16 %v5231_v51, %v5214_v38 }
  0x17   :  { %vm3967_vm11 = vcmask 1041408   ;;  %vm3893_vm12 = vcmask 982016   ;;  %vm3963_vm13 = vcmask 687104   ;;  %vm3984_vm14 = vcmask 80896  }
  0x18   :  { %v140_v43 = vsel %vm130_vm1, %v117_v39, %v118_v42  ;;  %v139_v2 = vsel %vm130_vm1, %v118_v42, %v119_v61 }
  0x19   :  { %v167_v45 = vpack.c.bf16 %v140_v43, %v141_v44 }
  0x23   :  { %4011 = vmatmul.msk.bf16.gmra.mxu0 %vm196_vm2, %v160_v46 }
  0x24   :  { %4025 = vmatmul.msk.bf16.gmra.mxu1 %vm196_vm2, %v160_v46  ;;  %4055 = vmatmul.msk.bf16.gmra.mxu2 %vm196_vm2, %v83_v47 }
  0x25   :  { %4069 = vmatmul.msk.bf16.gmra.mxu3 %vm196_vm2, %v83_v47 }
  0x33   :  { %4012 = vmatmul.msk.bf16.gmra.mxu0 %vm196_vm2, %v161_v54 }
  0x34   :  { %4026 = vmatmul.msk.bf16.gmra.mxu1 %vm196_vm2, %v161_v54  ;;  %4056 = vmatmul.msk.bf16.gmra.mxu2 %vm196_vm2, %v84_v55 }
  0x35   :  { %4070 = vmatmul.msk.bf16.gmra.mxu3 %vm196_vm2, %v84_v55 }
  0x43   :  { %4013 = vmatmul.msk.bf16.gmra.mxu0 %vm196_vm2, %v162_v62 }
  0x44   :  { %4027 = vmatmul.msk.bf16.gmra.mxu1 %vm196_vm2, %v162_v62  ;;  %4057 = vmatmul.msk.bf16.gmra.mxu2 %vm196_vm2, %v85_v63  ;;  %v120_v62 = vrot.slane %v5236_v52, 1 }
  0x45   :  { %4071 = vmatmul.msk.bf16.gmra.mxu3 %vm196_vm2, %v85_v63 }
  0x46   :  { %v138_v63 = vsel %vm130_vm1, %v119_v61, %v120_v62 }
  0x47   :  { %v168_v5 = vpack.c.bf16 %v138_v63, %v139_v2  ;;  %v4096_v2 = vld [vmem:[%s7500_s23 + $0x50] sm:$0xf] }
  0x53   :  { %4014 = vmatmul.msk.bf16.gmra.mxu0 %vm196_vm2, %v163_v6 }
  0x54   :  { %4028 = vmatmul.msk.bf16.gmra.mxu1 %vm196_vm2, %v163_v6  ;;  %4058 = vmatmul.msk.bf16.gmra.mxu2 %vm196_vm2, %v86_v7 }
  0x55   :  { %4072 = vmatmul.msk.bf16.gmra.mxu3 %vm196_vm2, %v86_v7 }
  0x63   :  { %4015 = vmatmul.msk.bf16.gmra.mxu0 %vm196_vm2, %v164_v14 }
  0x64   :  { %4029 = vmatmul.msk.bf16.gmra.mxu1 %vm196_vm2, %v164_v14  ;;  %4059 = vmatmul.msk.bf16.gmra.mxu2 %vm196_vm2, %v87_v15  ;;  %v5266_v14 = vld [vmem:[%s7473_s0 + $0xb0] sm:$0xff] }
  0x65   :  { %4073 = vmatmul.msk.bf16.gmra.mxu3 %vm196_vm2, %v87_v15  ;;  %v122_v28 = vrot.slane %v5266_v14, 1 }
  0x73   :  { %4016 = vmatmul.msk.bf16.gmra.mxu0 %vm196_vm2, %v165_v23 }
  0x74   :  { %4030 = vmatmul.msk.bf16.gmra.mxu1 %vm196_vm2, %v165_v23  ;;  %4060 = vmatmul.msk.bf16.gmra.mxu2 %vm196_vm2, %v88_v24 }
  0x75   :  { %4074 = vmatmul.msk.bf16.gmra.mxu3 %vm196_vm2, %v88_v24  ;;  %v121_v24 = vrot.slane %v5261_v13, 1 }
  0x77   :  { %v136_v29 = vsel %vm130_vm1, %v121_v24, %v122_v28  ;;  %v137_v32 = vsel %vm130_vm1, %v120_v62, %v121_v24 }
  0x83   :  { %4017 = vmatmul.msk.bf16.gmra.mxu0 %vm196_vm2, %v166_v35 }
  0x84   :  { %4031 = vmatmul.msk.bf16.gmra.mxu1 %vm196_vm2, %v166_v35  ;;  %4061 = vmatmul.msk.bf16.gmra.mxu2 %vm196_vm2, %v89_v36 }
  0x85   :  { %4075 = vmatmul.msk.bf16.gmra.mxu3 %vm196_vm2, %v89_v36  ;;  %v169_v36 = vpack.c.bf16 %v136_v29, %v137_v32 }
  0x90   :  { %v255_v46 = vpop.f32.mrf.mxu0 }
  0x91   :  { %v334_v47 = vpop.f32.mrf.mxu1 }
  0x93   :  { %4018 = vmatmul.msk.bf16.gmra.mxu0 %vm196_vm2, %v167_v45 }
  0x94   :  { %4032 = vmatmul.msk.bf16.gmra.mxu1 %vm196_vm2, %v167_v45  ;;  %4062 = vmatmul.msk.bf16.gmra.mxu2 %vm196_vm2, %v90_v50  ;;  %v92_v45 = vpack.c.bf16 %v5261_v13, %v5236_v52 }
  0x95   :  { %4076 = vmatmul.msk.bf16.gmra.mxu3 %vm196_vm2, %v90_v50 }
  0x97   :  { %v479_v53 = vpop.f32.mrf.mxu2 }
  0x98   :  { %v558_v54 = vpop.f32.mrf.mxu3  ;;  %v5238_v55 = vadd.f32 %v479_v53, %v255_v46  ;;  %v257_v59 = vpop.f32.mrf.mxu0  ;;  %v5291_v46 = vld [vmem:[%s7473_s0 + $0xb8] sm:$0xff] }
  0x99   :  { %v5240_v58 = vadd.f32 %v558_v54, %v334_v47  ;;  %v336_v60 = vpop.f32.mrf.mxu1  ;;  %v5296_v47 = vld [vmem:[%s7473_s0 + $0xc0] sm:$0xff]  ;;  %v123_v54 = vrot.slane %v5291_v46, 1 }
  0x9f   :  { %v481_v3 = vpop.f32.mrf.mxu2 }
  0xa0   :  { %v560_v4 = vpop.f32.mrf.mxu3  ;;  %v5248_v6 = vadd.f32 %v481_v3, %v257_v59  ;;  %v260_v10 = vpop.f32.mrf.mxu0  ;;  %v124_v59 = vrot.slane %v5296_v47, 1  ;;  %v4721_v3 = vld [vmem:[%s7500_s23 + $0x54] sm:$0x30] }
  0xa1   :  { %v5250_v7 = vadd.f32 %v560_v4, %v336_v60  ;;  %v339_v11 = vpop.f32.mrf.mxu1  ;;  %v4720_v4 = vld [vmem:[%s7500_s23 + $0x54] sm:$0xf] }
  0xa3   :  { %4019 = vmatmul.msk.bf16.gmra.mxu0 %vm196_vm2, %v168_v5 }
  0xa4   :  { %4033 = vmatmul.msk.bf16.gmra.mxu1 %vm196_vm2, %v168_v5  ;;  %4063 = vmatmul.msk.bf16.gmra.mxu2 %vm196_vm2, %v91_v12  ;;  %v4097_v5 = vor.u32 %v4721_v3, %v4096_v2 }
  0xa5   :  { %4077 = vmatmul.msk.bf16.gmra.mxu3 %vm196_vm2, %v91_v12 }
  0xa6   :  { %v765_v12 = vsel %vm239_vm0, %v4097_v5, 0  ;;  %v4725_v5 = vld [vmem:[%s7500_s23 + $0x74] sm:$0x30] }
  0xa7   :  { %v484_v15 = vpop.f32.mrf.mxu2  ;;  %776 = vmatpush.bf16.msrb.mxu0 %v765_v12  ;;  %v4146_v12 = vld [vmem:[%s7500_s23 + $0x78] sm:$0x30] }
  0xa8   :  { %v563_v19 = vpop.f32.mrf.mxu3  ;;  %v5268_v20 = vadd.f32 %v484_v15, %v260_v10  ;;  %v262_v22 = vpop.f32.mrf.mxu0  ;;  %v4098_v10 = vld [vmem:[%s7500_s23 + $0x58] sm:$0x30]  ;;  %v134_v15 = vsel %vm130_vm1, %v123_v54, %v124_v59 }
  0xa9   :  { %v5270_v21 = vadd.f32 %v563_v19, %v339_v11  ;;  %v341_v23 = vpop.f32.mrf.mxu1  ;;  %v4101_v11 = vor.u32 %v4720_v4, %v4098_v10  ;;  %v135_v19 = vsel %vm130_vm1, %v122_v28, %v123_v54  ;;  %v5335_v28 = vld [vmem:[%s7473_s0 + $0xc8] sm:$0xff]  ;;  %v4144_v4 = vld [vmem:[%s7500_s23 + $0x70] sm:$0xf]  ;;  %v4724_v10 = vld [vmem:[%s7500_s23 + $0x74] sm:$0xf] }
  0xaa   :  { %v170_v29 = vpack.c.bf16 %v134_v15, %v135_v19  ;;  %v4149_v15 = vor.u32 %v4724_v10, %v4146_v12  ;;  %v4723_v10 = vld [vmem:[%s7500_s23 + $0x64] sm:$0xf0] }
  0xaf   :  { %v486_v34 = vpop.f32.mrf.mxu2 }
  0xb0   :  { %v565_v35 = vpop.f32.mrf.mxu3  ;;  %v5278_v39 = vadd.f32 %v486_v34, %v262_v22  ;;  %v265_v43 = vpop.f32.mrf.mxu0  ;;  %v768_v22 = vsel %vm239_vm0, %v4101_v11, 0  ;;  %v4145_v11 = vor.u32 %v4725_v5, %v4144_v4  ;;  %v4090_v4 = vld [vmem:[%s7500_s23 + $0x48] sm:$0xf0]  ;;  %v4136_v5 = vld [vmem:[%s7500_s23 + $0x60] sm:$0xf] }
  0xb1   :  { %v5280_v42 = vadd.f32 %v565_v35, %v341_v23  ;;  %v344_v44 = vpop.f32.mrf.mxu1  ;;  %855 = vmatpush.bf16.msrb.mxu1 %v768_v22 }
  0xb2   :  { %v1121_v19 = vsel %vm239_vm0, %v4145_v11, 0 }
  0xb3   :  { %4020 = vmatmul.msk.bf16.gmra.mxu0 %vm196_vm2, %v169_v36  ;;  %1132 = vmatpush.bf16.msrb.mxu2 %v1121_v19 }
  0xb4   :  { %4034 = vmatmul.msk.bf16.gmra.mxu1 %vm196_vm2, %v169_v36  ;;  %4064 = vmatmul.msk.bf16.gmra.mxu2 %vm196_vm2, %v92_v45 }
  0xb5   :  { %4078 = vmatmul.msk.bf16.gmra.mxu3 %vm196_vm2, %v92_v45 }
  0xb7   :  { %v489_v50 = vpop.f32.mrf.mxu2 }
  0xb8   :  { %v568_v53 = vpop.f32.mrf.mxu3  ;;  %v5300_v60 = vadd.f32 %v489_v50, %v265_v43  ;;  %v267_v62 = vpop.f32.mrf.mxu0  ;;  %v93_v43 = vpack.c.bf16 %v5291_v46, %v5266_v14 }
  0xb9   :  { %v5302_v61 = vadd.f32 %v568_v53, %v344_v44  ;;  %v346_v63 = vpop.f32.mrf.mxu1  ;;  %v5340_v44 = vld [vmem:[%s7473_s0 + $0xd0] sm:$0xff]  ;;  %v125_v53 = vrot.slane %v5335_v28, 1 }
  0xba   :  { %v126_v54 = vrot.slane %v5340_v44, 1 }
  0xbc   :  { %v132_v22 = vsel %vm130_vm1, %v125_v53, %v126_v54 }
  0xbf   :  { %v491_v23 = vpop.f32.mrf.mxu2 }
  0xc0   :  { %v570_v24 = vpop.f32.mrf.mxu3  ;;  %v5322_v32 = vadd.f32 %v491_v23, %v267_v62  ;;  %v270_v35 = vpop.f32.mrf.mxu0  ;;  %v133_v23 = vsel %vm130_vm1, %v124_v59, %v125_v53  ;;  %v94_v59 = vpack.c.bf16 %v5335_v28, %v5296_v47 }
  0xc1   :  { %v5324_v34 = vadd.f32 %v570_v24, %v346_v63  ;;  %v349_v36 = vpop.f32.mrf.mxu1  ;;  %v1124_v24 = vsel %vm239_vm0, %v4149_v15, 0 }
  0xc2   :  { %1211 = vmatpush.bf16.msrb.mxu3 %v1124_v24  ;;  %v4722_v24 = vld [vmem:[%s7500_s23 + $0x64] sm:$0xf] }
  0xc3   :  { %4021 = vmatmul.msk.bf16.gmra.mxu0 %vm196_vm2, %v170_v29 }
  0xc4   :  { %4035 = vmatmul.msk.bf16.gmra.mxu1 %vm196_vm2, %v170_v29  ;;  %4065 = vmatmul.msk.bf16.gmra.mxu2 %vm196_vm2, %v93_v43  ;;  %v4088_v29 = vld [vmem:[%s7500_s23 + $0x40] sm:$0xf] }
  0xc5   :  { %4079 = vmatmul.msk.bf16.gmra.mxu3 %vm196_vm2, %v93_v43 }
  0xc7   :  { %v494_v45 = vpop.f32.mrf.mxu2 }
  0xc8   :  { %v573_v50 = vpop.f32.mrf.mxu3  ;;  %v5344_v62 = vadd.f32 %v494_v45, %v270_v35  ;;  %v272_v2 = vpop.f32.mrf.mxu0  ;;  %v4719_v35 = vld [vmem:[%s7500_s23 + $0x44] sm:$0xf0] }
  0xc9   :  { %v5346_v63 = vadd.f32 %v573_v50, %v349_v36  ;;  %v351_v3 = vpop.f32.mrf.mxu1  ;;  %v4718_v36 = vld [vmem:[%s7500_s23 + $0x44] sm:$0xf]  ;;  %v171_v50 = vpack.c.bf16 %v132_v22, %v133_v23  ;;  %v4089_v53 = vor.u32 %v4719_v35, %v4088_v29  ;;  %v4137_v23 = vor.u32 %v4723_v10, %v4136_v5  ;;  %v4138_v29 = vld [vmem:[%s7500_s23 + $0x68] sm:$0xf0] }
  0xca   :  { %v4093_v22 = vor.u32 %v4718_v36, %v4090_v4  ;;  %v4141_v35 = vor.u32 %v4722_v24, %v4138_v29 }
  0xcb   :  { %777 = vmatpush.bf16.msrb.mxu0 %v4089_v53  ;;  %1133 = vmatpush.bf16.msrb.mxu2 %v4137_v23 }
  0xcc   :  { %856 = vmatpush.bf16.msrb.mxu1 %v4093_v22  ;;  %1212 = vmatpush.bf16.msrb.mxu3 %v4141_v35 }
  0xcf   :  { %v496_v43 = vpop.f32.mrf.mxu2 }
  0xd0   :  { %v575_v45 = vpop.f32.mrf.mxu3  ;;  %v5386_v11 = vadd.f32 %v496_v43, %v272_v2  ;;  %v275_v15 = vpop.f32.mrf.mxu0  ;;  %v5403_v2 = vld [vmem:[%s7473_s0 + $0xd8] sm:$0xff] }
  0xd1   :  { %v5388_v12 = vadd.f32 %v575_v45, %v351_v3  ;;  %v354_v19 = vpop.f32.mrf.mxu1  ;;  %7502 = vst [vmem:[#allocation3_spill] sm:$0xff] %v5403_v2  ;;  %v95_v35 = vpack.c.bf16 %v5403_v2, %v5340_v44 }
  0xd3   :  { %4022 = vmatmul.msk.bf16.gmra.mxu0 %vm196_vm2, %v171_v50 }
  0xd4   :  { %4036 = vmatmul.msk.bf16.gmra.mxu1 %vm196_vm2, %v171_v50  ;;  %4066 = vmatmul.msk.bf16.gmra.mxu2 %vm196_vm2, %v94_v59  ;;  %v127_v50 = vrot.slane %v5403_v2, 1 }
  0xd5   :  { %4080 = vmatmul.msk.bf16.gmra.mxu3 %vm196_vm2, %v94_v59 }
  0xd6   :  { %v131_v5 = vsel %vm130_vm1, %v126_v54, %v127_v50  ;;  %v158_v59 = vsel %vm130_vm1, %v127_v50, %v100_v31 }
  0xd7   :  { %v499_v3 = vpop.f32.mrf.mxu2  ;;  %v172_v23 = vpack.c.bf16 %v158_v59, %v131_v5  ;;  %v629_v5 = vrot.slane %v5024_v27, 2  ;;  %v630_v59 = vrot.slane %v5032_v30, 2 }
  0xd8   :  { %v578_v36 = vpop.f32.mrf.mxu3  ;;  %v5405_v43 = vadd.f32 %v499_v3, %v275_v15  ;;  %v277_v53 = vpop.f32.mrf.mxu0  ;;  %v7493_v3 = vrot.slane %v5004_v17, 2 }
  0xd9   :  { %v5407_v45 = vadd.f32 %v578_v36, %v354_v19  ;;  %v356_v4 = vpop.f32.mrf.mxu1 }
  0xdf   :  { %v501_v10 = vpop.f32.mrf.mxu2 }
  0xe0   :  { %v580_v22 = vpop.f32.mrf.mxu3  ;;  %v5416_v24 = vadd.f32 %v501_v10, %v277_v53  ;;  %v280_v19 = vpop.f32.mrf.mxu0  ;;  %v7492_v10 = vrot.slane %v5004_v17, 3 }
  0xe1   :  { %v5418_v15 = vadd.f32 %v580_v22, %v356_v4  ;;  %v359_v29 = vpop.f32.mrf.mxu1  ;;  %v985_v22 = vrot.slane %v5024_v27, 3 }
  0xe2   :  { %7503 = vst [vmem:[#allocation4_spill] sm:$0xff] %v5416_v24 }
  0xe3   :  { %7504 = vst [vmem:[#allocation5_spill] sm:$0xff] %v5418_v15  ;;  %4023 = vmatmul.msk.bf16.gmra.mxu0 %vm196_vm2, %v172_v23  ;;  %v1039_v27 = vsel %vm1012_vm4, %v7492_v10, %v985_v22 }
  0xe4   :  { %4037 = vmatmul.msk.bf16.gmra.mxu1 %vm196_vm2, %v172_v23  ;;  %4067 = vmatmul.msk.bf16.gmra.mxu2 %vm196_vm2, %v95_v35  ;;  %v986_v23 = vrot.slane %v5032_v30, 3 }
  0xe5   :  { %4081 = vmatmul.msk.bf16.gmra.mxu3 %vm196_vm2, %v95_v35 }
  0xe6   :  { %v1038_v35 = vsel %vm1012_vm4, %v985_v22, %v986_v23 }
  0xe7   :  { %v504_v31 = vpop.f32.mrf.mxu2  ;;  %v1041_v2 = vpack.c.bf16 %v1038_v35, %v1039_v27  ;;  %v632_v35 = vrot.slane %v5060_v41, 2  ;;  %v987_v27 = vrot.slane %v5055_v40, 3 }
  0xe8   :  { %v583_v54 = vpop.f32.mrf.mxu3  ;;  %v5427_v36 = vadd.f32 %v504_v31, %v280_v19  ;;  %v282_v4 = vpop.f32.mrf.mxu0  ;;  %v682_v19 = vsel %vm656_vm3, %v629_v5, %v630_v59 }
  0xe9   :  { %v5429_v53 = vadd.f32 %v583_v54, %v359_v29  ;;  %v361_v50 = vpop.f32.mrf.mxu1  ;;  %v683_v29 = vsel %vm656_vm3, %v7493_v3, %v629_v5 }
  0xea   :  { %7505 = vst [vmem:[#allocation6_spill] sm:$0xff] %v5427_v36  ;;  %v685_v54 = vpack.c.bf16 %v682_v19, %v683_v29  ;;  %v631_v29 = vrot.slane %v5055_v40, 2 }
  0xeb   :  { %7506 = vst [vmem:[#allocation7_spill] sm:$0xff] %v5429_v53 }
  0xef   :  { %v506_v31 = vpop.f32.mrf.mxu2 }
  0xf0   :  { %v585_v30 = vpop.f32.mrf.mxu3  ;;  %v5450_v53 = vadd.f32 %v506_v31, %v282_v4  ;;  %v285_v15 = vpop.f32.mrf.mxu0  ;;  %v988_v31 = vrot.slane %v5060_v41, 3 }
  0xf1   :  { %v5452_v36 = vadd.f32 %v585_v30, %v361_v50  ;;  %v364_v24 = vpop.f32.mrf.mxu1  ;;  %v680_v30 = vsel %vm656_vm3, %v631_v29, %v632_v35 }
  0xf3   :  { %4102 = vmatmul.msk.bf16.vlgmr.msrb.gmra.mxu0 %vm196_vm2, %v685_v54 }
  0xf4   :  { %4116 = vmatmul.msk.bf16.vlgmr.msrb.gmra.mxu1 %vm196_vm2, %v685_v54  ;;  %4150 = vmatmul.msk.bf16.vlgmr.msrb.gmra.mxu2 %vm196_vm2, %v1041_v2 }
  0xf5   :  { %4164 = vmatmul.msk.bf16.vlgmr.msrb.gmra.mxu3 %vm196_vm2, %v1041_v2  ;;  %v681_v2 = vsel %vm656_vm3, %v630_v59, %v631_v29 }
  0xf7   :  { %v509_v5 = vpop.f32.mrf.mxu2 }
  0xf8   :  { %v588_v22 = vpop.f32.mrf.mxu3  ;;  %v5458_v10 = vadd.f32 %v509_v5, %v285_v15  ;;  %v287_v4 = vpop.f32.mrf.mxu0  ;;  %v1037_v15 = vsel %vm1012_vm4, %v986_v23, %v987_v27 }
  0xf9   :  { %v5460_v19 = vadd.f32 %v588_v22, %v364_v24  ;;  %v366_v50 = vpop.f32.mrf.mxu1  ;;  %v1036_v24 = vsel %vm1012_vm4, %v987_v27, %v988_v31  ;;  %v686_v22 = vpack.c.bf16 %v680_v30, %v681_v2  ;;  %v633_v30 = vrot.slane %v5077_v48, 2 }
  0xfa   :  { %7507 = vst [vmem:[#allocation8_spill] sm:$0xff] %v5458_v10  ;;  %v1042_v10 = vpack.c.bf16 %v1036_v24, %v1037_v15  ;;  %v634_v2 = vrot.slane %v5082_v49, 2  ;;  %v989_v24 = vrot.slane %v5077_v48, 3  ;;  %v990_v15 = vrot.slane %v5082_v49, 3 }
  0xfb   :  { %7508 = vst [vmem:[#allocation9_spill] sm:$0xff] %v5460_v19 }
  0xff   :  { %v511_v54 = vpop.f32.mrf.mxu2 }
 0x100   :  { %v590_v5 = vpop.f32.mrf.mxu3  ;;  %v5474_v3 = vadd.f32 %v511_v54, %v287_v4  ;;  %v290_v41 = vpop.f32.mrf.mxu0  ;;  %v678_v54 = vsel %vm656_vm3, %v633_v30, %v634_v2 }
 0x101   :  { %v5476_v40 = vadd.f32 %v590_v5, %v366_v50  ;;  %v369_v19 = vpop.f32.mrf.mxu1  ;;  %v1035_v5 = vsel %vm1012_vm4, %v988_v31, %v989_v24 }
 0x103   :  { %4103 = vmatmul.msk.bf16.gmra.mxu0 %vm196_vm2, %v686_v22 }
 0x104   :  { %4117 = vmatmul.msk.bf16.gmra.mxu1 %vm196_vm2, %v686_v22  ;;  %4151 = vmatmul.msk.bf16.gmra.mxu2 %vm196_vm2, %v1042_v10 }
 0x105   :  { %4165 = vmatmul.msk.bf16.gmra.mxu3 %vm196_vm2, %v1042_v10  ;;  %v679_v10 = vsel %vm656_vm3, %v632_v35, %v633_v30 }
 0x107   :  { %v514_v59 = vpop.f32.mrf.mxu2 }
 0x108   :  { %v593_v23 = vpop.f32.mrf.mxu3  ;;  %v5482_v29 = vadd.f32 %v514_v59, %v290_v41  ;;  %v292_v4 = vpop.f32.mrf.mxu0  ;;  %v687_v59 = vpack.c.bf16 %v678_v54, %v679_v10  ;;  %v635_v54 = vrot.slane %v5099_v56, 2  ;;  %v636_v10 = vrot.slane %v5104_v57, 2 }
 0x109   :  { %v5484_v27 = vadd.f32 %v593_v23, %v369_v19  ;;  %v371_v50 = vpop.f32.mrf.mxu1  ;;  %v1034_v19 = vsel %vm1012_vm4, %v989_v24, %v990_v15 }
 0x10a   :  { %7509 = vst [vmem:[#allocation10_spill] sm:$0xff] %v5482_v29  ;;  %v1043_v29 = vpack.c.bf16 %v1034_v19, %v1035_v5  ;;  %v991_v19 = vrot.slane %v5099_v56, 3  ;;  %v992_v5 = vrot.slane %v5104_v57, 3 }
 0x10b   :  { %7510 = vst [vmem:[#allocation11_spill] sm:$0xff] %v5484_v27 }
 0x10f   :  { %v516_v22 = vpop.f32.mrf.mxu2 }
 0x110   :  { %v595_v41 = vpop.f32.mrf.mxu3  ;;  %v5498_v23 = vadd.f32 %v516_v22, %v292_v4  ;;  %v295_v49 = vpop.f32.mrf.mxu0  ;;  %v676_v22 = vsel %vm656_vm3, %v635_v54, %v636_v10 }
 0x111   :  { %v5500_v48 = vadd.f32 %v595_v41, %v371_v50  ;;  %v374_v27 = vpop.f32.mrf.mxu1  ;;  %v1033_v41 = vsel %vm1012_vm4, %v990_v15, %v991_v19 }
 0x113   :  { %4104 = vmatmul.msk.bf16.gmra.mxu0 %vm196_vm2, %v687_v59 }
 0x114   :  { %4118 = vmatmul.msk.bf16.gmra.mxu1 %vm196_vm2, %v687_v59  ;;  %4152 = vmatmul.msk.bf16.gmra.mxu2 %vm196_vm2, %v1043_v29 }
 0x115   :  { %4166 = vmatmul.msk.bf16.gmra.mxu3 %vm196_vm2, %v1043_v29  ;;  %v677_v29 = vsel %vm656_vm3, %v634_v2, %v635_v54 }
 0x117   :  { %v519_v35 = vpop.f32.mrf.mxu2 }
 0x118   :  { %v598_v31 = vpop.f32.mrf.mxu3  ;;  %v5506_v30 = vadd.f32 %v519_v35, %v295_v49  ;;  %v297_v4 = vpop.f32.mrf.mxu0  ;;  %v688_v35 = vpack.c.bf16 %v676_v22, %v677_v29  ;;  %v637_v22 = vrot.slane %v5121_v0, 2  ;;  %v638_v29 = vrot.slane %v5126_v1, 2 }
 0x119   :  { %v5508_v24 = vadd.f32 %v598_v31, %v374_v27  ;;  %v376_v50 = vpop.f32.mrf.mxu1  ;;  %v1032_v27 = vsel %vm1012_vm4, %v991_v19, %v992_v5 }
 0x11a   :  { %7511 = vst [vmem:[#allocation12_spill] sm:$0xff] %v5506_v30  ;;  %v1044_v30 = vpack.c.bf16 %v1032_v27, %v1033_v41  ;;  %v993_v27 = vrot.slane %v5121_v0, 3  ;;  %v994_v41 = vrot.slane %v5126_v1, 3 }
 0x11b   :  { %7512 = vst [vmem:[#allocation13_spill] sm:$0xff] %v5508_v24 }
 0x11f   :  { %v521_v59 = vpop.f32.mrf.mxu2 }
 0x120   :  { %v600_v49 = vpop.f32.mrf.mxu3  ;;  %v5522_v31 = vadd.f32 %v521_v59, %v297_v4  ;;  %v300_v57 = vpop.f32.mrf.mxu0  ;;  %v674_v59 = vsel %vm656_vm3, %v637_v22, %v638_v29 }
 0x121   :  { %v5524_v56 = vadd.f32 %v600_v49, %v376_v50  ;;  %v379_v24 = vpop.f32.mrf.mxu1  ;;  %v1031_v49 = vsel %vm1012_vm4, %v992_v5, %v993_v27 }
 0x123   :  { %4105 = vmatmul.msk.bf16.gmra.mxu0 %vm196_vm2, %v688_v35 }
 0x124   :  { %4119 = vmatmul.msk.bf16.gmra.mxu1 %vm196_vm2, %v688_v35  ;;  %4153 = vmatmul.msk.bf16.gmra.mxu2 %vm196_vm2, %v1044_v30 }
 0x125   :  { %4167 = vmatmul.msk.bf16.gmra.mxu3 %vm196_vm2, %v1044_v30  ;;  %v675_v30 = vsel %vm656_vm3, %v636_v10, %v637_v22 }
 0x127   :  { %v524_v2 = vpop.f32.mrf.mxu2 }
 0x128   :  { %v603_v15 = vpop.f32.mrf.mxu3  ;;  %v5530_v54 = vadd.f32 %v524_v2, %v300_v57  ;;  %v302_v4 = vpop.f32.mrf.mxu0  ;;  %v689_v2 = vpack.c.bf16 %v674_v59, %v675_v30  ;;  %v639_v59 = vrot.slane %v5143_v8, 2  ;;  %v640_v30 = vrot.slane %v5148_v9, 2 }
 0x129   :  { %v5532_v19 = vadd.f32 %v603_v15, %v379_v24  ;;  %v381_v50 = vpop.f32.mrf.mxu1  ;;  %v1030_v24 = vsel %vm1012_vm4, %v993_v27, %v994_v41 }
 0x12a   :  { %7513 = vst [vmem:[#allocation14_spill] sm:$0xff] %v5530_v54  ;;  %v1045_v54 = vpack.c.bf16 %v1030_v24, %v1031_v49  ;;  %v995_v24 = vrot.slane %v5143_v8, 3  ;;  %v996_v49 = vrot.slane %v5148_v9, 3 }
 0x12b   :  { %7514 = vst [vmem:[#allocation15_spill] sm:$0xff] %v5532_v19 }
 0x12f   :  { %v526_v35 = vpop.f32.mrf.mxu2 }
 0x130   :  { %v605_v57 = vpop.f32.mrf.mxu3  ;;  %v5546_v15 = vadd.f32 %v526_v35, %v302_v4  ;;  %v305_v1 = vpop.f32.mrf.mxu0  ;;  %v672_v35 = vsel %vm656_vm3, %v639_v59, %v640_v30 }
 0x131   :  { %v5548_v0 = vadd.f32 %v605_v57, %v381_v50  ;;  %v384_v19 = vpop.f32.mrf.mxu1  ;;  %v1029_v57 = vsel %vm1012_vm4, %v994_v41, %v995_v24 }
 0x133   :  { %4106 = vmatmul.msk.bf16.gmra.mxu0 %vm196_vm2, %v689_v2 }
 0x134   :  { %4120 = vmatmul.msk.bf16.gmra.mxu1 %vm196_vm2, %v689_v2  ;;  %4154 = vmatmul.msk.bf16.gmra.mxu2 %vm196_vm2, %v1045_v54 }
 0x135   :  { %4168 = vmatmul.msk.bf16.gmra.mxu3 %vm196_vm2, %v1045_v54  ;;  %v673_v54 = vsel %vm656_vm3, %v638_v29, %v639_v59 }
 0x137   :  { %v529_v10 = vpop.f32.mrf.mxu2 }
 0x138   :  { %v608_v5 = vpop.f32.mrf.mxu3  ;;  %v5554_v22 = vadd.f32 %v529_v10, %v305_v1  ;;  %v307_v4 = vpop.f32.mrf.mxu0  ;;  %v690_v10 = vpack.c.bf16 %v672_v35, %v673_v54  ;;  %v641_v35 = vrot.slane %v5165_v16, 2  ;;  %v642_v54 = vrot.slane %v5170_v18, 2 }
 0x139   :  { %v5556_v27 = vadd.f32 %v608_v5, %v384_v19  ;;  %v386_v50 = vpop.f32.mrf.mxu1  ;;  %v1028_v19 = vsel %vm1012_vm4, %v995_v24, %v996_v49 }
 0x13a   :  { %7515 = vst [vmem:[#allocation16_spill] sm:$0xff] %v5554_v22  ;;  %v1046_v22 = vpack.c.bf16 %v1028_v19, %v1029_v57  ;;  %v997_v19 = vrot.slane %v5165_v16, 3  ;;  %v998_v57 = vrot.slane %v5170_v18, 3 }
 0x13b   :  { %7516 = vst [vmem:[#allocation17_spill] sm:$0xff] %v5556_v27 }
 0x13f   :  { %v531_v2 = vpop.f32.mrf.mxu2 }
 0x140   :  { %v610_v1 = vpop.f32.mrf.mxu3  ;;  %v5570_v5 = vadd.f32 %v531_v2, %v307_v4  ;;  %v310_v9 = vpop.f32.mrf.mxu0  ;;  %v670_v2 = vsel %vm656_vm3, %v641_v35, %v642_v54 }
 0x141   :  { %v5572_v8 = vadd.f32 %v610_v1, %v386_v50  ;;  %v389_v27 = vpop.f32.mrf.mxu1  ;;  %v1027_v1 = vsel %vm1012_vm4, %v996_v49, %v997_v19 }
 0x143   :  { %4107 = vmatmul.msk.bf16.gmra.mxu0 %vm196_vm2, %v690_v10 }
 0x144   :  { %4121 = vmatmul.msk.bf16.gmra.mxu1 %vm196_vm2, %v690_v10  ;;  %4155 = vmatmul.msk.bf16.gmra.mxu2 %vm196_vm2, %v1046_v22 }
 0x145   :  { %4169 = vmatmul.msk.bf16.gmra.mxu3 %vm196_vm2, %v1046_v22  ;;  %v671_v22 = vsel %vm656_vm3, %v640_v30, %v641_v35 }
 0x147   :  { %v534_v29 = vpop.f32.mrf.mxu2 }
 0x148   :  { %v613_v41 = vpop.f32.mrf.mxu3  ;;  %v5578_v59 = vadd.f32 %v534_v29, %v310_v9  ;;  %v312_v4 = vpop.f32.mrf.mxu0  ;;  %v691_v29 = vpack.c.bf16 %v670_v2, %v671_v22  ;;  %v643_v2 = vrot.slane %v5187_v25, 2  ;;  %v644_v22 = vrot.slane %v5192_v26, 2 }
 0x149   :  { %v5580_v24 = vadd.f32 %v613_v41, %v389_v27  ;;  %v391_v50 = vpop.f32.mrf.mxu1  ;;  %v1026_v27 = vsel %vm1012_vm4, %v997_v19, %v998_v57 }
 0x14a   :  { %7517 = vst [vmem:[#allocation18_spill] sm:$0xff] %v5578_v59  ;;  %v1047_v59 = vpack.c.bf16 %v1026_v27, %v1027_v1  ;;  %v999_v27 = vrot.slane %v5187_v25, 3  ;;  %v1000_v1 = vrot.slane %v5192_v26, 3 }
 0x14b   :  { %7518 = vst [vmem:[#allocation19_spill] sm:$0xff] %v5580_v24 }
 0x14f   :  { %v536_v10 = vpop.f32.mrf.mxu2 }
 0x150   :  { %v615_v9 = vpop.f32.mrf.mxu3  ;;  %v5594_v41 = vadd.f32 %v536_v10, %v312_v4  ;;  %v315_v18 = vpop.f32.mrf.mxu0  ;;  %v668_v10 = vsel %vm656_vm3, %v643_v2, %v644_v22 }
 0x151   :  { %v5596_v16 = vadd.f32 %v615_v9, %v391_v50  ;;  %v394_v24 = vpop.f32.mrf.mxu1  ;;  %v1025_v9 = vsel %vm1012_vm4, %v998_v57, %v999_v27 }
 0x153   :  { %4108 = vmatmul.msk.bf16.gmra.mxu0 %vm196_vm2, %v691_v29 }
 0x154   :  { %4122 = vmatmul.msk.bf16.gmra.mxu1 %vm196_vm2, %v691_v29  ;;  %4156 = vmatmul.msk.bf16.gmra.mxu2 %vm196_vm2, %v1047_v59 }
 0x155   :  { %4170 = vmatmul.msk.bf16.gmra.mxu3 %vm196_vm2, %v1047_v59  ;;  %v669_v59 = vsel %vm656_vm3, %v642_v54, %v643_v2 }
 0x157   :  { %v539_v30 = vpop.f32.mrf.mxu2 }
 0x158   :  { %v618_v49 = vpop.f32.mrf.mxu3  ;;  %v5602_v35 = vadd.f32 %v539_v30, %v315_v18  ;;  %v317_v4 = vpop.f32.mrf.mxu0  ;;  %v692_v30 = vpack.c.bf16 %v668_v10, %v669_v59  ;;  %v645_v10 = vrot.slane %v5209_v37, 2  ;;  %v646_v59 = vrot.slane %v5214_v38, 2 }
 0x159   :  { %v5604_v19 = vadd.f32 %v618_v49, %v394_v24  ;;  %v396_v50 = vpop.f32.mrf.mxu1  ;;  %v1024_v24 = vsel %vm1012_vm4, %v999_v27, %v1000_v1 }
 0x15a   :  { %7519 = vst [vmem:[#allocation20_spill] sm:$0xff] %v5602_v35  ;;  %v1048_v35 = vpack.c.bf16 %v1024_v24, %v1025_v9  ;;  %v1001_v24 = vrot.slane %v5209_v37, 3  ;;  %v1002_v9 = vrot.slane %v5214_v38, 3 }
 0x15b   :  { %7520 = vst [vmem:[#allocation21_spill] sm:$0xff] %v5604_v19 }
 0x15f   :  { %v541_v29 = vpop.f32.mrf.mxu2 }
 0x160   :  { %v620_v18 = vpop.f32.mrf.mxu3  ;;  %v5618_v49 = vadd.f32 %v541_v29, %v317_v4  ;;  %v320_v26 = vpop.f32.mrf.mxu0  ;;  %v666_v29 = vsel %vm656_vm3, %v645_v10, %v646_v59 }
 0x161   :  { %v5620_v25 = vadd.f32 %v620_v18, %v396_v50  ;;  %v399_v19 = vpop.f32.mrf.mxu1  ;;  %v1023_v18 = vsel %vm1012_vm4, %v1000_v1, %v1001_v24 }
 0x163   :  { %7521 = vst [vmem:[#allocation22_spill] sm:$0xff] %v5620_v25  ;;  %4109 = vmatmul.msk.bf16.gmra.mxu0 %vm196_vm2, %v692_v30 }
 0x164   :  { %4123 = vmatmul.msk.bf16.gmra.mxu1 %vm196_vm2, %v692_v30  ;;  %4157 = vmatmul.msk.bf16.gmra.mxu2 %vm196_vm2, %v1048_v35 }
 0x165   :  { %4171 = vmatmul.msk.bf16.gmra.mxu3 %vm196_vm2, %v1048_v35  ;;  %v667_v35 = vsel %vm656_vm3, %v644_v22, %v645_v10 }
 0x167   :  { %v544_v54 = vpop.f32.mrf.mxu2 }
 0x168   :  { %v623_v57 = vpop.f32.mrf.mxu3  ;;  %v5626_v2 = vadd.f32 %v544_v54, %v320_v26  ;;  %v322_v4 = vpop.f32.mrf.mxu0  ;;  %v693_v54 = vpack.c.bf16 %v666_v29, %v667_v35 }
 0x169   :  { %v5628_v27 = vadd.f32 %v623_v57, %v399_v19  ;;  %v401_v50 = vpop.f32.mrf.mxu1  ;;  %v1022_v19 = vsel %vm1012_vm4, %v1001_v24, %v1002_v9 }
 0x16a   :  { %7522 = vst [vmem:[#allocation23_spill] sm:$0xff] %v5626_v2  ;;  %v1049_v2 = vpack.c.bf16 %v1022_v19, %v1023_v18  ;;  %v1003_v19 = vrot.slane %v5231_v51, 3 }
 0x16b   :  { %7523 = vst [vmem:[#allocation24_spill] sm:$0xff] %v5628_v27 }
 0x16f   :  { %v546_v30 = vpop.f32.mrf.mxu2 }
 0x170   :  { %v625_v26 = vpop.f32.mrf.mxu3  ;;  %v5642_v57 = vadd.f32 %v546_v30, %v322_v4  ;;  %v779_v38 = vpop.f32.mrf.mxu0 }
 0x171   :  { %v5644_v37 = vadd.f32 %v625_v26, %v401_v50  ;;  %v858_v27 = vpop.f32.mrf.mxu1  ;;  %v928_v25 = vadd.f32 %v779_v38, %v5238_v55  ;;  %v647_v55 = vrot.slane %v5231_v51, 2  ;;  %v1021_v26 = vsel %vm1012_vm4, %v1002_v9, %v1003_v19 }
 0x172   :  { %v929_v22 = vadd.f32 %v858_v27, %v5240_v58  ;;  %v648_v58 = vrot.slane %v5236_v52, 2 }
 0x173   :  { %4110 = vmatmul.msk.bf16.gmra.mxu0 %vm196_vm2, %v693_v54  ;;  %v665_v18 = vsel %vm656_vm3, %v646_v59, %v647_v55 }
 0x174   :  { %4124 = vmatmul.msk.bf16.gmra.mxu1 %vm196_vm2, %v693_v54  ;;  %4158 = vmatmul.msk.bf16.gmra.mxu2 %vm196_vm2, %v1049_v2 }
 0x175   :  { %4172 = vmatmul.msk.bf16.gmra.mxu3 %vm196_vm2, %v1049_v2  ;;  %v1004_v2 = vrot.slane %v5236_v52, 3 }
 0x177   :  { %v1135_v1 = vpop.f32.mrf.mxu2  ;;  %v1020_v30 = vsel %vm1012_vm4, %v1003_v19, %v1004_v2 }
 0x178   :  { %v1214_v4 = vpop.f32.mrf.mxu3  ;;  %v5652_v10 = vadd.f32 %v1135_v1, %v928_v25  ;;  %v781_v24 = vpop.f32.mrf.mxu0  ;;  %v664_v25 = vsel %vm656_vm3, %v647_v55, %v648_v58  ;;  %v1050_v1 = vpack.c.bf16 %v1020_v30, %v1021_v26  ;;  %v1006_v30 = vrot.slane %v5266_v14, 3 }
 0x179   :  { %v5654_v50 = vadd.f32 %v1214_v4, %v929_v22  ;;  %v860_v29 = vpop.f32.mrf.mxu1  ;;  %v930_v27 = vadd.f32 %v781_v24, %v5248_v6  ;;  %v694_v38 = vpack.c.bf16 %v664_v25, %v665_v18  ;;  %v1005_v18 = vrot.slane %v5261_v13, 3 }
 0x17a   :  { %v931_v35 = vadd.f32 %v860_v29, %v5250_v7 }
 0x17f   :  { %v1137_v54 = vpop.f32.mrf.mxu2 }
 0x180   :  { %v1216_v6 = vpop.f32.mrf.mxu3  ;;  %v5670_v7 = vadd.f32 %v1137_v54, %v930_v27  ;;  %v784_v52 = vpop.f32.mrf.mxu0 }
 0x181   :  { %v5672_v51 = vadd.f32 %v1216_v6, %v931_v35  ;;  %v863_v22 = vpop.f32.mrf.mxu1  ;;  %v932_v4 = vadd.f32 %v784_v52, %v5268_v20  ;;  %v649_v20 = vrot.slane %v5261_v13, 2  ;;  %v1018_v6 = vsel %vm1012_vm4, %v1005_v18, %v1006_v30 }
 0x182   :  { %v933_v59 = vadd.f32 %v863_v22, %v5270_v21  ;;  %v650_v21 = vrot.slane %v5266_v14, 2 }
 0x183   :  { %4111 = vmatmul.msk.bf16.gmra.mxu0 %vm196_vm2, %v694_v38  ;;  %v663_v54 = vsel %vm656_vm3, %v648_v58, %v649_v20 }
 0x184   :  { %4125 = vmatmul.msk.bf16.gmra.mxu1 %vm196_vm2, %v694_v38  ;;  %4159 = vmatmul.msk.bf16.gmra.mxu2 %vm196_vm2, %v1050_v1  ;;  %v662_v26 = vsel %vm656_vm3, %v649_v20, %v650_v21  ;;  %v1019_v38 = vsel %vm1012_vm4, %v1004_v2, %v1005_v18 }
 0x185   :  { %4173 = vmatmul.msk.bf16.gmra.mxu3 %vm196_vm2, %v1050_v1  ;;  %v695_v22 = vpack.c.bf16 %v662_v26, %v663_v54 }
 0x187   :  { %v1140_v9 = vpop.f32.mrf.mxu2 }
 0x188   :  { %v1219_v24 = vpop.f32.mrf.mxu3  ;;  %v5680_v29 = vadd.f32 %v1140_v9, %v932_v4  ;;  %v786_v27 = vpop.f32.mrf.mxu0  ;;  %v1051_v4 = vpack.c.bf16 %v1018_v6, %v1019_v38 }
 0x189   :  { %v5682_v55 = vadd.f32 %v1219_v24, %v933_v59  ;;  %v865_v35 = vpop.f32.mrf.mxu1  ;;  %v934_v19 = vadd.f32 %v786_v27, %v5278_v39  ;;  %v651_v24 = vrot.slane %v5291_v46, 2  ;;  %v652_v27 = vrot.slane %v5296_v47, 2 }
 0x18a   :  { %v935_v25 = vadd.f32 %v865_v35, %v5280_v42  ;;  %v1008_v35 = vrot.slane %v5296_v47, 3  ;;  %v4194_v47 = vld [vmem:[%s7500_s23 + $0x98] sm:$0x30] }
 0x18b   :  { %v661_v26 = vsel %vm656_vm3, %v650_v21, %v651_v24 }
 0x18f   :  { %v1142_v52 = vpop.f32.mrf.mxu2 }
 0x190   :  { %v1221_v39 = vpop.f32.mrf.mxu3  ;;  %v5698_v42 = vadd.f32 %v1142_v52, %v934_v19  ;;  %v789_v14 = vpop.f32.mrf.mxu0  ;;  %v4192_v19 = vld [vmem:[%s7500_s23 + $0x90] sm:$0xf] }
 0x191   :  { %v5700_v13 = vadd.f32 %v1221_v39, %v935_v25  ;;  %v868_v1 = vpop.f32.mrf.mxu1  ;;  %v5703_v59 = vadd.f32 %v789_v14, %v5300_v60  ;;  %v1007_v60 = vrot.slane %v5291_v46, 3  ;;  %v4729_v25 = vld [vmem:[%s7500_s23 + $0x94] sm:$0x30]  ;;  %v4728_v46 = vld [vmem:[%s7500_s23 + $0x94] sm:$0xf] }
 0x192   :  { %v5706_v58 = vadd.f32 %v868_v1, %v5302_v61  ;;  %v4193_v18 = vor.u32 %v4729_v25, %v4192_v19  ;;  %v1010_v19 = vrot.slane %v5340_v44, 3 }
 0x193   :  { %4112 = vmatmul.msk.bf16.gmra.mxu0 %vm196_vm2, %v695_v22  ;;  %v1016_v6 = vsel %vm1012_vm4, %v1007_v60, %v1008_v35  ;;  %v1017_v38 = vsel %vm1012_vm4, %v1006_v30, %v1007_v60  ;;  %v1009_v60 = vrot.slane %v5335_v28, 3 }
 0x194   :  { %4126 = vmatmul.msk.bf16.gmra.mxu1 %vm196_vm2, %v695_v22  ;;  %4160 = vmatmul.msk.bf16.gmra.mxu2 %vm196_vm2, %v1051_v4  ;;  %v1477_v54 = vsel %vm239_vm0, %v4193_v18, 0  ;;  %v1052_v1 = vpack.c.bf16 %v1016_v6, %v1017_v38 }
 0x195   :  { %4174 = vmatmul.msk.bf16.gmra.mxu3 %vm196_vm2, %v1051_v4  ;;  %1488 = vmatpush.bf16.msra.mxu0 %v1477_v54  ;;  %v1014_v18 = vsel %vm1012_vm4, %v1009_v60, %v1010_v19 }
 0x198   :  { %v791_v2 = vpop.f32.mrf.mxu0 }
 0x199   :  { %v870_v9 = vpop.f32.mrf.mxu1  ;;  %v5717_v61 = vadd.f32 %v791_v2, %v5322_v32  ;;  %v4197_v32 = vor.u32 %v4728_v46, %v4194_v47 }
 0x19a   :  { %v5720_v20 = vadd.f32 %v870_v9, %v5324_v34  ;;  %v660_v34 = vsel %vm656_vm3, %v651_v24, %v652_v27  ;;  %v653_v9 = vrot.slane %v5335_v28, 2  ;;  %v654_v24 = vrot.slane %v5340_v44, 2  ;;  %v4727_v28 = vld [vmem:[%s7500_s23 + $0x84] sm:$0xf0]  ;;  %v4726_v44 = vld [vmem:[%s7500_s23 + $0x84] sm:$0xf] }
 0x19b   :  { %v1480_v52 = vsel %vm239_vm0, %v4197_v32, 0  ;;  %v696_v39 = vpack.c.bf16 %v660_v34, %v661_v26  ;;  %v4186_v32 = vld [vmem:[%s7500_s23 + $0x88] sm:$0xf0] }
 0x19c   :  { %1567 = vmatpush.bf16.msra.mxu1 %v1480_v52  ;;  %v658_v25 = vsel %vm656_vm3, %v653_v9, %v654_v24  ;;  %v659_v46 = vsel %vm656_vm3, %v652_v27, %v653_v9  ;;  %v4189_v54 = vor.u32 %v4726_v44, %v4186_v32 }
 0x19d   :  { %v697_v47 = vpack.c.bf16 %v658_v25, %v659_v46 }
 0x1a0   :  { %v794_v22 = vpop.f32.mrf.mxu0  ;;  %1568 = vmatpush.bf16.msra.mxu1 %v4189_v54  ;;  %v4855_v54 = vld [vmem:[%s7473_s0 + $0x10] sm:$0xff] }
 0x1a1   :  { %v873_v14 = vpop.f32.mrf.mxu1  ;;  %v5745_v4 = vadd.f32 %v794_v22, %v5344_v62  ;;  %v7524_v22 = vld [vmem:[#allocation3_spill] sm:$0xff] }
 0x1a2   :  { %v5748_v21 = vadd.f32 %v873_v14, %v5346_v63  ;;  %v655_v14 = vrot.slane %v7524_v22, 2 }
 0x1a3   :  { %4113 = vmatmul.msk.bf16.gmra.mxu0 %vm196_vm2, %v696_v39 }
 0x1a4   :  { %4127 = vmatmul.msk.bf16.gmra.mxu1 %vm196_vm2, %v696_v39  ;;  %4161 = vmatmul.msk.bf16.gmra.mxu2 %vm196_vm2, %v1052_v1  ;;  %v657_v9 = vsel %vm656_vm3, %v654_v24, %v655_v14  ;;  %v7530_v24 = vld [vmem:[#allocation7_spill] sm:$0xff] }
 0x1a5   :  { %4175 = vmatmul.msk.bf16.gmra.mxu3 %vm196_vm2, %v1052_v1  ;;  %v7525_v1 = vld [vmem:[#allocation4_spill] sm:$0xff] }
 0x1a8   :  { %v796_v30 = vpop.f32.mrf.mxu0 }
 0x1a9   :  { %v875_v2 = vpop.f32.mrf.mxu1  ;;  %v5757_v62 = vadd.f32 %v796_v30, %v5386_v11  ;;  %v1015_v11 = vsel %vm1012_vm4, %v1008_v35, %v1009_v60  ;;  %v7526_v30 = vld [vmem:[#allocation5_spill] sm:$0xff]  ;;  %v7527_v60 = vrot.slane %v5004_v17, 2 }
 0x1aa   :  { %v5760_v63 = vadd.f32 %v875_v2, %v5388_v12  ;;  %v4184_v12 = vld [vmem:[%s7500_s23 + $0x80] sm:$0xf]  ;;  %v1053_v26 = vpack.c.bf16 %v1014_v18, %v1015_v11  ;;  %v1011_v2 = vrot.slane %v7524_v22, 3  ;;  %v7528_v18 = vrot.slane %v5004_v17, 3 }
 0x1ab   :  { %v4185_v27 = vor.u32 %v4727_v28, %v4184_v12  ;;  %v684_v25 = vsel %vm656_vm3, %v655_v14, %v7527_v60  ;;  %v5827_v17 = vld [vmem:[%s7473_s0] sm:$0xff] }
 0x1ac   :  { %v1013_v46 = vsel %vm1012_vm4, %v1010_v19, %v1011_v2  ;;  %v1040_v11 = vsel %vm1012_vm4, %v1011_v2, %v7528_v18  ;;  %v698_v12 = vpack.c.bf16 %v684_v25, %v657_v9  ;;  %v7494_v19 = vrot.slane %v5827_v17, 4 }
 0x1ad   :  { %1489 = vmatpush.bf16.msra.mxu0 %v4185_v27  ;;  %v7529_v27 = vld [vmem:[#allocation6_spill] sm:$0xff] }
 0x1b0   :  { %v799_v34 = vpop.f32.mrf.mxu0 }
 0x1b1   :  { %v878_v35 = vpop.f32.mrf.mxu1  ;;  %v5785_v6 = vadd.f32 %v799_v34, %v5405_v43 }
 0x1b2   :  { %v5788_v38 = vadd.f32 %v878_v35, %v5407_v45  ;;  %v4854_v35 = vld [vmem:[%s7473_s0 + $0x8] sm:$0xff] }
 0x1b3   :  { %4114 = vmatmul.msk.bf16.gmra.mxu0 %vm196_vm2, %v697_v47 }
 0x1b4   :  { %4128 = vmatmul.msk.bf16.gmra.mxu1 %vm196_vm2, %v697_v47  ;;  %4162 = vmatmul.msk.bf16.gmra.mxu2 %vm196_vm2, %v1053_v26  ;;  %v1054_v47 = vpack.c.bf16 %v1040_v11, %v1013_v46  ;;  %v7531_v46 = vld [vmem:[#allocation8_spill] sm:$0xff] }
 0x1b5   :  { %4176 = vmatmul.msk.bf16.gmra.mxu3 %vm196_vm2, %v1053_v26  ;;  %v1341_v26 = vrot.slane %v4854_v35, 4 }
 0x1b7   :  { %v1395_v2 = vsel %vm1368_vm5, %v7494_v19, %v1341_v26 }
 0x1b8   :  { %v801_v52 = vpop.f32.mrf.mxu0 }
 0x1b9   :  { %v880_v39 = vpop.f32.mrf.mxu1  ;;  %v5796_v43 = vadd.f32 %v801_v52, %v7525_v1  ;;  %v1342_v52 = vrot.slane %v4855_v54, 4 }
 0x1ba   :  { %v5799_v45 = vadd.f32 %v880_v39, %v7526_v30 }
 0x1bb   :  { %v1394_v30 = vsel %vm1368_vm5, %v1341_v26, %v1342_v52 }
 0x1bc   :  { %v1397_v9 = vpack.c.bf16 %v1394_v30, %v1395_v2  ;;  %v7536_v2 = vld [vmem:[#allocation10_spill] sm:$0xff] }
 0x1c0   :  { %v804_v28 = vpop.f32.mrf.mxu0 }
 0x1c1   :  { %v883_v44 = vpop.f32.mrf.mxu1  ;;  %v5815_v32 = vadd.f32 %v804_v28, %v7529_v27  ;;  %v4856_v28 = vld [vmem:[%s7473_s0 + $0x18] sm:$0xff] }
 0x1c2   :  { %v5818_v34 = vadd.f32 %v883_v44, %v7530_v24  ;;  %v1343_v44 = vrot.slane %v4856_v28, 4 }
 0x1c3   :  { %4115 = vmatmul.msk.bf16.gmra.mxu0 %vm196_vm2, %v698_v12 }
 0x1c4   :  { %4129 = vmatmul.msk.bf16.gmra.mxu1 %vm196_vm2, %v698_v12  ;;  %4163 = vmatmul.msk.bf16.gmra.mxu2 %vm196_vm2, %v1054_v47  ;;  %v1393_v54 = vsel %vm1368_vm5, %v1342_v52, %v1343_v44 }
 0x1c5   :  { %4177 = vmatmul.msk.bf16.gmra.mxu3 %vm196_vm2, %v1054_v47  ;;  %v4857_v47 = vld [vmem:[%s7473_s0 + $0x20] sm:$0xff] }
 0x1c6   :  { %v1344_v27 = vrot.slane %v4857_v47, 4 }
 0x1c8   :  { %v806_v39 = vpop.f32.mrf.mxu0  ;;  %v1392_v26 = vsel %vm1368_vm5, %v1343_v44, %v1344_v27 }
 0x1c9   :  { %v885_v22 = vpop.f32.mrf.mxu1  ;;  %v5837_v14 = vadd.f32 %v806_v39, %v5450_v53  ;;  %v7532_v53 = vld [vmem:[#allocation9_spill] sm:$0xff]  ;;  %v1398_v39 = vpack.c.bf16 %v1392_v26, %v1393_v54 }
 0x1ca   :  { %v5840_v1 = vadd.f32 %v885_v22, %v5452_v36 }
 0x1d0   :  { %v809_v60 = vpop.f32.mrf.mxu0 }
 0x1d1   :  { %v888_v25 = vpop.f32.mrf.mxu1  ;;  %v5850_v18 = vadd.f32 %v809_v60, %v7531_v46  ;;  %v7538_v60 = vld [vmem:[#allocation11_spill] sm:$0xff] }
 0x1d2   :  { %v5853_v11 = vadd.f32 %v888_v25, %v7532_v53  ;;  %v4858_v46 = vld [vmem:[%s7473_s0 + $0x28] sm:$0xff]  ;;  %v4859_v53 = vld [vmem:[%s7473_s0 + $0x30] sm:$0xff] }
 0x1d3   :  { %4198 = vmatmul.msk.bf16.vlgmr.msra.gmra.mxu0 %vm196_vm2, %v1397_v9  ;;  %v1345_v52 = vrot.slane %v4858_v46, 4 }
 0x1d4   :  { %7533 = vst [vmem:[#allocation3_spill] sm:$0xff] %v5853_v11  ;;  %4212 = vmatmul.msk.bf16.vlgmr.msra.gmra.mxu1 %vm196_vm2, %v1397_v9 }
 0x1d5   :  { %v1391_v47 = vsel %vm1368_vm5, %v1344_v27, %v1345_v52 }
 0x1d8   :  { %v811_v36 = vpop.f32.mrf.mxu0 }
 0x1d9   :  { %v890_v12 = vpop.f32.mrf.mxu1  ;;  %v5864_v24 = vadd.f32 %v811_v36, %v5474_v3  ;;  %v1346_v36 = vrot.slane %v4859_v53, 4 }
 0x1da   :  { %v5867_v35 = vadd.f32 %v890_v12, %v5476_v40 }
 0x1db   :  { %7534 = vst [vmem:[#allocation4_spill] sm:$0xff] %v5864_v24  ;;  %v1390_v44 = vsel %vm1368_vm5, %v1345_v52, %v1346_v36 }
 0x1dc   :  { %7535 = vst [vmem:[#allocation5_spill] sm:$0xff] %v5867_v35  ;;  %v1399_v26 = vpack.c.bf16 %v1390_v44, %v1391_v47 }
 0x1e0   :  { %v814_v22 = vpop.f32.mrf.mxu0 }
 0x1e1   :  { %v893_v30 = vpop.f32.mrf.mxu1  ;;  %v5874_v9 = vadd.f32 %v814_v22, %v7536_v2  ;;  %v7542_v22 = vld [vmem:[#allocation12_spill] sm:$0xff]  ;;  %v7544_v2 = vld [vmem:[#allocation13_spill] sm:$0xff] }
 0x1e2   :  { %v5877_v25 = vadd.f32 %v893_v30, %v7538_v60 }
 0x1e3   :  { %7537 = vst [vmem:[#allocation6_spill] sm:$0xff] %v5874_v9  ;;  %4199 = vmatmul.msk.bf16.gmra.mxu0 %vm196_vm2, %v1398_v39 }
 0x1e4   :  { %7539 = vst [vmem:[#allocation7_spill] sm:$0xff] %v5877_v25  ;;  %4213 = vmatmul.msk.bf16.gmra.mxu1 %vm196_vm2, %v1398_v39 }
 0x1e8   :  { %v816_v3 = vpop.f32.mrf.mxu0 }
 0x1e9   :  { %v895_v40 = vpop.f32.mrf.mxu1  ;;  %v5888_v12 = vadd.f32 %v816_v3, %v5498_v23  ;;  %v4860_v3 = vld [vmem:[%s7473_s0 + $0x38] sm:$0xff] }
 0x1ea   :  { %v5891_v28 = vadd.f32 %v895_v40, %v5500_v48  ;;  %v1347_v27 = vrot.slane %v4860_v3, 4  ;;  %v4861_v40 = vld [vmem:[%s7473_s0 + $0x40] sm:$0xff]  ;;  %v7550_v3 = vld [vmem:[#allocation15_spill] sm:$0xff] }
 0x1eb   :  { %7540 = vst [vmem:[#allocation8_spill] sm:$0xff] %v5888_v12  ;;  %v1348_v46 = vrot.slane %v4861_v40, 4 }
 0x1ec   :  { %7541 = vst [vmem:[#allocation9_spill] sm:$0xff] %v5891_v28  ;;  %v1389_v47 = vsel %vm1368_vm5, %v1346_v36, %v1347_v27  ;;  %v4862_v36 = vld [vmem:[%s7473_s0 + $0x48] sm:$0xff] }
 0x1ed   :  { %v1388_v44 = vsel %vm1368_vm5, %v1347_v27, %v1348_v46  ;;  %v1349_v27 = vrot.slane %v4862_v36, 4 }
 0x1f0   :  { %v819_v54 = vpop.f32.mrf.mxu0 }
 0x1f1   :  { %v898_v39 = vpop.f32.mrf.mxu1  ;;  %v5898_v30 = vadd.f32 %v819_v54, %v7542_v22  ;;  %v7548_v22 = vld [vmem:[#allocation14_spill] sm:$0xff] }
 0x1f2   :  { %v5901_v60 = vadd.f32 %v898_v39, %v7544_v2 }
 0x1f3   :  { %7543 = vst [vmem:[#allocation10_spill] sm:$0xff] %v5898_v30  ;;  %4200 = vmatmul.msk.bf16.gmra.mxu0 %vm196_vm2, %v1399_v26 }
 0x1f4   :  { %7545 = vst [vmem:[#allocation11_spill] sm:$0xff] %v5901_v60  ;;  %4214 = vmatmul.msk.bf16.gmra.mxu1 %vm196_vm2, %v1399_v26  ;;  %v1400_v26 = vpack.c.bf16 %v1388_v44, %v1389_v47  ;;  %v4863_v44 = vld [vmem:[%s7473_s0 + $0x50] sm:$0xff] }
 0x1f5   :  { %v1350_v47 = vrot.slane %v4863_v44, 4  ;;  %v7554_v44 = vld [vmem:[#allocation16_spill] sm:$0xff] }
 0x1f8   :  { %v821_v23 = vpop.f32.mrf.mxu0 }
 0x1f9   :  { %v900_v48 = vpop.f32.mrf.mxu1  ;;  %v5912_v52 = vadd.f32 %v821_v23, %v5522_v31  ;;  %v5927_v31 = vpop.f32.mrf.mxu2 }
 0x1fa   :  { %v5915_v53 = vadd.f32 %v900_v48, %v5524_v56  ;;  %v5929_v23 = vpop.f32.mrf.mxu3 }
 0x1fb   :  { %7546 = vst [vmem:[#allocation12_spill] sm:$0xff] %v5912_v52 }
 0x1fc   :  { %7547 = vst [vmem:[#allocation13_spill] sm:$0xff] %v5915_v53 }
 0x200   :  { %v824_v54 = vpop.f32.mrf.mxu0 }
 0x201   :  { %v903_v39 = vpop.f32.mrf.mxu1  ;;  %v5922_v2 = vadd.f32 %v824_v54, %v7548_v22  ;;  %v1387_v22 = vsel %vm1368_vm5, %v1348_v46, %v1349_v27 }
 0x202   :  { %v5925_v40 = vadd.f32 %v903_v39, %v7550_v3  ;;  %v5949_v3 = vpop.f32.mrf.mxu2  ;;  %v5951_v36 = vpop.f32.mrf.mxu3 }
 0x203   :  { %7549 = vst [vmem:[#allocation14_spill] sm:$0xff] %v5922_v2  ;;  %4201 = vmatmul.msk.bf16.gmra.mxu0 %vm196_vm2, %v1400_v26 }
 0x204   :  { %7551 = vst [vmem:[#allocation15_spill] sm:$0xff] %v5925_v40  ;;  %4215 = vmatmul.msk.bf16.gmra.mxu1 %vm196_vm2, %v1400_v26  ;;  %v1386_v26 = vsel %vm1368_vm5, %v1349_v27, %v1350_v47 }
 0x205   :  { %v1401_v19 = vpack.c.bf16 %v1386_v26, %v1387_v22  ;;  %v4864_v26 = vld [vmem:[%s7473_s0 + $0x58] sm:$0xff] }
 0x206   :  { %v1351_v22 = vrot.slane %v4864_v26, 4 }
 0x208   :  { %v826_v56 = vpop.f32.mrf.mxu0 }
 0x209   :  { %v905_v48 = vpop.f32.mrf.mxu1  ;;  %v5940_v54 = vadd.f32 %v826_v56, %v5546_v15  ;;  %v7556_v15 = vld [vmem:[#allocation17_spill] sm:$0xff] }
 0x20a   :  { %v5943_v39 = vadd.f32 %v905_v48, %v5548_v0  ;;  %v5961_v0 = vpop.f32.mrf.mxu2  ;;  %v5963_v46 = vpop.f32.mrf.mxu3 }
 0x20b   :  { %7552 = vst [vmem:[#allocation25_spill] sm:$0xff] %v5940_v54 }
 0x20c   :  { %7553 = vst [vmem:[#allocation26_spill] sm:$0xff] %v5943_v39 }
 0x210   :  { %v829_v40 = vpop.f32.mrf.mxu0 }
 0x211   :  { %v908_v2 = vpop.f32.mrf.mxu1  ;;  %v5954_v53 = vadd.f32 %v829_v40, %v7554_v44 }
 0x212   :  { %v5957_v56 = vadd.f32 %v908_v2, %v7556_v15  ;;  %v4865_v2 = vld [vmem:[%s7473_s0 + $0x60] sm:$0xff]  ;;  %v5981_v54 = vpop.f32.mrf.mxu2  ;;  %v5983_v52 = vpop.f32.mrf.mxu3 }
 0x213   :  { %7555 = vst [vmem:[#allocation16_spill] sm:$0xff] %v5954_v53  ;;  %4202 = vmatmul.msk.bf16.gmra.mxu0 %vm196_vm2, %v1401_v19  ;;  %v1352_v40 = vrot.slane %v4865_v2, 4  ;;  %v7560_v2 = vld [vmem:[#allocation18_spill] sm:$0xff] }
 0x214   :  { %7557 = vst [vmem:[#allocation17_spill] sm:$0xff] %v5957_v56  ;;  %4216 = vmatmul.msk.bf16.gmra.mxu1 %vm196_vm2, %v1401_v19  ;;  %v1385_v56 = vsel %vm1368_vm5, %v1350_v47, %v1351_v22  ;;  %v4866_v47 = vld [vmem:[%s7473_s0 + $0x68] sm:$0xff] }
 0x215   :  { %v1384_v15 = vsel %vm1368_vm5, %v1351_v22, %v1352_v40  ;;  %v4867_v22 = vld [vmem:[%s7473_s0 + $0x70] sm:$0xff] }
 0x216   :  { %v1402_v53 = vpack.c.bf16 %v1384_v15, %v1385_v56  ;;  %v1353_v56 = vrot.slane %v4866_v47, 4 }
 0x218   :  { %v831_v48 = vpop.f32.mrf.mxu0  ;;  %v1383_v47 = vsel %vm1368_vm5, %v1352_v40, %v1353_v56 }
 0x219   :  { %v910_v27 = vpop.f32.mrf.mxu1  ;;  %v5972_v44 = vadd.f32 %v831_v48, %v5570_v5  ;;  %v7562_v5 = vld [vmem:[#allocation19_spill] sm:$0xff] }
 0x21a   :  { %v5975_v19 = vadd.f32 %v910_v27, %v5572_v8 }
 0x21b   :  { %7558 = vst [vmem:[#allocation27_spill] sm:$0xff] %v5972_v44  ;;  %v7575_v44 = vld [vmem:[#allocation24_spill] sm:$0xff] }
 0x21c   :  { %7559 = vst [vmem:[#allocation28_spill] sm:$0xff] %v5975_v19 }
 0x220   :  { %v834_v39 = vpop.f32.mrf.mxu0 }
 0x221   :  { %v913_v26 = vpop.f32.mrf.mxu1  ;;  %v5986_v60 = vadd.f32 %v834_v39, %v7560_v2  ;;  %v1354_v39 = vrot.slane %v4867_v22, 4  ;;  %v6005_v2 = vpop.f32.mrf.mxu2  ;;  %v4737_v22 = vld [vmem:[%s7474_s4 + $0x38] sm:$0xff] }
 0x222   :  { %v5989_v48 = vadd.f32 %v913_v26, %v7562_v5  ;;  %2125 = vmatpush.bf16.msra.mxu2 %v4737_v22  ;;  %v4868_v22 = vld [vmem:[%s7473_s0 + $0x78] sm:$0xff] }
 0x223   :  { %7561 = vst [vmem:[#allocation18_spill] sm:$0xff] %v5986_v60  ;;  %4203 = vmatmul.msk.bf16.gmra.mxu0 %vm196_vm2, %v1402_v53  ;;  %v1382_v5 = vsel %vm1368_vm5, %v1353_v56, %v1354_v39  ;;  %v4736_v60 = vld [vmem:[%s7474_s4 + $0x30] sm:$0xff] }
 0x224   :  { %7563 = vst [vmem:[#allocation19_spill] sm:$0xff] %v5989_v48  ;;  %4217 = vmatmul.msk.bf16.gmra.mxu1 %vm196_vm2, %v1402_v53  ;;  %v6007_v53 = vpop.f32.mrf.mxu3  ;;  %v1403_v48 = vpack.c.bf16 %v1382_v5, %v1383_v47  ;;  %v4735_v5 = vld [vmem:[%s7474_s4 + $0x28] sm:$0xff] }
 0x226   :  { %2126 = vmatpush.bf16.msra.mxu2 %v4736_v60 }
 0x228   :  { %v836_v8 = vpop.f32.mrf.mxu0 }
 0x229   :  { %v915_v27 = vpop.f32.mrf.mxu1  ;;  %v6000_v15 = vadd.f32 %v836_v8, %v5594_v41  ;;  %v6027_v40 = vpop.f32.mrf.mxu2 }
 0x22a   :  { %v6003_v26 = vadd.f32 %v915_v27, %v5596_v16  ;;  %v7566_v16 = vld [vmem:[#allocation20_spill] sm:$0xff]  ;;  %2127 = vmatpush.bf16.msra.mxu2 %v4735_v5  ;;  %v4733_v5 = vld [vmem:[%s7474_s4 + $0x18] sm:$0xff] }
 0x22b   :  { %7564 = vst [vmem:[#allocation29_spill] sm:$0xff] %v6000_v15 }
 0x22c   :  { %7565 = vst [vmem:[#allocation30_spill] sm:$0xff] %v6003_v26  ;;  %v7568_v26 = vld [vmem:[#allocation21_spill] sm:$0xff]  ;;  %v6029_v56 = vpop.f32.mrf.mxu3 }
 0x230   :  { %v839_v41 = vpop.f32.mrf.mxu0 }
 0x231   :  { %v918_v8 = vpop.f32.mrf.mxu1  ;;  %v6017_v27 = vadd.f32 %v839_v41, %v7566_v16  ;;  %v1355_v41 = vrot.slane %v4868_v22, 4  ;;  %v7571_v16 = vld [vmem:[#allocation22_spill] sm:$0xff] }
 0x232   :  { %v6020_v15 = vadd.f32 %v918_v8, %v7568_v26 }
 0x233   :  { %7567 = vst [vmem:[#allocation20_spill] sm:$0xff] %v6017_v27  ;;  %4204 = vmatmul.msk.bf16.gmra.mxu0 %vm196_vm2, %v1403_v48  ;;  %v4734_v27 = vld [vmem:[%s7474_s4 + $0x20] sm:$0xff]  ;;  %v1381_v22 = vsel %vm1368_vm5, %v1354_v39, %v1355_v41  ;;  %v4732_v39 = vld [vmem:[%s7474_s4 + $0x10] sm:$0xff] }
 0x234   :  { %7569 = vst [vmem:[#allocation21_spill] sm:$0xff] %v6020_v15  ;;  %4218 = vmatmul.msk.bf16.gmra.mxu1 %vm196_vm2, %v1403_v48  ;;  %v4869_v48 = vld [vmem:[%s7473_s0 + $0x80] sm:$0xff]  ;;  %2128 = vmatpush.bf16.msra.mxu2 %v4734_v27 }
 0x235   :  { %v1356_v60 = vrot.slane %v4869_v48, 4 }
 0x237   :  { %v1380_v19 = vsel %vm1368_vm5, %v1355_v41, %v1356_v60 }
 0x238   :  { %v841_v47 = vpop.f32.mrf.mxu0  ;;  %2129 = vmatpush.bf16.msra.mxu2 %v4733_v5 }
 0x239   :  { %v920_v26 = vpop.f32.mrf.mxu1  ;;  %v6041_v8 = vadd.f32 %v841_v47, %v5618_v49  ;;  %v6056_v49 = vpop.f32.mrf.mxu2 }
 0x23a   :  { %v6044_v15 = vadd.f32 %v920_v26, %v7571_v16  ;;  %v6058_v47 = vpop.f32.mrf.mxu3  ;;  %v1404_v26 = vpack.c.bf16 %v1380_v19, %v1381_v22  ;;  %v4731_v19 = vld [vmem:[%s7474_s4 + $0x8] sm:$0xff]  ;;  %v4871_v22 = vld [vmem:[%s7473_s0 + $0x90] sm:$0xff] }
 0x23b   :  { %7570 = vst [vmem:[#allocation31_spill] sm:$0xff] %v6041_v8  ;;  %v1358_v5 = vrot.slane %v4871_v22, 4 }
 0x23c   :  { %7572 = vst [vmem:[#allocation22_spill] sm:$0xff] %v6044_v15  ;;  %v7573_v15 = vld [vmem:[#allocation23_spill] sm:$0xff]  ;;  %2130 = vmatpush.bf16.msra.mxu2 %v4732_v39 }
 0x240   :  { %v844_v48 = vpop.f32.mrf.mxu0  ;;  %2131 = vmatpush.bf16.msra.mxu2 %v4731_v19 }
 0x241   :  { %v923_v16 = vpop.f32.mrf.mxu1  ;;  %v6061_v8 = vadd.f32 %v844_v48, %v7573_v15  ;;  %v6080_v48 = vpop.f32.mrf.mxu2 }
 0x242   :  { %v6064_v30 = vadd.f32 %v923_v16, %v7575_v44  ;;  %v4870_v44 = vld [vmem:[%s7473_s0 + $0x88] sm:$0xff] }
 0x243   :  { %7574 = vst [vmem:[#allocation23_spill] sm:$0xff] %v6061_v8  ;;  %4205 = vmatmul.msk.bf16.gmra.mxu0 %vm196_vm2, %v1404_v26  ;;  %v1357_v15 = vrot.slane %v4870_v44, 4  ;;  %v4730_v44 = vld [vmem:[%s7474_s4] sm:$0xff] }
 0x244   :  { %7576 = vst [vmem:[#allocation24_spill] sm:$0xff] %v6064_v30  ;;  %4219 = vmatmul.msk.bf16.gmra.mxu1 %vm196_vm2, %v1404_v26  ;;  %v6082_v26 = vpop.f32.mrf.mxu3  ;;  %v4738_v30 = vld [vmem:[%s7474_s4 + $0x40] sm:$0xff]  ;;  %2132 = vmatpush.bf16.msra.mxu2 %v4730_v44 }
 0x245   :  { %v1378_v19 = vsel %vm1368_vm5, %v1357_v15, %v1358_v5  ;;  %v1379_v22 = vsel %vm1368_vm5, %v1356_v60, %v1357_v15  ;;  %2211 = vmatpush.bf16.msra.mxu3 %v4738_v30  ;;  %v4872_v30 = vld [vmem:[%s7473_s0 + $0x98] sm:$0xff]  ;;  %v4873_v44 = vld [vmem:[%s7473_s0 + $0xa0] sm:$0xff] }
 0x246   :  { %v1359_v15 = vrot.slane %v4872_v30, 4 }
 0x248   :  { %v846_v27 = vpop.f32.mrf.mxu0  ;;  %v1377_v30 = vsel %vm1368_vm5, %v1358_v5, %v1359_v15 }
 0x249   :  { %v925_v41 = vpop.f32.mrf.mxu1  ;;  %v6085_v16 = vadd.f32 %v846_v27, %v5642_v57  ;;  %v1405_v57 = vpack.c.bf16 %v1378_v19, %v1379_v22 }
 0x24a   :  { %v6088_v39 = vadd.f32 %v925_v41, %v5644_v37  ;;  %v1696_v37 = vld [vmem:[%s7475_s2] sm:$0x3] }
 0x24b   :  { %7577 = vst [vmem:[#allocation32_spill] sm:$0xff] %v6085_v16  ;;  %v6108_v28 = vperm.slane %v1696_v37, 0  ;;  %v6111_v60 = vperm.slane %v1696_v37, 1 }
 0x24c   :  { %7578 = vst [vmem:[#allocation33_spill] sm:$0xff] %v6088_v39  ;;  %v6103_v39 = vpop.f32.mrf.mxu2  ;;  %v6105_v16 = vpop.f32.mrf.mxu3 }
 0x24d   :  { %7579 = vst [vmem:[#allocation34_spill] sm:$0xff] %v6103_v39 }
 0x24e   :  { %7580 = vst [vmem:[#allocation35_spill] sm:$0xff] %v6105_v16 }
 0x250   :  { %v1491_v27 = vpop.f32.mrf.mxu0 }
 0x251   :  { %v1570_v41 = vpop.f32.mrf.mxu1  ;;  %v1640_v8 = vadd.f32 %v1491_v27, %v5652_v10  ;;  %v1360_v10 = vrot.slane %v4873_v44, 4 }
 0x252   :  { %v1641_v12 = vadd.f32 %v1570_v41, %v5654_v50 }
 0x253   :  { %4206 = vmatmul.msk.bf16.gmra.mxu0 %vm196_vm2, %v1405_v57  ;;  %v1702_v19 = vadd.f32 %v6108_v28, %v1640_v8  ;;  %v1376_v41 = vsel %vm1368_vm5, %v1359_v15, %v1360_v10 }
 0x254   :  { %4220 = vmatmul.msk.bf16.gmra.mxu1 %vm196_vm2, %v1405_v57  ;;  %v1703_v50 = vadd.f32 %v6111_v60, %v1641_v12  ;;  %v6131_v35 = vpop.f32.mrf.mxu2  ;;  %v6133_v12 = vpop.f32.mrf.mxu3 }
 0x255   :  { %v1758_v25 = vmax.f32 %v1702_v19, 0.0  ;;  %7581 = vst [vmem:[#allocation36_spill] sm:$0xff] %v6131_v35 }
 0x256   :  { %v1759_v9 = vmax.f32 %v1703_v50, 0.0  ;;  %7582 = vst [vmem:[#allocation37_spill] sm:$0xff] %v6133_v12 }
 0x258   :  { %v1493_v22 = vpop.f32.mrf.mxu0 }
 0x259   :  { %v1572_v27 = vpop.f32.mrf.mxu1  ;;  %v1642_v37 = vadd.f32 %v1493_v22, %v5670_v7  ;;  %v1406_v22 = vpack.c.bf16 %v1376_v41, %v1377_v30 }
 0x25a   :  { %v1643_v57 = vadd.f32 %v1572_v27, %v5672_v51  ;;  %v6135_v51 = vrot.slane %v1758_v25, 1  ;;  %v6137_v27 = vrot.slane %v1759_v9, 1 }
 0x25b   :  { %v1704_v44 = vadd.f32 %v6108_v28, %v1642_v37 }
 0x25c   :  { %v1705_v8 = vadd.f32 %v6111_v60, %v1643_v57  ;;  %7583 = vst [vmem:[#allocation38_spill] sm:$0xff] %v6135_v51  ;;  %v6151_v35 = vpop.f32.mrf.mxu2  ;;  %v6153_v39 = vpop.f32.mrf.mxu3 }
 0x25d   :  { %v1760_v24 = vmax.f32 %v1704_v44, 0.0  ;;  %7584 = vst [vmem:[#allocation39_spill] sm:$0xff] %v6137_v27 }
 0x25e   :  { %v1761_v7 = vmax.f32 %v1705_v8, 0.0  ;;  %7585 = vst [vmem:[#allocation40_spill] sm:$0xff] %v6151_v35 }
 0x25f   :  { %v1816_v16 = vrot.slane %v1760_v24, 1  ;;  %7586 = vst [vmem:[#allocation41_spill] sm:$0xff] %v6153_v39 }
 0x260   :  { %v1817_v11 = vrot.slane %v1761_v7, 1  ;;  %v1496_v5 = vpop.f32.mrf.mxu0 }
 0x261   :  { %v1575_v15 = vpop.f32.mrf.mxu1  ;;  %v1922_v19 = vsel %vm130_vm1, %v6135_v51, %v1816_v16  ;;  %v1644_v37 = vadd.f32 %v1496_v5, %v5680_v29 }
 0x262   :  { %v1923_v50 = vsel %vm130_vm1, %v6137_v27, %v1817_v11  ;;  %v1645_v57 = vadd.f32 %v1575_v15, %v5682_v55  ;;  %v1926_v41 = vmax.f32 %v1758_v25, %v1922_v19  ;;  %v6161_v15 = vld [vmem:[%s7473_s0 + $0xb0] sm:$0xff] }
 0x263   :  { %v1927_v30 = vmax.f32 %v1759_v9, %v1923_v50  ;;  %v1706_v44 = vadd.f32 %v6108_v28, %v1644_v37  ;;  %4207 = vmatmul.msk.bf16.gmra.mxu0 %vm196_vm2, %v1406_v22  ;;  %v4874_v9 = vld [vmem:[%s7473_s0 + $0xa8] sm:$0xff] }
 0x264   :  { %v1707_v8 = vadd.f32 %v6111_v60, %v1645_v57  ;;  %4221 = vmatmul.msk.bf16.gmra.mxu1 %vm196_vm2, %v1406_v22  ;;  %v1361_v25 = vrot.slane %v4874_v9, 4 }
 0x265   :  { %v1762_v12 = vmax.f32 %v1706_v44, 0.0 }
 0x266   :  { %v1763_v51 = vmax.f32 %v1707_v8, 0.0 }
 0x267   :  { %v1818_v27 = vrot.slane %v1762_v12, 1 }
 0x268   :  { %v1819_v29 = vrot.slane %v1763_v51, 1  ;;  %v1498_v5 = vpop.f32.mrf.mxu0 }
 0x269   :  { %v1577_v55 = vpop.f32.mrf.mxu1  ;;  %v1920_v19 = vsel %vm130_vm1, %v1816_v16, %v1818_v27  ;;  %v1646_v37 = vadd.f32 %v1498_v5, %v5698_v42  ;;  %v7587_v16 = vrot.slane %v6161_v15, 4  ;;  %v1375_v42 = vsel %vm1368_vm5, %v1360_v10, %v1361_v25  ;;  %v6191_v10 = vpop.f32.mrf.mxu3 }
 0x26a   :  { %v1921_v50 = vsel %vm130_vm1, %v1817_v11, %v1819_v29  ;;  %v1647_v57 = vadd.f32 %v1577_v55, %v5700_v13  ;;  %v1928_v44 = vmax.f32 %v1760_v24, %v1920_v19 }
 0x26b   :  { %v1929_v8 = vmax.f32 %v1761_v7, %v1921_v50  ;;  %v1708_v9 = vadd.f32 %v6108_v28, %v1646_v37  ;;  %v1374_v11 = vsel %vm1368_vm5, %v1361_v25, %v7587_v16  ;;  %v1292_v7 = vadd.f32 %v5927_v31, %v5703_v59  ;;  %v6189_v37 = vpop.f32.mrf.mxu2 }
 0x26c   :  { %v1709_v39 = vadd.f32 %v6111_v60, %v1647_v57  ;;  %v6174_v22 = vpack.c.bf16 %v1928_v44, %v1926_v41  ;;  %v1293_v41 = vadd.f32 %v5929_v23, %v5706_v58  ;;  %v1407_v55 = vpack.c.bf16 %v1374_v11, %v1375_v42  ;;  %v4745_v11 = vld [vmem:[%s7476_s5 + $0x30] sm:$0xff] }
 0x26d   :  { %v6172_v35 = vpack.c.bf16 %v1929_v8, %v1927_v30  ;;  %v1764_v13 = vmax.f32 %v1708_v9, 0.0  ;;  %v4746_v8 = vld [vmem:[%s7476_s5 + $0x38] sm:$0xff] }
 0x26e   :  { %v1765_v24 = vmax.f32 %v1709_v39, 0.0  ;;  %2133 = vmatmul.bf16.vlgmr.msra.gmra.mxu2 %v6174_v22  ;;  %2355 = vmatpush.bf16.msrb.mxu0 %v4746_v8 }
 0x26f   :  { %4262 = vmatmul.msk.bf16.vlgmr.msra.gmra.mxu3 %vm2082_vm6, %v6172_v35  ;;  %v1820_v30 = vrot.slane %v1764_v13, 1 }
 0x270   :  { %v1821_v5 = vrot.slane %v1765_v24, 1  ;;  %v1501_v19 = vpop.f32.mrf.mxu0 }
 0x271   :  { %v1580_v50 = vpop.f32.mrf.mxu1  ;;  %v1648_v39 = vadd.f32 %v1501_v19, %v1292_v7  ;;  %v1918_v59 = vsel %vm130_vm1, %v1818_v27, %v1820_v30  ;;  %v1294_v27 = vadd.f32 %v5949_v3, %v5717_v61  ;;  %v6217_v61 = vld [vmem:[%s7473_s0 + $0xc0] sm:$0xff] }
 0x272   :  { %v1649_v25 = vadd.f32 %v1580_v50, %v1293_v41  ;;  %v1919_v31 = vsel %vm130_vm1, %v1819_v29, %v1821_v5  ;;  %v1930_v57 = vmax.f32 %v1762_v12, %v1918_v59  ;;  %v1295_v12 = vadd.f32 %v5951_v36, %v5720_v20  ;;  %v4876_v41 = vld [vmem:[%s7473_s0 + $0xb8] sm:$0xff]  ;;  %2356 = vmatpush.bf16.msrb.mxu0 %v4745_v11 }
 0x273   :  { %v1931_v44 = vmax.f32 %v1763_v51, %v1919_v31  ;;  %v1710_v58 = vadd.f32 %v6108_v28, %v1648_v39  ;;  %4208 = vmatmul.msk.bf16.gmra.mxu0 %vm196_vm2, %v1407_v55  ;;  %v1364_v20 = vrot.slane %v6217_v61, 4  ;;  %v6224_v59 = vpop.f32.mrf.mxu2  ;;  %v6226_v31 = vpop.f32.mrf.mxu3 }
 0x274   :  { %v1711_v23 = vadd.f32 %v6111_v60, %v1649_v25  ;;  %4222 = vmatmul.msk.bf16.gmra.mxu1 %vm196_vm2, %v1407_v55  ;;  %v1363_v55 = vrot.slane %v4876_v41, 4  ;;  %v4747_v41 = vld [vmem:[%s7476_s5 + $0x40] sm:$0xff] }
 0x275   :  { %v1766_v9 = vmax.f32 %v1710_v58, 0.0  ;;  %2441 = vmatpush.bf16.msrb.mxu1 %v4747_v41 }
 0x276   :  { %v1767_v16 = vmax.f32 %v1711_v23, 0.0 }
 0x277   :  { %v1822_v51 = vrot.slane %v1766_v9, 1 }
 0x278   :  { %v1823_v29 = vrot.slane %v1767_v16, 1  ;;  %v1503_v42 = vpop.f32.mrf.mxu0 }
 0x279   :  { %v1582_v7 = vpop.f32.mrf.mxu1  ;;  %v1650_v36 = vadd.f32 %v1503_v42, %v1294_v27  ;;  %v1916_v50 = vsel %vm130_vm1, %v1820_v30, %v1822_v51  ;;  %v1296_v42 = vadd.f32 %v5961_v0, %v5745_v4 }
 0x27a   :  { %v1917_v3 = vsel %vm130_vm1, %v1821_v5, %v1823_v29  ;;  %v1651_v19 = vadd.f32 %v1582_v7, %v1295_v12  ;;  %v1932_v39 = vmax.f32 %v1764_v13, %v1916_v50  ;;  %v4744_v5 = vld [vmem:[%s7476_s5 + $0x28] sm:$0xff]  ;;  %v1372_v13 = vsel %vm1368_vm5, %v1363_v55, %v1364_v20 }
 0x27b   :  { %v1933_v25 = vmax.f32 %v1765_v24, %v1917_v3  ;;  %v1712_v58 = vadd.f32 %v6108_v28, %v1650_v36  ;;  %v7588_v24 = vrot.slane %v6161_v15, 4  ;;  %2357 = vmatpush.bf16.msrb.mxu0 %v4744_v5  ;;  %v1299_v5 = vadd.f32 %v5983_v52, %v5760_v63 }
 0x27c   :  { %v1713_v23 = vadd.f32 %v6111_v60, %v1651_v19  ;;  %v6233_v8 = vpack.c.bf16 %v1932_v39, %v1930_v57  ;;  %v1297_v57 = vadd.f32 %v5963_v46, %v5748_v21 }
 0x27d   :  { %v6235_v27 = vpack.c.bf16 %v1933_v25, %v1931_v44  ;;  %v1373_v30 = vsel %vm1368_vm5, %v7588_v24, %v1363_v55  ;;  %v1768_v12 = vmax.f32 %v1712_v58, 0.0  ;;  %v4743_v55 = vld [vmem:[%s7476_s5 + $0x20] sm:$0xff]  ;;  %v4742_v58 = vld [vmem:[%s7476_s5 + $0x18] sm:$0xff] }
 0x27e   :  { %v1769_v11 = vmax.f32 %v1713_v23, 0.0  ;;  %2138 = vmatmul.bf16.gmra.mxu2 %v6233_v8  ;;  %v1408_v15 = vpack.c.bf16 %v1372_v13, %v1373_v30  ;;  %v6271_v23 = vpop.f32.mrf.mxu3  ;;  %v4741_v30 = vld [vmem:[%s7476_s5 + $0x10] sm:$0xff] }
 0x27f   :  { %4263 = vmatmul.msk.bf16.gmra.mxu3 %vm2082_vm6, %v6235_v27  ;;  %v1824_v44 = vrot.slane %v1768_v12, 1  ;;  %2358 = vmatpush.bf16.msrb.mxu0 %v4743_v55 }
 0x280   :  { %v1825_v7 = vrot.slane %v1769_v11, 1  ;;  %v1506_v4 = vpop.f32.mrf.mxu0 }
 0x281   :  { %v1585_v0 = vpop.f32.mrf.mxu1  ;;  %v1652_v3 = vadd.f32 %v1506_v4, %v1296_v42  ;;  %v1914_v19 = vsel %vm130_vm1, %v1822_v51, %v1824_v44  ;;  %v6269_v51 = vpop.f32.mrf.mxu2 }
 0x282   :  { %v1653_v36 = vadd.f32 %v1585_v0, %v1297_v57  ;;  %v1915_v21 = vsel %vm130_vm1, %v1823_v29, %v1825_v7  ;;  %v1934_v46 = vmax.f32 %v1766_v9, %v1914_v19 }
 0x283   :  { %v1935_v50 = vmax.f32 %v1767_v16, %v1915_v21  ;;  %v1714_v39 = vadd.f32 %v6108_v28, %v1652_v3  ;;  %4209 = vmatmul.msk.bf16.gmra.mxu0 %vm196_vm2, %v1408_v15  ;;  %v1298_v16 = vadd.f32 %v5981_v54, %v5757_v62  ;;  %v6286_v62 = vld [vmem:[%s7473_s0 + $0xd0] sm:$0xff]  ;;  %v4740_v21 = vld [vmem:[%s7476_s5 + $0x8] sm:$0xff] }
 0x284   :  { %v1715_v25 = vadd.f32 %v6111_v60, %v1653_v36  ;;  %4223 = vmatmul.msk.bf16.gmra.mxu1 %vm196_vm2, %v1408_v15  ;;  %2359 = vmatpush.bf16.msrb.mxu0 %v4742_v58  ;;  %v4878_v15 = vld [vmem:[%s7473_s0 + $0xc8] sm:$0xff]  ;;  %v1366_v63 = vrot.slane %v6286_v62, 4  ;;  %v1300_v58 = vadd.f32 %v6005_v2, %v5785_v6  ;;  %v4739_v6 = vld [vmem:[%s7476_s5] sm:$0xff]  ;;  %v1305_v62 = vadd.f32 %v6058_v47, %v5818_v34 }
 0x285   :  { %v1770_v29 = vmax.f32 %v1714_v39, 0.0  ;;  %v1365_v41 = vrot.slane %v4878_v15, 4 }
 0x286   :  { %v1771_v9 = vmax.f32 %v1715_v25, 0.0 }
 0x287   :  { %v1826_v13 = vrot.slane %v1770_v29, 1 }
 0x288   :  { %v1827_v24 = vrot.slane %v1771_v9, 1  ;;  %v1508_v42 = vpop.f32.mrf.mxu0  ;;  %2360 = vmatpush.bf16.msrb.mxu0 %v4741_v30 }
 0x289   :  { %v1587_v57 = vpop.f32.mrf.mxu1  ;;  %v1654_v54 = vadd.f32 %v1508_v42, %v1298_v16  ;;  %v1912_v4 = vsel %vm130_vm1, %v1824_v44, %v1826_v13  ;;  %v1370_v44 = vsel %vm1368_vm5, %v1365_v41, %v1366_v63  ;;  %v6319_v16 = vpop.f32.mrf.mxu3 }
 0x28a   :  { %v1913_v52 = vsel %vm130_vm1, %v1825_v7, %v1827_v24  ;;  %v1655_v55 = vadd.f32 %v1587_v57, %v1299_v5  ;;  %v1936_v0 = vmax.f32 %v1768_v12, %v1912_v4  ;;  %v1371_v12 = vsel %vm1368_vm5, %v1364_v20, %v1365_v41 }
 0x28b   :  { %v1937_v3 = vmax.f32 %v1769_v11, %v1913_v52  ;;  %v1716_v36 = vadd.f32 %v6108_v28, %v1654_v54  ;;  %v1409_v20 = vpack.c.bf16 %v1370_v44, %v1371_v12 }
 0x28c   :  { %v1717_v19 = vadd.f32 %v6111_v60, %v1655_v55  ;;  %v6298_v39 = vpack.c.bf16 %v1936_v0, %v1934_v46  ;;  %v1301_v46 = vadd.f32 %v6007_v53, %v5788_v38  ;;  %2361 = vmatpush.bf16.msrb.mxu0 %v4740_v21  ;;  %v1302_v0 = vadd.f32 %v6027_v40, %v5796_v43 }
 0x28d   :  { %v6300_v25 = vpack.c.bf16 %v1937_v3, %v1935_v50  ;;  %v1772_v11 = vmax.f32 %v1716_v36, 0.0  ;;  %v6317_v50 = vpop.f32.mrf.mxu2  ;;  %v4880_v36 = vld [vmem:[%s7473_s0 + $0xd8] sm:$0xff] }
 0x28e   :  { %v1773_v7 = vmax.f32 %v1717_v19, 0.0  ;;  %2143 = vmatmul.bf16.gmra.mxu2 %v6298_v39  ;;  %v1367_v19 = vrot.slane %v4880_v36, 4 }
 0x28f   :  { %4264 = vmatmul.msk.bf16.gmra.mxu3 %vm2082_vm6, %v6300_v25  ;;  %v1828_v61 = vrot.slane %v1772_v11, 1 }
 0x290   :  { %v1829_v5 = vrot.slane %v1773_v7, 1  ;;  %v1511_v30 = vpop.f32.mrf.mxu0  ;;  %2362 = vmatpush.bf16.msrb.mxu0 %v4739_v6  ;;  %v7589_v6 = vrot.slane %v5827_v17, 4 }
 0x291   :  { %v1590_v42 = vpop.f32.mrf.mxu1  ;;  %v1656_v2 = vadd.f32 %v1511_v30, %v1300_v58  ;;  %v1910_v15 = vsel %vm130_vm1, %v1826_v13, %v1828_v61  ;;  %v1303_v13 = vadd.f32 %v6029_v56, %v5799_v45  ;;  %v6341_v44 = vpop.f32.mrf.mxu3 }
 0x292   :  { %v1657_v57 = vadd.f32 %v1590_v42, %v1301_v46  ;;  %v1911_v38 = vsel %vm130_vm1, %v1827_v24, %v1829_v5  ;;  %v1938_v53 = vmax.f32 %v1770_v29, %v1910_v15 }
 0x293   :  { %v1939_v41 = vmax.f32 %v1771_v9, %v1911_v38  ;;  %v1718_v52 = vadd.f32 %v6108_v28, %v1656_v2  ;;  %4210 = vmatmul.msk.bf16.gmra.mxu0 %vm196_vm2, %v1409_v20  ;;  %v1304_v2 = vadd.f32 %v6056_v49, %v5815_v32 }
 0x294   :  { %v1719_v54 = vadd.f32 %v6111_v60, %v1657_v57  ;;  %4224 = vmatmul.msk.bf16.gmra.mxu1 %vm196_vm2, %v1409_v20 }
 0x295   :  { %v1774_v55 = vmax.f32 %v1718_v52, 0.0  ;;  %v6339_v21 = vpop.f32.mrf.mxu2 }
 0x296   :  { %v1775_v4 = vmax.f32 %v1719_v54, 0.0 }
 0x297   :  { %v1830_v24 = vrot.slane %v1774_v55, 1 }
 0x298   :  { %v1831_v29 = vrot.slane %v1775_v4, 1  ;;  %v1513_v9 = vpop.f32.mrf.mxu0 }
 0x299   :  { %v1592_v3 = vpop.f32.mrf.mxu1  ;;  %v1658_v43 = vadd.f32 %v1513_v9, %v1302_v0  ;;  %v1908_v45 = vsel %vm130_vm1, %v1828_v61, %v1830_v24  ;;  %v1396_v61 = vsel %vm1368_vm5, %v1367_v19, %v7589_v6 }
 0x29a   :  { %v1909_v12 = vsel %vm130_vm1, %v1829_v5, %v1831_v29  ;;  %v1659_v40 = vadd.f32 %v1592_v3, %v1303_v13  ;;  %v1940_v56 = vmax.f32 %v1772_v11, %v1908_v45  ;;  %v1369_v5 = vsel %vm1368_vm5, %v1366_v63, %v1367_v19  ;;  %v6374_v13 = vpop.f32.mrf.mxu3 }
 0x29b   :  { %v1941_v58 = vmax.f32 %v1773_v7, %v1909_v12  ;;  %v1720_v46 = vadd.f32 %v6108_v28, %v1658_v43  ;;  %v1410_v15 = vpack.c.bf16 %v1396_v61, %v1369_v5  ;;  %v7590_v61 = vld [vmem:[#allocation34_spill] sm:$0xff] }
 0x29c   :  { %v1721_v20 = vadd.f32 %v6111_v60, %v1659_v40  ;;  %v6349_v30 = vpack.c.bf16 %v1940_v56, %v1938_v53 }
 0x29d   :  { %v6351_v42 = vpack.c.bf16 %v1941_v58, %v1939_v41  ;;  %v1776_v11 = vmax.f32 %v1720_v46, 0.0  ;;  %v6372_v0 = vpop.f32.mrf.mxu2 }
 0x29e   :  { %v1777_v7 = vmax.f32 %v1721_v20, 0.0  ;;  %2148 = vmatmul.bf16.gmra.mxu2 %v6349_v30 }
 0x29f   :  { %4265 = vmatmul.msk.bf16.gmra.mxu3 %vm2082_vm6, %v6351_v42  ;;  %v1832_v57 = vrot.slane %v1776_v11, 1 }
 0x2a0   :  { %v1833_v63 = vrot.slane %v1777_v7, 1  ;;  %v1516_v17 = vpop.f32.mrf.mxu0 }
 0x2a1   :  { %v1595_v38 = vpop.f32.mrf.mxu1  ;;  %v1660_v53 = vadd.f32 %v1516_v17, %v1304_v2  ;;  %v1906_v52 = vsel %vm130_vm1, %v1830_v24, %v1832_v57  ;;  %v1306_v24 = vadd.f32 %v6080_v48, %v5837_v14  ;;  %v7592_v2 = vld [vmem:[#allocation35_spill] sm:$0xff] }
 0x2a2   :  { %v1661_v41 = vadd.f32 %v1595_v38, %v1305_v62  ;;  %v1907_v32 = vsel %vm130_vm1, %v1831_v29, %v1833_v63  ;;  %v1942_v49 = vmax.f32 %v1774_v55, %v1906_v52  ;;  %v1307_v55 = vadd.f32 %v6082_v26, %v5840_v1  ;;  %v6396_v20 = vpop.f32.mrf.mxu3 }
 0x2a3   :  { %v1943_v54 = vmax.f32 %v1775_v4, %v1907_v32  ;;  %v1722_v34 = vadd.f32 %v6108_v28, %v1660_v53  ;;  %4211 = vmatmul.msk.bf16.gmra.mxu0 %vm196_vm2, %v1410_v15 }
 0x2a4   :  { %v1723_v47 = vadd.f32 %v6111_v60, %v1661_v41  ;;  %4225 = vmatmul.msk.bf16.gmra.mxu1 %vm196_vm2, %v1410_v15 }
 0x2a5   :  { %v1778_v9 = vmax.f32 %v1722_v34, 0.0  ;;  %v6394_v26 = vpop.f32.mrf.mxu2 }
 0x2a6   :  { %v1779_v3 = vmax.f32 %v1723_v47, 0.0 }
 0x2a7   :  { %v1834_v4 = vrot.slane %v1778_v9, 1 }
 0x2a8   :  { %v1835_v29 = vrot.slane %v1779_v3, 1  ;;  %v1518_v36 = vpop.f32.mrf.mxu0 }
 0x2a9   :  { %v1597_v19 = vpop.f32.mrf.mxu1  ;;  %v1662_v43 = vadd.f32 %v1518_v36, %v1306_v24  ;;  %v1904_v45 = vsel %vm130_vm1, %v1832_v57, %v1834_v4  ;;  %v7593_v24 = vld [vmem:[#allocation4_spill] sm:$0xff] }
 0x2aa   :  { %v1905_v12 = vsel %vm130_vm1, %v1833_v63, %v1835_v29  ;;  %v1663_v40 = vadd.f32 %v1597_v19, %v1307_v55  ;;  %v1944_v56 = vmax.f32 %v1776_v11, %v1904_v45  ;;  %v1308_v11 = vadd.f32 %v7590_v61, %v5850_v18  ;;  %v7594_v55 = vld [vmem:[#allocation36_spill] sm:$0xff]  ;;  %v7596_v19 = vld [vmem:[#allocation37_spill] sm:$0xff] }
 0x2ab   :  { %v1945_v58 = vmax.f32 %v1777_v7, %v1905_v12  ;;  %v1724_v46 = vadd.f32 %v6108_v28, %v1662_v43  ;;  %v7591_v7 = vld [vmem:[#allocation3_spill] sm:$0xff]  ;;  %v1310_v36 = vadd.f32 %v7594_v55, %v7593_v24 }
 0x2ac   :  { %v1725_v14 = vadd.f32 %v6111_v60, %v1663_v40  ;;  %v6390_v48 = vpack.c.bf16 %v1944_v56, %v1942_v49  ;;  %v1309_v62 = vadd.f32 %v7592_v2, %v7591_v7 }
 0x2ad   :  { %v6392_v1 = vpack.c.bf16 %v1945_v58, %v1943_v54  ;;  %v1780_v5 = vmax.f32 %v1724_v46, 0.0 }
 0x2ae   :  { %v1781_v6 = vmax.f32 %v1725_v14, 0.0  ;;  %2153 = vmatmul.bf16.gmra.mxu2 %v6390_v48 }
 0x2af   :  { %4266 = vmatmul.msk.bf16.gmra.mxu3 %vm2082_vm6, %v6392_v1  ;;  %v1836_v57 = vrot.slane %v1780_v5, 1 }
 0x2b0   :  { %v1837_v63 = vrot.slane %v1781_v6, 1  ;;  %v1521_v15 = vpop.f32.mrf.mxu0 }
 0x2b1   :  { %v1600_v17 = vpop.f32.mrf.mxu1  ;;  %v1664_v38 = vadd.f32 %v1521_v15, %v1308_v11  ;;  %v1902_v41 = vsel %vm130_vm1, %v1834_v4, %v1836_v57  ;;  %v7595_v4 = vld [vmem:[#allocation5_spill] sm:$0xff] }
 0x2b2   :  { %v1665_v53 = vadd.f32 %v1600_v17, %v1309_v62  ;;  %v1903_v52 = vsel %vm130_vm1, %v1835_v29, %v1837_v63  ;;  %v1946_v32 = vmax.f32 %v1778_v9, %v1902_v41  ;;  %v1311_v12 = vadd.f32 %v7596_v19, %v7595_v4  ;;  %v6418_v29 = vpop.f32.mrf.mxu2  ;;  %v6420_v9 = vpop.f32.mrf.mxu3  ;;  %v7598_v17 = vld [vmem:[#allocation40_spill] sm:$0xff] }
 0x2b3   :  { %v1947_v49 = vmax.f32 %v1779_v3, %v1903_v52  ;;  %v1726_v54 = vadd.f32 %v6108_v28, %v1664_v38  ;;  %2363 = vmatmul.bf16.vlgmr.msrb.gmra.mxu0 %v6174_v22 }
 0x2b4   :  { %v1727_v18 = vadd.f32 %v6111_v60, %v1665_v53  ;;  %4312 = vmatmul.msk.bf16.vlgmr.msrb.gmra.mxu1 %vm2082_vm6, %v6172_v35 }
 0x2b5   :  { %v1782_v34 = vmax.f32 %v1726_v54, 0.0 }
 0x2b6   :  { %v1783_v47 = vmax.f32 %v1727_v18, 0.0 }
 0x2b7   :  { %v1838_v3 = vrot.slane %v1782_v34, 1 }
 0x2b8   :  { %v1839_v43 = vrot.slane %v1783_v47, 1  ;;  %v1523_v40 = vpop.f32.mrf.mxu0 }
 0x2b9   :  { %v1602_v45 = vpop.f32.mrf.mxu1  ;;  %v1666_v35 = vadd.f32 %v1523_v40, %v1310_v36  ;;  %v1900_v58 = vsel %vm130_vm1, %v1836_v57, %v1838_v3 }
 0x2ba   :  { %v1901_v22 = vsel %vm130_vm1, %v1837_v63, %v1839_v43  ;;  %v1667_v56 = vadd.f32 %v1602_v45, %v1311_v12  ;;  %v1948_v46 = vmax.f32 %v1780_v5, %v1900_v58  ;;  %v7597_v63 = vld [vmem:[#allocation6_spill] sm:$0xff]  ;;  %v7599_v5 = vld [vmem:[#allocation7_spill] sm:$0xff]  ;;  %v6439_v54 = vpop.f32.mrf.mxu2 }
 0x2bb   :  { %v1949_v14 = vmax.f32 %v1781_v6, %v1901_v22  ;;  %v1728_v61 = vadd.f32 %v6108_v28, %v1666_v35  ;;  %v1312_v57 = vadd.f32 %v7598_v17, %v7597_v63  ;;  %v7600_v6 = vld [vmem:[#allocation41_spill] sm:$0xff]  ;;  %v7601_v35 = vld [vmem:[#allocation8_spill] sm:$0xff] }
 0x2bc   :  { %v1729_v11 = vadd.f32 %v6111_v60, %v1667_v56  ;;  %v6428_v7 = vpack.c.bf16 %v1948_v46, %v1946_v32  ;;  %v1313_v38 = vadd.f32 %v7600_v6, %v7599_v5  ;;  %v1314_v56 = vadd.f32 %v6189_v37, %v7601_v35 }
 0x2bd   :  { %v6430_v2 = vpack.c.bf16 %v1949_v14, %v1947_v49  ;;  %v1784_v62 = vmax.f32 %v1728_v61, 0.0  ;;  %v6441_v49 = vpop.f32.mrf.mxu3 }
 0x2be   :  { %v1785_v15 = vmax.f32 %v1729_v11, 0.0  ;;  %2158 = vmatmul.bf16.gmra.mxu2 %v6428_v7 }
 0x2bf   :  { %4267 = vmatmul.msk.bf16.gmra.mxu3 %vm2082_vm6, %v6430_v2  ;;  %v1840_v53 = vrot.slane %v1784_v62, 1 }
 0x2c0   :  { %v1841_v41 = vrot.slane %v1785_v15, 1  ;;  %v1526_v52 = vpop.f32.mrf.mxu0 }
 0x2c1   :  { %v1605_v32 = vpop.f32.mrf.mxu1  ;;  %v1668_v18 = vadd.f32 %v1526_v52, %v1312_v57  ;;  %v1898_v55 = vsel %vm130_vm1, %v1838_v3, %v1840_v53  ;;  %v7602_v3 = vld [vmem:[#allocation9_spill] sm:$0xff] }
 0x2c2   :  { %v1669_v24 = vadd.f32 %v1605_v32, %v1313_v38  ;;  %v1899_v36 = vsel %vm130_vm1, %v1839_v43, %v1841_v41  ;;  %v1950_v4 = vmax.f32 %v1782_v34, %v1898_v55  ;;  %v1315_v58 = vadd.f32 %v6191_v10, %v7602_v3  ;;  %v6460_v17 = vpop.f32.mrf.mxu2 }
 0x2c3   :  { %v1951_v19 = vmax.f32 %v1783_v47, %v1899_v36  ;;  %v1730_v12 = vadd.f32 %v6108_v28, %v1668_v18  ;;  %2368 = vmatmul.bf16.gmra.mxu0 %v6233_v8 }
 0x2c4   :  { %v1731_v40 = vadd.f32 %v6111_v60, %v1669_v24  ;;  %4313 = vmatmul.msk.bf16.gmra.mxu1 %vm2082_vm6, %v6235_v27 }
 0x2c5   :  { %v1786_v45 = vmax.f32 %v1730_v12, 0.0  ;;  %v6462_v37 = vpop.f32.mrf.mxu3 }
 0x2c6   :  { %v1787_v22 = vmax.f32 %v1731_v40, 0.0 }
 0x2c7   :  { %v1842_v43 = vrot.slane %v1786_v45, 1 }
 0x2c8   :  { %v1843_v34 = vrot.slane %v1787_v22, 1  ;;  %v1528_v47 = vpop.f32.mrf.mxu0 }
 0x2c9   :  { %v1607_v46 = vpop.f32.mrf.mxu1  ;;  %v1670_v61 = vadd.f32 %v1528_v47, %v1314_v56  ;;  %v1896_v27 = vsel %vm130_vm1, %v1840_v53, %v1842_v43  ;;  %v7604_v53 = vld [vmem:[#allocation11_spill] sm:$0xff]  ;;  %v7605_v47 = vld [vmem:[#allocation12_spill] sm:$0xff] }
 0x2ca   :  { %v1897_v14 = vsel %vm130_vm1, %v1841_v41, %v1843_v34  ;;  %v1671_v8 = vadd.f32 %v1607_v46, %v1315_v58  ;;  %v1952_v11 = vmax.f32 %v1784_v62, %v1896_v27  ;;  %v7603_v62 = vld [vmem:[#allocation10_spill] sm:$0xff]  ;;  %v1317_v52 = vadd.f32 %v6226_v31, %v7604_v53  ;;  %v6486_v31 = vpop.f32.mrf.mxu2 }
 0x2cb   :  { %v1953_v63 = vmax.f32 %v1785_v15, %v1897_v14  ;;  %v1732_v10 = vadd.f32 %v6108_v28, %v1670_v61  ;;  %v1316_v15 = vadd.f32 %v6224_v59, %v7603_v62 }
 0x2cc   :  { %v1733_v57 = vadd.f32 %v6111_v60, %v1671_v8  ;;  %v6466_v5 = vpack.c.bf16 %v1952_v11, %v1950_v4 }
 0x2cd   :  { %v6468_v6 = vpack.c.bf16 %v1953_v63, %v1951_v19  ;;  %v1788_v38 = vmax.f32 %v1732_v10, 0.0  ;;  %v6488_v3 = vpop.f32.mrf.mxu3 }
 0x2ce   :  { %v1789_v41 = vmax.f32 %v1733_v57, 0.0  ;;  %2163 = vmatmul.bf16.gmra.mxu2 %v6466_v5 }
 0x2cf   :  { %4268 = vmatmul.msk.bf16.gmra.mxu3 %vm2082_vm6, %v6468_v6  ;;  %v1844_v32 = vrot.slane %v1788_v38, 1 }
 0x2d0   :  { %v1845_v18 = vrot.slane %v1789_v41, 1  ;;  %v1531_v24 = vpop.f32.mrf.mxu0 }
 0x2d1   :  { %v1610_v55 = vpop.f32.mrf.mxu1  ;;  %v1672_v36 = vadd.f32 %v1531_v24, %v1316_v15  ;;  %v1894_v19 = vsel %vm130_vm1, %v1842_v43, %v1844_v32 }
 0x2d2   :  { %v1673_v4 = vadd.f32 %v1610_v55, %v1317_v52  ;;  %v1895_v12 = vsel %vm130_vm1, %v1843_v34, %v1845_v18  ;;  %v1954_v40 = vmax.f32 %v1786_v45, %v1894_v19  ;;  %v1318_v34 = vadd.f32 %v6269_v51, %v7605_v47  ;;  %v7606_v45 = vld [vmem:[#allocation13_spill] sm:$0xff]  ;;  %v7607_v52 = vld [vmem:[#allocation14_spill] sm:$0xff] }
 0x2d3   :  { %v1955_v35 = vmax.f32 %v1787_v22, %v1895_v12  ;;  %v1734_v56 = vadd.f32 %v6108_v28, %v1672_v36  ;;  %2373 = vmatmul.bf16.gmra.mxu0 %v6298_v39  ;;  %v1319_v22 = vadd.f32 %v6271_v23, %v7606_v45 }
 0x2d4   :  { %v1735_v59 = vadd.f32 %v6111_v60, %v1673_v4  ;;  %4314 = vmatmul.msk.bf16.gmra.mxu1 %vm2082_vm6, %v6300_v25 }
 0x2d5   :  { %v1790_v58 = vmax.f32 %v1734_v56, 0.0  ;;  %v6513_v24 = vpop.f32.mrf.mxu3 }
 0x2d6   :  { %v1791_v43 = vmax.f32 %v1735_v59, 0.0 }
 0x2d7   :  { %v1846_v46 = vrot.slane %v1790_v58, 1 }
 0x2d8   :  { %v1847_v14 = vrot.slane %v1791_v43, 1  ;;  %v1533_v61 = vpop.f32.mrf.mxu0 }
 0x2d9   :  { %v1612_v8 = vpop.f32.mrf.mxu1  ;;  %v1674_v25 = vadd.f32 %v1533_v61, %v1318_v34  ;;  %v1892_v11 = vsel %vm130_vm1, %v1844_v32, %v1846_v46  ;;  %v1320_v32 = vadd.f32 %v6317_v50, %v7607_v52 }
 0x2da   :  { %v1893_v39 = vsel %vm130_vm1, %v1845_v18, %v1847_v14  ;;  %v1675_v27 = vadd.f32 %v1612_v8, %v1319_v22  ;;  %v1956_v63 = vmax.f32 %v1788_v38, %v1892_v11  ;;  %v7608_v38 = vld [vmem:[#allocation15_spill] sm:$0xff]  ;;  %v6511_v18 = vpop.f32.mrf.mxu2  ;;  %v7609_v22 = vld [vmem:[#allocation25_spill] sm:$0xff] }
 0x2db   :  { %v1957_v10 = vmax.f32 %v1789_v41, %v1893_v39  ;;  %v1736_v57 = vadd.f32 %v6108_v28, %v1674_v25  ;;  %v1321_v41 = vadd.f32 %v6319_v16, %v7608_v38  ;;  %v1322_v61 = vadd.f32 %v6339_v21, %v7609_v22 }
 0x2dc   :  { %v1737_v51 = vadd.f32 %v6111_v60, %v1675_v27  ;;  %v6500_v62 = vpack.c.bf16 %v1956_v63, %v1954_v40 }
 0x2dd   :  { %v6502_v23 = vpack.c.bf16 %v1957_v10, %v1955_v35  ;;  %v1792_v15 = vmax.f32 %v1736_v57, 0.0  ;;  %v6530_v27 = vpop.f32.mrf.mxu3 }
 0x2de   :  { %v1793_v53 = vmax.f32 %v1737_v51, 0.0  ;;  %2168 = vmatmul.bf16.gmra.mxu2 %v6500_v62 }
 0x2df   :  { %4269 = vmatmul.msk.bf16.gmra.mxu3 %vm2082_vm6, %v6502_v23  ;;  %v1848_v55 = vrot.slane %v1792_v15, 1 }
 0x2e0   :  { %v1849_v36 = vrot.slane %v1793_v53, 1  ;;  %v1536_v4 = vpop.f32.mrf.mxu0 }
 0x2e1   :  { %v1615_v19 = vpop.f32.mrf.mxu1  ;;  %v1676_v12 = vadd.f32 %v1536_v4, %v1320_v32  ;;  %v1890_v35 = vsel %vm130_vm1, %v1846_v46, %v1848_v55  ;;  %v7610_v46 = vld [vmem:[#allocation26_spill] sm:$0xff] }
 0x2e2   :  { %v1677_v40 = vadd.f32 %v1615_v19, %v1321_v41  ;;  %v1891_v56 = vsel %vm130_vm1, %v1847_v14, %v1849_v36  ;;  %v1958_v50 = vmax.f32 %v1790_v58, %v1890_v35  ;;  %v1323_v8 = vadd.f32 %v6341_v44, %v7610_v46  ;;  %v6528_v25 = vpop.f32.mrf.mxu2  ;;  %v7611_v41 = vld [vmem:[#allocation16_spill] sm:$0xff] }
 0x2e3   :  { %v1959_v59 = vmax.f32 %v1791_v43, %v1891_v56  ;;  %v1738_v16 = vadd.f32 %v6108_v28, %v1676_v12  ;;  %2378 = vmatmul.bf16.gmra.mxu0 %v6349_v30 }
 0x2e4   :  { %v1739_v47 = vadd.f32 %v6111_v60, %v1677_v40  ;;  %4315 = vmatmul.msk.bf16.gmra.mxu1 %vm2082_vm6, %v6351_v42 }
 0x2e5   :  { %v1794_v34 = vmax.f32 %v1738_v16, 0.0 }
 0x2e6   :  { %v1795_v45 = vmax.f32 %v1739_v47, 0.0 }
 0x2e7   :  { %v1850_v14 = vrot.slane %v1794_v34, 1 }
 0x2e8   :  { %v1851_v58 = vrot.slane %v1795_v45, 1  ;;  %v1538_v43 = vpop.f32.mrf.mxu0 }
 0x2e9   :  { %v1617_v39 = vpop.f32.mrf.mxu1  ;;  %v1678_v42 = vadd.f32 %v1538_v43, %v1322_v61  ;;  %v1888_v63 = vsel %vm130_vm1, %v1848_v55, %v1850_v14  ;;  %v1324_v55 = vadd.f32 %v6372_v0, %v7611_v41  ;;  %v7613_v43 = vld [vmem:[#allocation27_spill] sm:$0xff] }
 0x2ea   :  { %v1889_v30 = vsel %vm130_vm1, %v1849_v36, %v1851_v58  ;;  %v1679_v11 = vadd.f32 %v1617_v39, %v1323_v8  ;;  %v1960_v21 = vmax.f32 %v1792_v15, %v1888_v63  ;;  %v7612_v15 = vld [vmem:[#allocation17_spill] sm:$0xff]  ;;  %v7614_v39 = vld [vmem:[#allocation28_spill] sm:$0xff] }
 0x2eb   :  { %v1961_v10 = vmax.f32 %v1793_v53, %v1889_v30  ;;  %v1740_v44 = vadd.f32 %v6108_v28, %v1678_v42  ;;  %v1325_v53 = vadd.f32 %v6374_v13, %v7612_v15 }
 0x2ec   :  { %v1741_v57 = vadd.f32 %v6111_v60, %v1679_v11  ;;  %v6538_v51 = vpack.c.bf16 %v1960_v21, %v1958_v50 }
 0x2ed   :  { %v6540_v52 = vpack.c.bf16 %v1961_v10, %v1959_v59  ;;  %v1796_v32 = vmax.f32 %v1740_v44, 0.0 }
 0x2ee   :  { %v1797_v38 = vmax.f32 %v1741_v57, 0.0  ;;  %2173 = vmatmul.bf16.gmra.mxu2 %v6538_v51 }
 0x2ef   :  { %4270 = vmatmul.msk.bf16.gmra.mxu3 %vm2082_vm6, %v6540_v52  ;;  %v1852_v36 = vrot.slane %v1796_v32, 1 }
 0x2f0   :  { %v1853_v4 = vrot.slane %v1797_v38, 1  ;;  %v1541_v19 = vpop.f32.mrf.mxu0 }
 0x2f1   :  { %v1620_v12 = vpop.f32.mrf.mxu1  ;;  %v1680_v40 = vadd.f32 %v1541_v19, %v1324_v55  ;;  %v2134_v56 = vpop.f32.mrf.mxu2  ;;  %v1886_v59 = vsel %vm130_vm1, %v1850_v14, %v1852_v36  ;;  %v1326_v14 = vadd.f32 %v6394_v26, %v7613_v43 }
 0x2f2   :  { %v1681_v35 = vadd.f32 %v1620_v12, %v1325_v53  ;;  %v2213_v50 = vpop.f32.mrf.mxu3  ;;  %v1887_v16 = vsel %vm130_vm1, %v1851_v58, %v1853_v4  ;;  %v1962_v0 = vmax.f32 %v1794_v34, %v1886_v59  ;;  %v1327_v58 = vadd.f32 %v6396_v20, %v7614_v39 }
 0x2f3   :  { %v6553_v47 = vadd.f32 %v2213_v50, %v2134_v56  ;;  %v1963_v22 = vmax.f32 %v1795_v45, %v1887_v16  ;;  %v1742_v13 = vadd.f32 %v6108_v28, %v1680_v40  ;;  %2383 = vmatmul.bf16.gmra.mxu0 %v6390_v48 }
 0x2f4   :  { %v1743_v61 = vadd.f32 %v6111_v60, %v1681_v35  ;;  %4316 = vmatmul.msk.bf16.gmra.mxu1 %vm2082_vm6, %v6392_v1 }
 0x2f5   :  { %v1798_v46 = vmax.f32 %v1742_v13, 0.0 }
 0x2f6   :  { %v1799_v8 = vmax.f32 %v1743_v61, 0.0 }
 0x2f7   :  { %v1854_v30 = vrot.slane %v1798_v46, 1 }
 0x2f8   :  { %v1855_v34 = vrot.slane %v1799_v8, 1  ;;  %v1543_v45 = vpop.f32.mrf.mxu0 }
 0x2f9   :  { %v1622_v42 = vpop.f32.mrf.mxu1  ;;  %v1682_v63 = vadd.f32 %v1543_v45, %v1326_v14  ;;  %v2136_v21 = vpop.f32.mrf.mxu2  ;;  %v1884_v1 = vsel %vm130_vm1, %v1852_v36, %v1854_v30  ;;  %v7615_v36 = vld [vmem:[#allocation18_spill] sm:$0xff]  ;;  %v7617_v45 = vld [vmem:[#allocation29_spill] sm:$0xff] }
 0x2fa   :  { %v1885_v11 = vsel %vm130_vm1, %v1853_v4, %v1855_v34  ;;  %v1683_v48 = vadd.f32 %v1622_v42, %v1327_v58  ;;  %v2215_v10 = vpop.f32.mrf.mxu3  ;;  %v1964_v26 = vmax.f32 %v1796_v32, %v1884_v1  ;;  %v1328_v19 = vadd.f32 %v6418_v29, %v7615_v36  ;;  %v7616_v32 = vld [vmem:[#allocation19_spill] sm:$0xff]  ;;  %v7618_v42 = vld [vmem:[#allocation30_spill] sm:$0xff] }
 0x2fb   :  { %v6568_v44 = vadd.f32 %v2215_v10, %v2136_v21  ;;  %v1965_v57 = vmax.f32 %v1797_v38, %v1885_v11  ;;  %v1744_v20 = vadd.f32 %v6108_v28, %v1682_v63  ;;  %v1329_v38 = vadd.f32 %v6420_v9, %v7616_v32 }
 0x2fc   :  { %v1745_v41 = vadd.f32 %v6111_v60, %v1683_v48  ;;  %v6572_v55 = vpack.c.bf16 %v1964_v26, %v1962_v0 }
 0x2fd   :  { %v6574_v15 = vpack.c.bf16 %v1965_v57, %v1963_v22  ;;  %v1800_v53 = vmax.f32 %v1744_v20, 0.0 }
 0x2fe   :  { %v1801_v4 = vmax.f32 %v1745_v41, 0.0  ;;  %2178 = vmatmul.bf16.gmra.mxu2 %v6572_v55 }
 0x2ff   :  { %4271 = vmatmul.msk.bf16.gmra.mxu3 %vm2082_vm6, %v6574_v15  ;;  %v1856_v12 = vrot.slane %v1800_v53, 1 }
 0x300   :  { %v1857_v40 = vrot.slane %v1801_v4, 1  ;;  %v1546_v35 = vpop.f32.mrf.mxu0 }
 0x301   :  { %v1625_v56 = vpop.f32.mrf.mxu1  ;;  %v1684_v50 = vadd.f32 %v1546_v35, %v1328_v19  ;;  %v2139_v16 = vpop.f32.mrf.mxu2  ;;  %v1882_v22 = vsel %vm130_vm1, %v1854_v30, %v1856_v12  ;;  %v1330_v30 = vadd.f32 %v6439_v54, %v7617_v45 }
 0x302   :  { %v1685_v59 = vadd.f32 %v1625_v56, %v1329_v38  ;;  %v2218_v0 = vpop.f32.mrf.mxu3  ;;  %v1883_v13 = vsel %vm130_vm1, %v1855_v34, %v1857_v40  ;;  %v1966_v29 = vmax.f32 %v1798_v46, %v1882_v22  ;;  %v1331_v34 = vadd.f32 %v6441_v49, %v7618_v42  ;;  %v7619_v38 = vld [vmem:[#allocation20_spill] sm:$0xff]  ;;  %v7621_v42 = vld [vmem:[#allocation31_spill] sm:$0xff] }
 0x303   :  { %v6587_v61 = vadd.f32 %v2218_v0, %v2139_v16  ;;  %v1967_v43 = vmax.f32 %v1799_v8, %v1883_v13  ;;  %v1746_v9 = vadd.f32 %v6108_v28, %v1684_v50  ;;  %2388 = vmatmul.bf16.gmra.mxu0 %v6428_v7 }
 0x304   :  { %v1747_v14 = vadd.f32 %v6111_v60, %v1685_v59  ;;  %4317 = vmatmul.msk.bf16.gmra.mxu1 %vm2082_vm6, %v6430_v2 }
 0x305   :  { %v1802_v39 = vmax.f32 %v1746_v9, 0.0 }
 0x306   :  { %v1803_v58 = vmax.f32 %v1747_v14, 0.0 }
 0x307   :  { %v1858_v11 = vrot.slane %v1802_v39, 1 }
 0x308   :  { %v1859_v46 = vrot.slane %v1803_v58, 1  ;;  %v1548_v8 = vpop.f32.mrf.mxu0 }
 0x309   :  { %v1627_v63 = vpop.f32.mrf.mxu1  ;;  %v1686_v21 = vadd.f32 %v1548_v8, %v1330_v30  ;;  %v2141_v10 = vpop.f32.mrf.mxu2  ;;  %v1880_v2 = vsel %vm130_vm1, %v1856_v12, %v1858_v11  ;;  %v1332_v12 = vadd.f32 %v6460_v17, %v7619_v38  ;;  %v7623_v38 = vld [vmem:[#allocation23_spill] sm:$0xff] }
 0x30a   :  { %v1881_v48 = vsel %vm130_vm1, %v1857_v40, %v1859_v46  ;;  %v1687_v7 = vadd.f32 %v1627_v63, %v1331_v34  ;;  %v2220_v1 = vpop.f32.mrf.mxu3  ;;  %v1968_v54 = vmax.f32 %v1800_v53, %v1880_v2  ;;  %v7620_v53 = vld [vmem:[#allocation21_spill] sm:$0xff]  ;;  %v1334_v34 = vadd.f32 %v6486_v31, %v7621_v42 }
 0x30b   :  { %v6602_v26 = vadd.f32 %v2220_v1, %v2141_v10  ;;  %v1969_v57 = vmax.f32 %v1801_v4, %v1881_v48  ;;  %v1748_v49 = vadd.f32 %v6108_v28, %v1686_v21  ;;  %v1333_v4 = vadd.f32 %v6462_v37, %v7620_v53 }
 0x30c   :  { %v1749_v20 = vadd.f32 %v6111_v60, %v1687_v7  ;;  %v6606_v41 = vpack.c.bf16 %v1968_v54, %v1966_v29 }
 0x30d   :  { %v6608_v36 = vpack.c.bf16 %v1969_v57, %v1967_v43  ;;  %v1804_v19 = vmax.f32 %v1748_v49, 0.0 }
 0x30e   :  { %v1805_v32 = vmax.f32 %v1749_v20, 0.0  ;;  %2183 = vmatmul.bf16.gmra.mxu2 %v6606_v41 }
 0x30f   :  { %4272 = vmatmul.msk.bf16.gmra.mxu3 %vm2082_vm6, %v6608_v36  ;;  %v1860_v40 = vrot.slane %v1804_v19, 1 }
 0x310   :  { %v1861_v35 = vrot.slane %v1805_v32, 1  ;;  %v1551_v56 = vpop.f32.mrf.mxu0 }
 0x311   :  { %v1630_v50 = vpop.f32.mrf.mxu1  ;;  %v1688_v59 = vadd.f32 %v1551_v56, %v1332_v12  ;;  %v2144_v0 = vpop.f32.mrf.mxu2  ;;  %v1878_v13 = vsel %vm130_vm1, %v1858_v11, %v1860_v40  ;;  %v7622_v11 = vld [vmem:[#allocation22_spill] sm:$0xff]  ;;  %v1336_v12 = vadd.f32 %v6511_v18, %v7623_v38 }
 0x312   :  { %v1689_v16 = vadd.f32 %v1630_v50, %v1333_v4  ;;  %v2223_v22 = vpop.f32.mrf.mxu3  ;;  %v1879_v29 = vsel %vm130_vm1, %v1859_v46, %v1861_v35  ;;  %v1970_v17 = vmax.f32 %v1802_v39, %v1878_v13  ;;  %v1335_v46 = vadd.f32 %v6488_v3, %v7622_v11 }
 0x313   :  { %v6621_v43 = vadd.f32 %v2223_v22, %v2144_v0  ;;  %v1971_v9 = vmax.f32 %v1803_v58, %v1879_v29  ;;  %v1750_v37 = vadd.f32 %v6108_v28, %v1688_v59  ;;  %2393 = vmatmul.bf16.gmra.mxu0 %v6466_v5 }
 0x314   :  { %v1751_v14 = vadd.f32 %v6111_v60, %v1689_v16  ;;  %4318 = vmatmul.msk.bf16.gmra.mxu1 %vm2082_vm6, %v6468_v6 }
 0x315   :  { %v1806_v45 = vmax.f32 %v1750_v37, 0.0 }
 0x316   :  { %v1807_v30 = vmax.f32 %v1751_v14, 0.0  ;;  %v7625_v14 = vld [vmem:[#allocation32_spill] sm:$0xff] }
 0x317   :  { %v1862_v8 = vrot.slane %v1806_v45, 1  ;;  %v1338_v42 = vadd.f32 %v6528_v25, %v7625_v14 }
 0x318   :  { %v1863_v39 = vrot.slane %v1807_v30, 1  ;;  %v1553_v58 = vpop.f32.mrf.mxu0 }
 0x319   :  { %v1632_v63 = vpop.f32.mrf.mxu1  ;;  %v1690_v21 = vadd.f32 %v1553_v58, %v1334_v34  ;;  %v6634_v7 = vpop.f32.mrf.mxu2  ;;  %v1876_v10 = vsel %vm130_vm1, %v1860_v40, %v1862_v8  ;;  %v7626_v34 = vld [vmem:[#allocation33_spill] sm:$0xff] }
 0x31a   :  { %v1877_v48 = vsel %vm130_vm1, %v1861_v35, %v1863_v39  ;;  %v1691_v5 = vadd.f32 %v1632_v63, %v1335_v46  ;;  %v6636_v6 = vpop.f32.mrf.mxu3  ;;  %v1972_v31 = vmax.f32 %v1804_v19, %v1876_v10  ;;  %v7624_v19 = vld [vmem:[#allocation24_spill] sm:$0xff]  ;;  %v1339_v11 = vadd.f32 %v6530_v27, %v7626_v34 }
 0x31b   :  { %v1973_v1 = vmax.f32 %v1805_v32, %v1877_v48  ;;  %v1752_v3 = vadd.f32 %v6108_v28, %v1690_v21  ;;  %v1337_v32 = vadd.f32 %v6513_v24, %v7624_v19 }
 0x31c   :  { %v1753_v2 = vadd.f32 %v6111_v60, %v1691_v5  ;;  %v6642_v54 = vpack.c.bf16 %v1972_v31, %v1970_v17 }
 0x31d   :  { %v6644_v57 = vpack.c.bf16 %v1973_v1, %v1971_v9  ;;  %v1808_v49 = vmax.f32 %v1752_v3, 0.0 }
 0x31e   :  { %v1809_v20 = vmax.f32 %v1753_v2, 0.0  ;;  %2188 = vmatmul.bf16.gmra.mxu2 %v6642_v54 }
 0x31f   :  { %4273 = vmatmul.msk.bf16.gmra.mxu3 %vm2082_vm6, %v6644_v57  ;;  %v1864_v53 = vrot.slane %v1808_v49, 1 }
 0x320   :  { %v1865_v4 = vrot.slane %v1809_v20, 1  ;;  %v1556_v40 = vpop.f32.mrf.mxu0 }
 0x321   :  { %v1635_v35 = vpop.f32.mrf.mxu1  ;;  %v1692_v56 = vadd.f32 %v1556_v40, %v1336_v12  ;;  %v2149_v59 = vpop.f32.mrf.mxu2  ;;  %v1874_v0 = vsel %vm130_vm1, %v1862_v8, %v1864_v53 }
 0x322   :  { %v1693_v50 = vadd.f32 %v1635_v35, %v1337_v32  ;;  %v2228_v16 = vpop.f32.mrf.mxu3  ;;  %v1875_v22 = vsel %vm130_vm1, %v1863_v39, %v1865_v4  ;;  %v1974_v18 = vmax.f32 %v1806_v45, %v1874_v0 }
 0x323   :  { %v6657_v13 = vadd.f32 %v2228_v16, %v2149_v59  ;;  %v1975_v29 = vmax.f32 %v1807_v30, %v1875_v22  ;;  %v1754_v24 = vadd.f32 %v6108_v28, %v1692_v56  ;;  %2398 = vmatmul.bf16.gmra.mxu0 %v6500_v62 }
 0x324   :  { %v1755_v17 = vadd.f32 %v6111_v60, %v1693_v50  ;;  %4319 = vmatmul.msk.bf16.gmra.mxu1 %vm2082_vm6, %v6502_v23 }
 0x325   :  { %v1810_v9 = vmax.f32 %v1754_v24, 0.0 }
 0x326   :  { %v1811_v37 = vmax.f32 %v1755_v17, 0.0 }
 0x327   :  { %v1866_v46 = vrot.slane %v1810_v9, 1 }
 0x328   :  { %v1867_v45 = vrot.slane %v1811_v37, 1  ;;  %v1558_v30 = vpop.f32.mrf.mxu0 }
 0x329   :  { %v1637_v8 = vpop.f32.mrf.mxu1  ;;  %v1694_v58 = vadd.f32 %v1558_v30, %v1338_v42  ;;  %v6670_v63 = vpop.f32.mrf.mxu2  ;;  %v1872_v48 = vsel %vm130_vm1, %v1864_v53, %v1866_v46 }
 0x32a   :  { %v1873_v39 = vsel %vm130_vm1, %v1865_v4, %v1867_v45  ;;  %v1695_v62 = vadd.f32 %v1637_v8, %v1339_v11  ;;  %v6672_v23 = vpop.f32.mrf.mxu3  ;;  %v1976_v25 = vmax.f32 %v1808_v49, %v1872_v48  ;;  %v7628_v4 = vld [vmem:[#allocation38_spill] sm:$0xff] }
 0x32b   :  { %v1977_v21 = vmax.f32 %v1809_v20, %v1873_v39  ;;  %v1756_v27 = vadd.f32 %v6108_v28, %v1694_v58  ;;  %v7627_v20 = vld [vmem:[#allocation39_spill] sm:$0xff] }
 0x32c   :  { %v1757_v5 = vadd.f32 %v6111_v60, %v1695_v62  ;;  %v6678_v10 = vpack.c.bf16 %v1976_v25, %v1974_v18 }
 0x32d   :  { %v6680_v31 = vpack.c.bf16 %v1977_v21, %v1975_v29  ;;  %v1812_v1 = vmax.f32 %v1756_v27, 0.0 }
 0x32e   :  { %v1813_v3 = vmax.f32 %v1757_v5, 0.0  ;;  %2193 = vmatmul.bf16.gmra.mxu2 %v6678_v10 }
 0x32f   :  { %4274 = vmatmul.msk.bf16.gmra.mxu3 %vm2082_vm6, %v6680_v31  ;;  %v1868_v2 = vrot.slane %v1812_v1, 1 }
 0x330   :  { %v1869_v38 = vrot.slane %v1813_v3, 1  ;;  %v2364_v12 = vpop.f32.mrf.mxu0 }
 0x331   :  { %v2443_v49 = vpop.f32.mrf.mxu1  ;;  %v2154_v19 = vpop.f32.mrf.mxu2  ;;  %v1870_v53 = vsel %vm130_vm1, %v1866_v46, %v1868_v2  ;;  %v1924_v40 = vsel %vm130_vm1, %v1868_v2, %v7628_v4 }
 0x332   :  { %v1925_v28 = vsel %vm130_vm1, %v1869_v38, %v7627_v20  ;;  %v2444_v60 = vadd.f32 %v2443_v49, %v2364_v12  ;;  %v2233_v32 = vpop.f32.mrf.mxu3  ;;  %v1978_v50 = vmax.f32 %v1810_v9, %v1870_v53  ;;  %v1980_v59 = vmax.f32 %v1812_v1, %v1924_v40 }
 0x333   :  { %v1981_v35 = vmax.f32 %v1813_v3, %v1925_v28  ;;  %v6693_v56 = vadd.f32 %v2233_v32, %v2154_v19  ;;  %2403 = vmatmul.bf16.gmra.mxu0 %v6538_v51  ;;  %v1871_v0 = vsel %vm130_vm1, %v1867_v45, %v1869_v38 }
 0x334   :  { %v2513_v16 = vmax.f32 %v6553_v47, %v2444_v60  ;;  %4320 = vmatmul.msk.bf16.gmra.mxu1 %vm2082_vm6, %v6540_v52  ;;  %v6701_v22 = vpack.c.bf16 %v1980_v59, %v1978_v50  ;;  %v1979_v18 = vmax.f32 %v1811_v37, %v1871_v0 }
 0x336   :  { %v6703_v29 = vpack.c.bf16 %v1981_v35, %v1979_v18 }
 0x338   :  { %v2366_v24 = vpop.f32.mrf.mxu0 }
 0x339   :  { %v2445_v17 = vpop.f32.mrf.mxu1  ;;  %v6705_v9 = vpop.f32.mrf.mxu2 }
 0x33a   :  { %v2446_v14 = vadd.f32 %v2445_v17, %v2366_v24  ;;  %v6707_v42 = vpop.f32.mrf.mxu3 }
 0x33c   :  { %v2514_v51 = vmax.f32 %v6568_v44, %v2446_v14 }
 0x33e   :  { %v6710_v47 = vpack.c.bf16 %v2514_v51, %v2513_v16  ;;  %2198 = vmatmul.bf16.gmra.mxu2 %v6701_v22 }
 0x33f   :  { %4275 = vmatmul.msk.bf16.gmra.mxu3 %vm2082_vm6, %v6703_v29 }
 0x340   :  { %v2369_v52 = vpop.f32.mrf.mxu0 }
 0x341   :  { %v2448_v37 = vpop.f32.mrf.mxu1  ;;  %v6715_v11 = vpop.f32.mrf.mxu2 }
 0x342   :  { %v2449_v34 = vadd.f32 %v2448_v37, %v2369_v52  ;;  %v6717_v46 = vpop.f32.mrf.mxu3 }
 0x343   :  { %2408 = vmatmul.bf16.gmra.mxu0 %v6572_v55 }
 0x344   :  { %v2515_v45 = vmax.f32 %v6587_v61, %v2449_v34  ;;  %4321 = vmatmul.msk.bf16.gmra.mxu1 %vm2082_vm6, %v6574_v15 }
 0x348   :  { %v2371_v44 = vpop.f32.mrf.mxu0 }
 0x349   :  { %v2450_v30 = vpop.f32.mrf.mxu1  ;;  %v6723_v39 = vpop.f32.mrf.mxu2 }
 0x34a   :  { %v2451_v8 = vadd.f32 %v2450_v30, %v2371_v44  ;;  %v6725_v58 = vpop.f32.mrf.mxu3 }
 0x34c   :  { %v2516_v62 = vmax.f32 %v6602_v26, %v2451_v8 }
 0x34e   :  { %v6728_v48 = vpack.c.bf16 %v2516_v62, %v2515_v45 }
 0x350   :  { %v2374_v25 = vpop.f32.mrf.mxu0 }
 0x351   :  { %v2453_v21 = vpop.f32.mrf.mxu1  ;;  %v6732_v61 = vpop.f32.mrf.mxu2 }
 0x352   :  { %v6730_v27 = vadd.f32 %v2453_v21, %v2374_v25  ;;  %v6734_v55 = vpop.f32.mrf.mxu3 }
 0x353   :  { %2413 = vmatmul.bf16.gmra.mxu0 %v6606_v41 }
 0x354   :  { %4322 = vmatmul.msk.bf16.gmra.mxu1 %vm2082_vm6, %v6608_v36 }
 0x358   :  { %v6741_v5 = vpop.f32.mrf.mxu0 }
 0x359   :  { %v6743_v26 = vpop.f32.mrf.mxu1  ;;  %v2166_v1 = vpop.f32.mrf.mxu2 }
 0x35a   :  { %v2245_v3 = vpop.f32.mrf.mxu3 }
 0x360   :  { %v2379_v2 = vpop.f32.mrf.mxu0 }
 0x361   :  { %v2458_v38 = vpop.f32.mrf.mxu1  ;;  %v2169_v49 = vpop.f32.mrf.mxu2 }
 0x362   :  { %v6745_v12 = vadd.f32 %v2458_v38, %v2379_v2  ;;  %v2248_v20 = vpop.f32.mrf.mxu3 }
 0x363   :  { %2418 = vmatmul.bf16.gmra.mxu0 %v6642_v54  ;;  %v2244_v54 = vadd.f32 %v6734_v55, %v6732_v61  ;;  %v2236_v61 = vadd.f32 %v6707_v42, %v6705_v9  ;;  %v2456_v9 = vadd.f32 %v6743_v26, %v6741_v5  ;;  %v7632_v5 = vmax.f32 %v6621_v43, %v6730_v27 }
 0x364   :  { %4323 = vmatmul.msk.bf16.gmra.mxu1 %vm2082_vm6, %v6644_v57 }
 0x368   :  { %v6752_v41 = vpop.f32.mrf.mxu0 }
 0x369   :  { %v6754_v36 = vpop.f32.mrf.mxu1  ;;  %v2171_v60 = vpop.f32.mrf.mxu2 }
 0x36a   :  { %v2250_v19 = vpop.f32.mrf.mxu3 }
 0x370   :  { %v2384_v32 = vpop.f32.mrf.mxu0 }
 0x371   :  { %v2463_v53 = vpop.f32.mrf.mxu1  ;;  %v2174_v40 = vpop.f32.mrf.mxu2 }
 0x372   :  { %v6756_v4 = vadd.f32 %v2463_v53, %v2384_v32  ;;  %v2253_v35 = vpop.f32.mrf.mxu3  ;;  %v2251_v53 = vadd.f32 %v2250_v19, %v2171_v60 }
 0x373   :  { %v6758_v50 = vadd.f32 %v2253_v35, %v2174_v40  ;;  %2423 = vmatmul.bf16.gmra.mxu0 %v6678_v10 }
 0x374   :  { %4324 = vmatmul.msk.bf16.gmra.mxu1 %vm2082_vm6, %v6680_v31 }
 0x378   :  { %v2386_v57 = vpop.f32.mrf.mxu0 }
 0x379   :  { %v2465_v59 = vpop.f32.mrf.mxu1  ;;  %v6765_v16 = vpop.f32.mrf.mxu2 }
 0x37a   :  { %v6767_v0 = vpop.f32.mrf.mxu3 }
 0x37b   :  { %7629 = vst [vmem:[#allocation34_spill] sm:$0xff] %v6767_v0  ;;  %v2241_v0 = vadd.f32 %v6725_v58, %v6723_v39 }
 0x380   :  { %v2389_v18 = vpop.f32.mrf.mxu0 }
 0x381   :  { %v2468_v24 = vpop.f32.mrf.mxu1  ;;  %v2179_v17 = vpop.f32.mrf.mxu2 }
 0x382   :  { %v2258_v14 = vpop.f32.mrf.mxu3 }
 0x383   :  { %v6769_v51 = vadd.f32 %v2258_v14, %v2179_v17  ;;  %2428 = vmatmul.bf16.gmra.mxu0 %v6701_v22  ;;  %v2246_v17 = vadd.f32 %v2245_v3, %v2166_v1  ;;  %v2466_v3 = vadd.f32 %v2465_v59, %v2386_v57 }
 0x384   :  { %4325 = vmatmul.msk.bf16.gmra.mxu1 %vm2082_vm6, %v6703_v29  ;;  %v2249_v29 = vadd.f32 %v2248_v20, %v2169_v49  ;;  %v2239_v49 = vadd.f32 %v6717_v46, %v6715_v11  ;;  %v2231_v46 = vadd.f32 %v6672_v23, %v6670_v63  ;;  %v7631_v63 = vmax.f32 %v6657_v13, %v6745_v12 }
 0x385   :  { %v2522_v58 = vmax.f32 %v2236_v61, %v2466_v3 }
 0x388   :  { %v2391_v10 = vpop.f32.mrf.mxu0 }
 0x389   :  { %v2470_v52 = vpop.f32.mrf.mxu1  ;;  %v6774_v31 = vpop.f32.mrf.mxu2 }
 0x38a   :  { %v6776_v37 = vpop.f32.mrf.mxu3 }
 0x390   :  { %v2394_v34 = vpop.f32.mrf.mxu0 }
 0x391   :  { %v2473_v45 = vpop.f32.mrf.mxu1  ;;  %v2184_v44 = vpop.f32.mrf.mxu2 }
 0x392   :  { %v2263_v30 = vpop.f32.mrf.mxu3  ;;  %v2474_v14 = vadd.f32 %v2473_v45, %v2394_v34 }
 0x393   :  { %v6778_v8 = vadd.f32 %v2263_v30, %v2184_v44  ;;  %v2471_v44 = vadd.f32 %v2470_v52, %v2391_v10 }
 0x395   :  { %v2524_v60 = vmax.f32 %v2241_v0, %v2471_v44 }
 0x398   :  { %v2396_v62 = vpop.f32.mrf.mxu0 }
 0x399   :  { %v2475_v25 = vpop.f32.mrf.mxu1  ;;  %v6817_v13 = vpop.f32.mrf.mxu2 }
 0x39a   :  { %v2476_v40 = vadd.f32 %v2475_v25, %v2396_v62  ;;  %v6819_v12 = vpop.f32.mrf.mxu3 }
 0x39c   :  { %v2526_v30 = vmax.f32 %v2246_v17, %v2476_v40 }
 0x3a0   :  { %v2399_v21 = vpop.f32.mrf.mxu0 }
 0x3a1   :  { %v2478_v2 = vpop.f32.mrf.mxu1 }
 0x3a2   :  { %v2479_v22 = vadd.f32 %v2478_v2, %v2399_v21  ;;  %v2469_v21 = vadd.f32 %v2468_v24, %v2389_v18  ;;  %v2525_v2 = vmax.f32 %v2244_v54, %v2474_v14  ;;  %v7630_v54 = vmax.f32 %v6693_v56, %v6756_v4  ;;  %v2268_v45 = vpop.f32.mrf.mxu3 }
 0x3a3   :  { %v2261_v4 = vadd.f32 %v6776_v37, %v6774_v31 }
 0x3a4   :  { %v2527_v15 = vmax.f32 %v2249_v29, %v2479_v22  ;;  %v2559_v34 = vpack.c.bf16 %v2526_v30, %v2525_v2  ;;  %v2523_v55 = vmax.f32 %v2239_v49, %v2469_v21  ;;  %v2557_v57 = vpack.c.bf16 %v2522_v58, %v7630_v54  ;;  %v4336_v54 = vld [vmem:[%s7477_s3 + $0x10] sm:$0xf] }
 0x3a6   :  { %v2558_v11 = vpack.c.bf16 %v2524_v60, %v2523_v55 }
 0x3a8   :  { %v2401_v38 = vpop.f32.mrf.mxu0 }
 0x3a9   :  { %v2480_v32 = vpop.f32.mrf.mxu1 }
 0x3aa   :  { %v2481_v35 = vadd.f32 %v2480_v32, %v2401_v38  ;;  %v2270_v22 = vpop.f32.mrf.mxu3 }
 0x3ac   :  { %v2528_v28 = vmax.f32 %v2251_v53, %v2481_v35 }
 0x3ae   :  { %v2560_v33 = vpack.c.bf16 %v2528_v28, %v2527_v15 }
 0x3b0   :  { %2640 = vmatpush.bf16.msrb.mxu2 %v2560_v33  ;;  %v2404_v20 = vpop.f32.mrf.mxu0  ;;  %v2461_v33 = vadd.f32 %v6754_v36, %v6752_v41  ;;  %v2226_v41 = vadd.f32 %v6636_v6, %v6634_v7 }
 0x3b1   :  { %v2483_v1 = vpop.f32.mrf.mxu1 }
 0x3b2   :  { %v6786_v19 = vadd.f32 %v2483_v1, %v2404_v20  ;;  %v2520_v42 = vmax.f32 %v2231_v46, %v2461_v33  ;;  %v2518_v36 = vmax.f32 %v2226_v41, %v2456_v9  ;;  %v2273_v53 = vpop.f32.mrf.mxu3  ;;  %v4749_v20 = vld [vmem:[%s7477_s3 + $0x4] sm:$0xf0] }
 0x3b4   :  { %v2529_v39 = vmax.f32 %v6758_v50, %v6786_v19  ;;  %2641 = vmatpush.bf16.msrb.mxu2 %v2559_v34  ;;  %v2556_v23 = vpack.c.bf16 %v2520_v42, %v7631_v63  ;;  %v2555_v26 = vpack.c.bf16 %v2518_v36, %v7632_v5  ;;  %v4338_v50 = vld [vmem:[%s7477_s3 + $0x18] sm:$0xf0] }
 0x3b8   :  { %2642 = vmatpush.bf16.msrb.mxu2 %v2558_v11  ;;  %v6796_v15 = vpop.f32.mrf.mxu0 }
 0x3b9   :  { %v6798_v28 = vpop.f32.mrf.mxu1 }
 0x3ba   :  { %v2275_v44 = vpop.f32.mrf.mxu3 }
 0x3bc   :  { %2643 = vmatpush.bf16.msrb.mxu2 %v2557_v57  ;;  %v4751_v57 = vld [vmem:[%s7477_s3 + $0x14] sm:$0xf0] }
 0x3c0   :  { %2644 = vmatpush.bf16.msrb.mxu2 %v2556_v23  ;;  %v2409_v59 = vpop.f32.mrf.mxu0 }
 0x3c1   :  { %v2488_v0 = vpop.f32.mrf.mxu1 }
 0x3c2   :  { %v2489_v18 = vadd.f32 %v2488_v0, %v2409_v59  ;;  %v2278_v49 = vpop.f32.mrf.mxu3  ;;  %v4337_v59 = vor.u32 %v4751_v57, %v4336_v54  ;;  %v4503_v54 = vld [vmem:[%s7478_s6 + $0xb0] sm:$0xf] }
 0x3c3   :  { %v4762_v57 = vld [vmem:[%s7478_s6 + $0x10] sm:$0xff] }
 0x3c4   :  { %v2531_v56 = vmax.f32 %v6769_v51, %v2489_v18  ;;  %2645 = vmatpush.bf16.msrb.mxu2 %v2555_v26 }
 0x3c8   :  { %2646 = vmatpush.bf16.msrb.mxu2 %v6728_v48  ;;  %v2411_v7 = vpop.f32.mrf.mxu0  ;;  %v2189_v48 = vpop.f32.mrf.mxu2 }
 0x3c9   :  { %v2490_v6 = vpop.f32.mrf.mxu1 }
 0x3ca   :  { %v2491_v24 = vadd.f32 %v2490_v6, %v2411_v7  ;;  %v2280_v61 = vpop.f32.mrf.mxu3 }
 0x3cc   :  { %v2532_v10 = vmax.f32 %v2261_v4, %v2491_v24  ;;  %2647 = vmatpush.bf16.msrb.mxu2 %v6710_v47  ;;  %v2269_v4 = vadd.f32 %v2268_v45, %v2189_v48  ;;  %v4753_v48 = vld [vmem:[%s7477_s3 + $0x24] sm:$0xf0]  ;;  %v7633_v45 = vld [vmem:[#allocation34_spill] sm:$0xff] }
 0x3ce   :  { %v6822_v43 = vpack.c.bf16 %v2532_v10, %v2531_v56 }
 0x3d0   :  { %v2414_v27 = vpop.f32.mrf.mxu0  ;;  %v2191_v25 = vpop.f32.mrf.mxu2 }
 0x3d1   :  { %v2493_v51 = vpop.f32.mrf.mxu1  ;;  %v2271_v56 = vadd.f32 %v2270_v22, %v2191_v25  ;;  %v4344_v22 = vld [vmem:[%s7477_s3 + $0x20] sm:$0xf] }
 0x3d2   :  { %v6824_v52 = vadd.f32 %v2493_v51, %v2414_v27  ;;  %v2266_v51 = vadd.f32 %v6819_v12, %v6817_v13  ;;  %v2256_v13 = vadd.f32 %v7633_v45, %v6765_v16  ;;  %v4345_v12 = vor.u32 %v4753_v48, %v4344_v22  ;;  %v4352_v16 = vld [vmem:[%s7477_s3 + $0x30] sm:$0xf] }
 0x3d4   :  { %v2533_v62 = vmax.f32 %v6778_v8, %v6824_v52  ;;  %v4328_v8 = vld [vmem:[%s7477_s3] sm:$0xf] }
 0x3d5   :  { %v4329_v1 = vor.u32 %v4749_v20, %v4328_v8  ;;  %v4354_v8 = vld [vmem:[%s7477_s3 + $0x38] sm:$0xf0] }
 0x3d7   :  { %2648 = vmatmul.bf16.vlgmr.msrb.gmra.mxu2 %v4329_v1  ;;  %v2732_v1 = vld [vmem:[%s7478_s6 + $0x20] sm:$0xf] }
 0x3d8   :  { %v2416_v31 = vpop.f32.mrf.mxu0  ;;  %v2194_v29 = vpop.f32.mrf.mxu2 }
 0x3d9   :  { %v2495_v37 = vpop.f32.mrf.mxu1  ;;  %v2274_v0 = vadd.f32 %v2273_v53, %v2194_v29  ;;  %v2486_v29 = vadd.f32 %v6798_v28, %v6796_v15  ;;  %v4748_v15 = vld [vmem:[%s7477_s3 + $0x4] sm:$0xf]  ;;  %v4330_v28 = vld [vmem:[%s7477_s3 + $0x8] sm:$0xf0]  ;;  %v4757_v53 = vld [vmem:[%s7477_s3 + $0x44] sm:$0xf0] }
 0x3da   :  { %v2496_v24 = vadd.f32 %v2495_v37, %v2416_v31  ;;  %v4333_v37 = vor.u32 %v4748_v15, %v4330_v28 }
 0x3db   :  { %v2530_v31 = vmax.f32 %v2256_v13, %v2486_v29 }
 0x3e0   :  { %v2419_v38 = vpop.f32.mrf.mxu0  ;;  %v2196_v14 = vpop.f32.mrf.mxu2 }
 0x3e1   :  { %v2498_v32 = vpop.f32.mrf.mxu1  ;;  %v2276_v41 = vadd.f32 %v2275_v44, %v2196_v14  ;;  %v4346_v14 = vld [vmem:[%s7477_s3 + $0x28] sm:$0xf0] }
 0x3e2   :  { %v2499_v7 = vadd.f32 %v2498_v32, %v2419_v38  ;;  %v4750_v32 = vld [vmem:[%s7477_s3 + $0x14] sm:$0xf] }
 0x3e3   :  { %v4341_v19 = vor.u32 %v4750_v32, %v4338_v50 }
 0x3e4   :  { %v2535_v52 = vmax.f32 %v2269_v4, %v2499_v7  ;;  %v4760_v7 = vld [vmem:[%s7478_s6] sm:$0xff] }
 0x3e5   :  { %v4778_v4 = vld [vmem:[%s7478_s6 + $0xa0] sm:$0xff] }
 0x3e7   :  { %2653 = vmatmul.bf16.gmra.mxu2 %v4337_v59 }
 0x3e8   :  { %v2421_v47 = vpop.f32.mrf.mxu0  ;;  %v2199_v2 = vpop.f32.mrf.mxu2 }
 0x3e9   :  { %v2500_v40 = vpop.f32.mrf.mxu1  ;;  %v2279_v11 = vadd.f32 %v2278_v49, %v2199_v2  ;;  %v4754_v49 = vld [vmem:[%s7477_s3 + $0x34] sm:$0xf] }
 0x3ea   :  { %v2501_v18 = vadd.f32 %v2500_v40, %v2421_v47  ;;  %v4752_v40 = vld [vmem:[%s7477_s3 + $0x24] sm:$0xf]  ;;  %v4357_v20 = vor.u32 %v4754_v49, %v4354_v8 }
 0x3eb   :  { %v4349_v44 = vor.u32 %v4752_v40, %v4346_v14 }
 0x3ec   :  { %v2536_v10 = vmax.f32 %v2271_v56, %v2501_v18 }
 0x3f0   :  { %v2424_v35 = vpop.f32.mrf.mxu0  ;;  %v2201_v34 = vpop.f32.mrf.mxu2 }
 0x3f1   :  { %v2503_v17 = vpop.f32.mrf.mxu1  ;;  %v2281_v46 = vadd.f32 %v2280_v61, %v2201_v34  ;;  %v4763_v61 = vld [vmem:[%s7478_s6 + $0x18] sm:$0xff] }
 0x3f2   :  { %v2504_v36 = vadd.f32 %v2503_v17, %v2424_v35  ;;  %v2534_v35 = vmax.f32 %v2266_v51, %v2496_v24  ;;  %v2564_v17 = vpack.c.bf16 %v2536_v10, %v2535_v52  ;;  %v4765_v24 = vld [vmem:[%s7478_s6 + $0x2c] sm:$0xff]  ;;  %v4777_v10 = vld [vmem:[%s7478_s6 + $0x98] sm:$0xff]  ;;  %v4764_v51 = vld [vmem:[%s7478_s6 + $0x24] sm:$0xff] }
 0x3f3   :  { %v4776_v52 = vld [vmem:[%s7478_s6 + $0x90] sm:$0xff] }
 0x3f4   :  { %v2537_v6 = vmax.f32 %v2274_v0, %v2504_v36  ;;  %v2563_v25 = vpack.c.bf16 %v2534_v35, %v2533_v62  ;;  %v2561_v62 = vpack.c.bf16 %v2530_v31, %v2529_v39  ;;  %v4360_v39 = vld [vmem:[%s7477_s3 + $0x40] sm:$0xf]  ;;  %v3284_v36 = vunpack.c.l.b16 %v4503_v54 }
 0x3f5   :  { %v4361_v47 = vor.u32 %v4757_v53, %v4360_v39 }
 0x3f6   :  { %v3289_v59 = vpack.c.b16 %v3284_v36, %v3284_v36 }
 0x3f7   :  { %2658 = vmatmul.bf16.gmra.mxu2 %v4345_v12 }
 0x3f8   :  { %v2426_v30 = vpop.f32.mrf.mxu0  ;;  %v3313_v18 = vsel %vm2819_vm8, %v3289_v59, 0 }
 0x3f9   :  { %v2505_v21 = vpop.f32.mrf.mxu1  ;;  %3318 = vmatpush.bf16.msra.mxu0 %v3313_v18 }
 0x3fa   :  { %v2506_v9 = vadd.f32 %v2505_v21, %v2426_v30  ;;  %v4368_v30 = vld [vmem:[%s7477_s3 + $0x50] sm:$0xf]  ;;  %v4759_v21 = vld [vmem:[%s7477_s3 + $0x54] sm:$0xf0] }
 0x3fb   :  { %v4369_v2 = vor.u32 %v4759_v21, %v4368_v30 }
 0x3fc   :  { %v2538_v5 = vmax.f32 %v2276_v41, %v2506_v9 }
 0x3fe   :  { %v2565_v27 = vpack.c.bf16 %v2538_v5, %v2537_v6  ;;  %v4767_v5 = vld [vmem:[%s7478_s6 + $0x3c] sm:$0xff]  ;;  %v4766_v6 = vld [vmem:[%s7478_s6 + $0x34] sm:$0xff] }
 0x400   :  { %v2429_v3 = vpop.f32.mrf.mxu0 }
 0x401   :  { %v2508_v60 = vpop.f32.mrf.mxu1 }
 0x402   :  { %v2509_v55 = vadd.f32 %v2508_v60, %v2429_v3  ;;  %v2879_v3 = vunpack.c.l.b16 %v2732_v1 }
 0x404   :  { %v2539_v63 = vmax.f32 %v2279_v11, %v2509_v55  ;;  %v2884_v60 = vpack.c.b16 %v2879_v3, %v2879_v3  ;;  %v4756_v55 = vld [vmem:[%s7477_s3 + $0x44] sm:$0xf]  ;;  %v4758_v11 = vld [vmem:[%s7477_s3 + $0x54] sm:$0xf] }
 0x406   :  { %v2908_v34 = vsel %vm2819_vm8, %v2884_v60, 0 }
 0x408   :  { %v2431_v33 = vpop.f32.mrf.mxu0 }
 0x409   :  { %v2510_v58 = vpop.f32.mrf.mxu1 }
 0x40a   :  { %v2511_v42 = vadd.f32 %v2510_v58, %v2431_v33  ;;  %v4362_v33 = vld [vmem:[%s7477_s3 + $0x48] sm:$0xf0] }
 0x40b   :  { %v4365_v58 = vor.u32 %v4756_v55, %v4362_v33 }
 0x40c   :  { %v2540_v23 = vmax.f32 %v2281_v46, %v2511_v42  ;;  %v4370_v46 = vld [vmem:[%s7477_s3 + $0x58] sm:$0xf0]  ;;  %v4388_v42 = vld [vmem:[%s7478_s6 + $0x44] sm:$0xf] }
 0x40d   :  { %v4373_v9 = vor.u32 %v4758_v11, %v4370_v46  ;;  %v2790_v41 = vunpack.c.l.b16 %v4388_v42 }
 0x40e   :  { %v2566_v26 = vpack.c.bf16 %v2540_v23, %v2539_v63  ;;  %v4761_v23 = vld [vmem:[%s7478_s6 + $0x8] sm:$0xff] }
 0x40f   :  { %v2795_v63 = vpack.c.b16 %v2790_v41, %v2790_v41 }
 0x410   :  { %2681 = vmatpush.bf16.msrb.mxu3 %v2566_v26  ;;  %v4779_v26 = vld [vmem:[%s7478_s6 + $0xa8] sm:$0xff] }
 0x411   :  { %v2821_v0 = vsel %vm2819_vm8, %v2795_v63, 0  ;;  %3319 = vmatpush.bf16.msra.mxu0 %v4779_v26 }
 0x412   :  { %2826 = vmatpush.bf16.msra.mxu2 %v2821_v0 }
 0x414   :  { %2682 = vmatpush.bf16.msrb.mxu3 %v2565_v27 }
 0x415   :  { %3320 = vmatpush.bf16.msra.mxu0 %v4778_v4 }
 0x416   :  { %2827 = vmatpush.bf16.msra.mxu2 %v4767_v5 }
 0x418   :  { %2683 = vmatpush.bf16.msrb.mxu3 %v2564_v17 }
 0x419   :  { %3321 = vmatpush.bf16.msra.mxu0 %v4777_v10 }
 0x41a   :  { %2828 = vmatpush.bf16.msra.mxu2 %v4766_v6 }
 0x41c   :  { %2684 = vmatpush.bf16.msrb.mxu3 %v2563_v25 }
 0x41d   :  { %3322 = vmatpush.bf16.msra.mxu0 %v4776_v52 }
 0x41e   :  { %2829 = vmatpush.bf16.msra.mxu2 %v4765_v24 }
 0x420   :  { %2685 = vmatpush.bf16.msrb.mxu3 %v6822_v43  ;;  %v4755_v43 = vld [vmem:[%s7477_s3 + $0x34] sm:$0xf0] }
 0x421   :  { %v4353_v38 = vor.u32 %v4755_v43, %v4352_v16 }
 0x422   :  { %2830 = vmatpush.bf16.msra.mxu2 %v4764_v51 }
 0x423   :  { %2663 = vmatmul.bf16.gmra.mxu2 %v4353_v38 }
 0x424   :  { %2686 = vmatpush.bf16.msrb.mxu3 %v2561_v62 }
 0x427   :  { %4374 = vmatmul.msk.bf16.vlgmr.msrb.gmra.mxu3 %vm2621_vm7, %v4333_v37 }
 0x428   :  { %2913 = vmatpush.bf16.msra.mxu3 %v2908_v34 }
 0x42c   :  { %2914 = vmatpush.bf16.msra.mxu3 %v4763_v61 }
 0x430   :  { %2915 = vmatpush.bf16.msra.mxu3 %v4762_v57 }
 0x433   :  { %2668 = vmatmul.bf16.gmra.mxu2 %v4361_v47 }
 0x434   :  { %2916 = vmatpush.bf16.msra.mxu3 %v4761_v23 }
 0x437   :  { %4375 = vmatmul.msk.bf16.gmra.mxu3 %vm2621_vm7, %v4341_v19 }
 0x438   :  { %2917 = vmatpush.bf16.msra.mxu3 %v4760_v7 }
 0x443   :  { %2673 = vmatmul.bf16.gmra.mxu2 %v4369_v2 }
 0x447   :  { %4376 = vmatmul.msk.bf16.gmra.mxu3 %vm2621_vm7, %v4349_v44 }
 0x457   :  { %4377 = vmatmul.msk.bf16.gmra.mxu3 %vm2621_vm7, %v4357_v20 }
 0x45a   :  { %v2649_v56 = vpop.f32.mrf.mxu2 }
 0x462   :  { %v2651_v27 = vpop.f32.mrf.mxu2 }
 0x467   :  { %4378 = vmatmul.msk.bf16.gmra.mxu3 %vm2621_vm7, %v4365_v58 }
 0x46a   :  { %v2654_v35 = vpop.f32.mrf.mxu2 }
 0x472   :  { %v2656_v25 = vpop.f32.mrf.mxu2 }
 0x477   :  { %4379 = vmatmul.msk.bf16.gmra.mxu3 %vm2621_vm7, %v4373_v9 }
 0x47a   :  { %v2659_v32 = vpop.f32.mrf.mxu2 }
 0x482   :  { %v2661_v58 = vpop.f32.mrf.mxu2 }
 0x4a6   :  { %v2664_v4 = vpop.f32.mrf.mxu2 }
 0x4aa   :  { %v2688_v17 = vpop.f32.mrf.mxu3 }
 0x4ab   :  { %v6964_v22 = vadd.f32 %v2688_v17, %v2649_v56 }
 0x4ad   :  { %v2733_v37 = vrot.slane %v6964_v22, 1  ;;  %v2949_v16 = vrot.slane %v6964_v22, 2  ;;  %v3088_v43 = vrot.slane %v6964_v22, 3  ;;  %v3227_v38 = vrot.slane %v6964_v22, 4 }
 0x4b2   :  { %v2690_v29 = vpop.f32.mrf.mxu3 }
 0x4b3   :  { %v2691_v48 = vadd.f32 %v2690_v29, %v2651_v27 }
 0x4b5   :  { %v2718_v45 = vpack.c.bf16 %v2691_v48, %v6964_v22  ;;  %v2734_v13 = vrot.slane %v2691_v48, 1  ;;  %v2950_v12 = vrot.slane %v2691_v48, 2  ;;  %v3089_v31 = vrot.slane %v2691_v48, 3 }
 0x4b6   :  { %v3228_v15 = vrot.slane %v2691_v48, 4 }
 0x4b7   :  { %4427 = vmatmul.msk.bf16.vlgmr.msra.gmra.mxu3 %vm2800_vm9, %v2718_v45  ;;  %v2755_v40 = vsel %vm130_vm1, %v2733_v37, %v2734_v13  ;;  %v6984_v44 = vsel %vm1012_vm4, %v3088_v43, %v3089_v31  ;;  %v6990_v30 = vsel %vm656_vm3, %v2949_v16, %v2950_v12 }
 0x4b8   :  { %v3249_v14 = vsel %vm1368_vm5, %v3227_v38, %v3228_v15 }
 0x4ba   :  { %v2693_v28 = vpop.f32.mrf.mxu3 }
 0x4bb   :  { %v2694_v62 = vadd.f32 %v2693_v28, %v2654_v35 }
 0x4bd   :  { %v2735_v50 = vrot.slane %v2694_v62, 1  ;;  %v2951_v19 = vrot.slane %v2694_v62, 2  ;;  %v3090_v39 = vrot.slane %v2694_v62, 3  ;;  %v3229_v53 = vrot.slane %v2694_v62, 4 }
 0x4bf   :  { %v2754_v21 = vsel %vm130_vm1, %v2734_v13, %v2735_v50  ;;  %v6996_v2 = vsel %vm656_vm3, %v2950_v12, %v2951_v19  ;;  %v7000_v49 = vsel %vm1012_vm4, %v3089_v31, %v3090_v39  ;;  %v3248_v8 = vsel %vm1368_vm5, %v3228_v15, %v3229_v53  ;;  %v2666_v13 = vpop.f32.mrf.mxu2 }
 0x4c0   :  { %v2757_v20 = vpack.c.bf16 %v2754_v21, %v2755_v40  ;;  %v3251_v1 = vpack.c.bf16 %v3248_v8, %v3249_v14  ;;  %v3112_v3 = vpack.c.bf16 %v7000_v49, %v6984_v44  ;;  %v2973_v60 = vpack.c.bf16 %v6996_v2, %v6990_v30 }
 0x4c2   :  { %v2695_v34 = vpop.f32.mrf.mxu3  ;;  %4405 = vmatmul.msk.bf16.vlgmr.msra.gmra.mxu2 %vm2800_vm9, %v2757_v20  ;;  %4520 = vmatmul.msk.bf16.vlgmr.msra.gmra.mxu0 %vm2800_vm9, %v3251_v1  ;;  %v4472_v1 = vld [vmem:[%s7478_s6 + $0x8c] sm:$0xf] }
 0x4c3   :  { %v2696_v61 = vadd.f32 %v2695_v34, %v2656_v25 }
 0x4c5   :  { %v2719_v55 = vpack.c.bf16 %v2696_v61, %v2694_v62  ;;  %v3091_v33 = vrot.slane %v2696_v61, 3  ;;  %v2952_v11 = vrot.slane %v2696_v61, 2  ;;  %v2736_v54 = vrot.slane %v2696_v61, 1 }
 0x4c6   :  { %v3230_v57 = vrot.slane %v2696_v61, 4 }
 0x4c7   :  { %4428 = vmatmul.msk.bf16.gmra.mxu3 %vm2800_vm9, %v2719_v55  ;;  %v7013_v46 = vsel %vm1012_vm4, %v3090_v39, %v3091_v33  ;;  %v7017_v9 = vsel %vm656_vm3, %v2951_v19, %v2952_v11  ;;  %v2753_v0 = vsel %vm130_vm1, %v2735_v50, %v2736_v54  ;;  %v3145_v55 = vunpack.c.l.b16 %v4472_v1 }
 0x4c8   :  { %v3247_v18 = vsel %vm1368_vm5, %v3229_v53, %v3230_v57 }
 0x4ca   :  { %v2698_v42 = vpop.f32.mrf.mxu3 }
 0x4cb   :  { %v2699_v41 = vadd.f32 %v2698_v42, %v2659_v32  ;;  %v2669_v42 = vpop.f32.mrf.mxu2 }
 0x4cd   :  { %v2737_v36 = vrot.slane %v2699_v41, 1  ;;  %v3231_v63 = vrot.slane %v2699_v41, 4  ;;  %v3092_v23 = vrot.slane %v2699_v41, 3  ;;  %v2953_v59 = vrot.slane %v2699_v41, 2 }
 0x4cf   :  { %v2752_v5 = vsel %vm130_vm1, %v2736_v54, %v2737_v36  ;;  %v3246_v26 = vsel %vm1368_vm5, %v3230_v57, %v3231_v63  ;;  %v7029_v56 = vsel %vm1012_vm4, %v3091_v33, %v3092_v23  ;;  %v7033_v7 = vsel %vm656_vm3, %v2952_v11, %v2953_v59 }
 0x4d0   :  { %v2758_v6 = vpack.c.bf16 %v2752_v5, %v2753_v0  ;;  %v3252_v24 = vpack.c.bf16 %v3246_v26, %v3247_v18  ;;  %v3113_v10 = vpack.c.bf16 %v7029_v56, %v7013_v46  ;;  %v2974_v27 = vpack.c.bf16 %v7033_v7, %v7017_v9 }
 0x4d1   :  { %v3150_v11 = vpack.c.b16 %v3145_v55, %v3145_v55  ;;  %v4772_v55 = vld [vmem:[%s7478_s6 + $0x6c] sm:$0xff] }
 0x4d2   :  { %v2700_v51 = vpop.f32.mrf.mxu3  ;;  %4406 = vmatmul.msk.bf16.gmra.mxu2 %vm2800_vm9, %v2758_v6  ;;  %4521 = vmatmul.msk.bf16.gmra.mxu0 %vm2800_vm9, %v3252_v24 }
 0x4d3   :  { %v2701_v52 = vadd.f32 %v2700_v51, %v2661_v58  ;;  %v3174_v57 = vsel %vm2819_vm8, %v3150_v11, 0 }
 0x4d4   :  { %3179 = vmatpush.bf16.msrb.mxu3 %v3174_v57 }
 0x4d5   :  { %v2720_v35 = vpack.c.bf16 %v2701_v52, %v2699_v41  ;;  %v3093_v17 = vrot.slane %v2701_v52, 3  ;;  %v2954_v29 = vrot.slane %v2701_v52, 2  ;;  %v2738_v12 = vrot.slane %v2701_v52, 1 }
 0x4d6   :  { %v3232_v31 = vrot.slane %v2701_v52, 4 }
 0x4d7   :  { %4429 = vmatmul.msk.bf16.gmra.mxu3 %vm2800_vm9, %v2720_v35  ;;  %v7044_v25 = vsel %vm1012_vm4, %v3092_v23, %v3093_v17  ;;  %v7048_v48 = vsel %vm656_vm3, %v2953_v59, %v2954_v29  ;;  %v2751_v19 = vsel %vm130_vm1, %v2737_v36, %v2738_v12  ;;  %v4441_v23 = vld [vmem:[%s7478_s6 + $0x68] sm:$0xf] }
 0x4d8   :  { %v3245_v39 = vsel %vm1368_vm5, %v3231_v63, %v3232_v31  ;;  %v4775_v63 = vld [vmem:[%s7478_s6 + $0x84] sm:$0xff]  ;;  %v3006_v59 = vunpack.c.l.b16 %v4441_v23 }
 0x4d9   :  { %3180 = vmatpush.bf16.msrb.mxu3 %v4775_v63 }
 0x4da   :  { %v2703_v45 = vpop.f32.mrf.mxu3  ;;  %v3011_v24 = vpack.c.b16 %v3006_v59, %v3006_v59 }
 0x4db   :  { %v2704_v15 = vadd.f32 %v2703_v45, %v2664_v4  ;;  %v4774_v4 = vld [vmem:[%s7478_s6 + $0x7c] sm:$0xff] }
 0x4dc   :  { %v3035_v52 = vsel %vm2819_vm8, %v3011_v24, 0 }
 0x4dd   :  { %v2739_v28 = vrot.slane %v2704_v15, 1  ;;  %v3233_v62 = vrot.slane %v2704_v15, 4  ;;  %v3094_v32 = vrot.slane %v2704_v15, 3  ;;  %v2955_v50 = vrot.slane %v2704_v15, 2  ;;  %3040 = vmatpush.bf16.msrb.mxu2 %v3035_v52  ;;  %3181 = vmatpush.bf16.msrb.mxu3 %v4774_v4 }
 0x4df   :  { %v2750_v53 = vsel %vm130_vm1, %v2738_v12, %v2739_v28  ;;  %v3244_v40 = vsel %vm1368_vm5, %v3232_v31, %v3233_v62  ;;  %v7060_v14 = vsel %vm1012_vm4, %v3093_v17, %v3094_v32  ;;  %v7064_v21 = vsel %vm656_vm3, %v2954_v29, %v2955_v50 }
 0x4e0   :  { %v2759_v8 = vpack.c.bf16 %v2750_v53, %v2751_v19  ;;  %v3253_v20 = vpack.c.bf16 %v3244_v40, %v3245_v39  ;;  %v3114_v34 = vpack.c.bf16 %v7060_v14, %v7044_v25  ;;  %v2975_v61 = vpack.c.bf16 %v7064_v21, %v7048_v48 }
 0x4e2   :  { %v2705_v33 = vpop.f32.mrf.mxu3  ;;  %4407 = vmatmul.msk.bf16.gmra.mxu2 %vm2800_vm9, %v2759_v8  ;;  %4522 = vmatmul.msk.bf16.gmra.mxu0 %vm2800_vm9, %v3253_v20  ;;  %v4771_v20 = vld [vmem:[%s7478_s6 + $0x60] sm:$0xff] }
 0x4e3   :  { %v2706_v58 = vadd.f32 %v2705_v33, %v2666_v13  ;;  %v2671_v13 = vpop.f32.mrf.mxu2  ;;  %3041 = vmatpush.bf16.msrb.mxu2 %v4771_v20  ;;  %v4770_v33 = vld [vmem:[%s7478_s6 + $0x58] sm:$0xff] }
 0x4e5   :  { %v2721_v54 = vpack.c.bf16 %v2706_v58, %v2704_v15  ;;  %v3095_v41 = vrot.slane %v2706_v58, 3  ;;  %v2956_v36 = vrot.slane %v2706_v58, 2  ;;  %v2740_v26 = vrot.slane %v2706_v58, 1 }
 0x4e6   :  { %v3234_v6 = vrot.slane %v2706_v58, 4 }
 0x4e7   :  { %4430 = vmatmul.msk.bf16.gmra.mxu3 %vm2800_vm9, %v2721_v54  ;;  %v7085_v0 = vsel %vm1012_vm4, %v3094_v32, %v3095_v41  ;;  %v7089_v18 = vsel %vm656_vm3, %v2955_v50, %v2956_v36  ;;  %v2749_v12 = vsel %vm130_vm1, %v2739_v28, %v2740_v26  ;;  %v4773_v50 = vld [vmem:[%s7478_s6 + $0x74] sm:$0xff]  ;;  %3042 = vmatpush.bf16.msrb.mxu2 %v4770_v33 }
 0x4e8   :  { %v3243_v31 = vsel %vm1368_vm5, %v3233_v62, %v3234_v6  ;;  %3182 = vmatpush.bf16.msrb.mxu3 %v4773_v50 }
 0x4ea   :  { %v2708_v5 = vpop.f32.mrf.mxu3 }
 0x4eb   :  { %v2709_v51 = vadd.f32 %v2708_v5, %v2669_v42  ;;  %v2674_v57 = vpop.f32.mrf.mxu2 }
 0x4ec   :  { %3183 = vmatpush.bf16.msrb.mxu3 %v4772_v55 }
 0x4ed   :  { %v2741_v35 = vrot.slane %v2709_v51, 1  ;;  %v3235_v17 = vrot.slane %v2709_v51, 4  ;;  %v3096_v29 = vrot.slane %v2709_v51, 3  ;;  %v2957_v45 = vrot.slane %v2709_v51, 2 }
 0x4ef   :  { %v2748_v15 = vsel %vm130_vm1, %v2740_v26, %v2741_v35  ;;  %v3242_v32 = vsel %vm1368_vm5, %v3234_v6, %v3235_v17  ;;  %v7108_v19 = vsel %vm1012_vm4, %v3095_v41, %v3096_v29  ;;  %v7112_v28 = vsel %vm656_vm3, %v2956_v36, %v2957_v45  ;;  %v4769_v41 = vld [vmem:[%s7478_s6 + $0x50] sm:$0xff]  ;;  %v4768_v26 = vld [vmem:[%s7478_s6 + $0x48] sm:$0xff] }
 0x4f0   :  { %v2760_v62 = vpack.c.bf16 %v2748_v15, %v2749_v12  ;;  %v3254_v39 = vpack.c.bf16 %v3242_v32, %v3243_v31  ;;  %v3115_v53 = vpack.c.bf16 %v7108_v19, %v7085_v0  ;;  %v2976_v40 = vpack.c.bf16 %v7112_v28, %v7089_v18  ;;  %3043 = vmatpush.bf16.msrb.mxu2 %v4769_v41 }
 0x4f2   :  { %v2710_v8 = vpop.f32.mrf.mxu3  ;;  %4408 = vmatmul.msk.bf16.gmra.mxu2 %vm2800_vm9, %v2760_v62  ;;  %4523 = vmatmul.msk.bf16.gmra.mxu0 %vm2800_vm9, %v3254_v39 }
 0x4f3   :  { %v2711_v1 = vadd.f32 %v2710_v8, %v2671_v13 }
 0x4f4   :  { %3044 = vmatpush.bf16.msrb.mxu2 %v4768_v26 }
 0x4f5   :  { %v2722_v58 = vpack.c.bf16 %v2711_v1, %v2709_v51  ;;  %v3097_v11 = vrot.slane %v2711_v1, 3  ;;  %v2958_v42 = vrot.slane %v2711_v1, 2  ;;  %v2742_v23 = vrot.slane %v2711_v1, 1 }
 0x4f6   :  { %v3236_v59 = vrot.slane %v2711_v1, 4 }
 0x4f7   :  { %4431 = vmatmul.msk.bf16.gmra.mxu3 %vm2800_vm9, %v2722_v58  ;;  %v7132_v54 = vsel %vm1012_vm4, %v3096_v29, %v3097_v11  ;;  %v7139_v36 = vsel %vm656_vm3, %v2957_v45, %v2958_v42  ;;  %v2747_v52 = vsel %vm130_vm1, %v2741_v35, %v2742_v23 }
 0x4f8   :  { %v3241_v29 = vsel %vm1368_vm5, %v3235_v17, %v3236_v59  ;;  %v2676_v17 = vpop.f32.mrf.mxu2 }
 0x4fa   :  { %v2713_v63 = vpop.f32.mrf.mxu3 }
 0x4fb   :  { %v2714_v5 = vadd.f32 %v2713_v63, %v2674_v57 }
 0x4fd   :  { %v2743_v6 = vrot.slane %v2714_v5, 1  ;;  %v3237_v4 = vrot.slane %v2714_v5, 4  ;;  %v3098_v24 = vrot.slane %v2714_v5, 3  ;;  %v2959_v51 = vrot.slane %v2714_v5, 2 }
 0x4ff   :  { %v2746_v45 = vsel %vm130_vm1, %v2742_v23, %v2743_v6  ;;  %v3240_v13 = vsel %vm1368_vm5, %v3236_v59, %v3237_v4  ;;  %v3101_v12 = vsel %vm1012_vm4, %v3097_v11, %v3098_v24  ;;  %v2962_v31 = vsel %vm656_vm3, %v2958_v42, %v2959_v51 }
 0x500   :  { %v2761_v15 = vpack.c.bf16 %v2746_v45, %v2747_v52  ;;  %v3255_v32 = vpack.c.bf16 %v3240_v13, %v3241_v29  ;;  %v3116_v35 = vpack.c.bf16 %v3101_v12, %v7132_v54  ;;  %v2977_v50 = vpack.c.bf16 %v2962_v31, %v7139_v36 }
 0x502   :  { %v2715_v62 = vpop.f32.mrf.mxu3  ;;  %4409 = vmatmul.msk.bf16.gmra.mxu2 %vm2800_vm9, %v2761_v15  ;;  %4524 = vmatmul.msk.bf16.gmra.mxu0 %vm2800_vm9, %v3255_v32 }
 0x503   :  { %v2716_v39 = vadd.f32 %v2715_v62, %v2676_v17 }
 0x505   :  { %v2723_v8 = vpack.c.bf16 %v2716_v39, %v2714_v5  ;;  %v3099_v20 = vrot.slane %v2716_v39, 3  ;;  %v2960_v1 = vrot.slane %v2716_v39, 2  ;;  %v2744_v55 = vrot.slane %v2716_v39, 1 }
 0x506   :  { %v3238_v11 = vrot.slane %v2716_v39, 4 }
 0x507   :  { %4432 = vmatmul.msk.bf16.gmra.mxu3 %vm2800_vm9, %v2723_v8  ;;  %v3100_v33 = vsel %vm1012_vm4, %v3098_v24, %v3099_v20  ;;  %v3111_v58 = vsel %vm1012_vm4, %v3099_v20, %v3088_v43  ;;  %v2961_v54 = vsel %vm656_vm3, %v2959_v51, %v2960_v1  ;;  %v2972_v57 = vsel %vm656_vm3, %v2960_v1, %v2949_v16 }
 0x508   :  { %v3117_v42 = vpack.c.bf16 %v3111_v58, %v3100_v33  ;;  %v2978_v41 = vpack.c.bf16 %v2972_v57, %v2961_v54  ;;  %v2745_v36 = vsel %vm130_vm1, %v2743_v6, %v2744_v55  ;;  %v2756_v63 = vsel %vm130_vm1, %v2744_v55, %v2733_v37  ;;  %v7244_v33 = vld [vmem:[%s7479_s7] ss:$0 sm:$0xff]  ;;  %s4881_s7 = smov 112  }
 0x509   :  { %v3239_v43 = vsel %vm1368_vm5, %v3237_v4, %v3238_v11  ;;  %v3250_v23 = vsel %vm1368_vm5, %v3238_v11, %v3227_v38  ;;  %v2762_v59 = vpack.c.bf16 %v2756_v63, %v2745_v36 }
 0x50a   :  { %v3256_v5 = vpack.c.bf16 %v3250_v23, %v3239_v43 }
 0x512   :  { %4410 = vmatmul.msk.bf16.gmra.mxu2 %vm2800_vm9, %v2762_v59  ;;  %4525 = vmatmul.msk.bf16.gmra.mxu0 %vm2800_vm9, %v3256_v5 }
 0x517   :  { %4489 = vmatmul.msk.bf16.vlgmr.msrb.gmra.mxu3 %vm2800_vm9, %v3112_v3 }
 0x522   :  { %4458 = vmatmul.msk.bf16.vlgmr.msrb.gmra.mxu2 %vm2800_vm9, %v2973_v60 }
 0x527   :  { %4490 = vmatmul.msk.bf16.gmra.mxu3 %vm2800_vm9, %v3113_v10 }
 0x532   :  { %4459 = vmatmul.msk.bf16.gmra.mxu2 %vm2800_vm9, %v2974_v27 }
 0x537   :  { %4491 = vmatmul.msk.bf16.gmra.mxu3 %vm2800_vm9, %v3114_v34 }
 0x53a   :  { %v2919_v22 = vpop.f32.mrf.mxu3 }
 0x53f   :  { %v3324_v6 = vpop.f32.mrf.mxu0 }
 0x542   :  { %v2921_v37 = vpop.f32.mrf.mxu3  ;;  %4460 = vmatmul.msk.bf16.gmra.mxu2 %vm2800_vm9, %v2975_v61 }
 0x545   :  { %v2832_v16 = vpop.f32.mrf.mxu2 }
 0x546   :  { %v2920_v38 = vadd.f32 %v2919_v22, %v2832_v16 }
 0x547   :  { %4492 = vmatmul.msk.bf16.gmra.mxu3 %vm2800_vm9, %v3115_v53  ;;  %v3326_v52 = vpop.f32.mrf.mxu0 }
 0x54a   :  { %v2924_v44 = vpop.f32.mrf.mxu3 }
 0x54d   :  { %v2834_v30 = vpop.f32.mrf.mxu2 }
 0x54f   :  { %v3329_v31 = vpop.f32.mrf.mxu0 }
 0x552   :  { %v2926_v2 = vpop.f32.mrf.mxu3  ;;  %4461 = vmatmul.msk.bf16.gmra.mxu2 %vm2800_vm9, %v2976_v40 }
 0x555   :  { %v2837_v49 = vpop.f32.mrf.mxu2 }
 0x556   :  { %v2925_v3 = vadd.f32 %v2924_v44, %v2837_v49 }
 0x557   :  { %4493 = vmatmul.msk.bf16.gmra.mxu3 %vm2800_vm9, %v3116_v35  ;;  %v2922_v35 = vadd.f32 %v2921_v37, %v2834_v30  ;;  %v3331_v8 = vpop.f32.mrf.mxu0 }
 0x55a   :  { %v2929_v60 = vpop.f32.mrf.mxu3 }
 0x55d   :  { %v2839_v46 = vpop.f32.mrf.mxu2 }
 0x55e   :  { %v2927_v59 = vadd.f32 %v2926_v2, %v2839_v46 }
 0x55f   :  { %v3334_v23 = vpop.f32.mrf.mxu0 }
 0x562   :  { %v7220_v9 = vpop.f32.mrf.mxu3  ;;  %4462 = vmatmul.msk.bf16.gmra.mxu2 %vm2800_vm9, %v2977_v50 }
 0x565   :  { %v2842_v56 = vpop.f32.mrf.mxu2 }
 0x566   :  { %v7223_v7 = vadd.f32 %v2929_v60, %v2842_v56 }
 0x567   :  { %4494 = vmatmul.msk.bf16.gmra.mxu3 %vm2800_vm9, %v3117_v42 }
 0x56a   :  { %v2934_v10 = vpop.f32.mrf.mxu3 }
 0x56d   :  { %v7226_v27 = vpop.f32.mrf.mxu2 }
 0x572   :  { %v2936_v25 = vpop.f32.mrf.mxu3  ;;  %4463 = vmatmul.msk.bf16.gmra.mxu2 %vm2800_vm9, %v2978_v41 }
 0x575   :  { %v2847_v48 = vpop.f32.mrf.mxu2 }
 0x576   :  { %v7229_v14 = vadd.f32 %v2934_v10, %v2847_v48  ;;  %v3336_v48 = vpop.f32.mrf.mxu0 }
 0x57a   :  { %v2939_v21 = vpop.f32.mrf.mxu3 }
 0x57d   :  { %v2849_v34 = vpop.f32.mrf.mxu2 }
 0x57e   :  { %v7231_v61 = vadd.f32 %v2936_v25, %v2849_v34 }
 0x582   :  { %v2941_v0 = vpop.f32.mrf.mxu3 }
 0x585   :  { %v2852_v18 = vpop.f32.mrf.mxu2 }
 0x586   :  { %v7233_v19 = vadd.f32 %v2939_v21, %v2852_v18 }
 0x58a   :  { %v2944_v28 = vpop.f32.mrf.mxu3 }
 0x58d   :  { %v2854_v53 = vpop.f32.mrf.mxu2 }
 0x58e   :  { %v7235_v40 = vadd.f32 %v2941_v0, %v2854_v53 }
 0x592   :  { %v2946_v26 = vpop.f32.mrf.mxu3 }
 0x595   :  { %v2857_v4 = vpop.f32.mrf.mxu2 }
 0x596   :  { %v7237_v24 = vadd.f32 %v2944_v28, %v2857_v4 }
 0x59a   :  { %v3185_v51 = vpop.f32.mrf.mxu3 }
 0x59d   :  { %v2859_v29 = vpop.f32.mrf.mxu2 }
 0x59e   :  { %v7239_v45 = vadd.f32 %v2946_v26, %v2859_v29  ;;  %v2932_v26 = vadd.f32 %v7220_v9, %v7226_v27 }
 0x5a2   :  { %v3187_v13 = vpop.f32.mrf.mxu3 }
 0x5a5   :  { %v3046_v12 = vpop.f32.mrf.mxu2 }
 0x5a6   :  { %v3076_v15 = vadd.f32 %v3046_v12, %v2920_v38  ;;  %v3339_v12 = vpop.f32.mrf.mxu0 }
 0x5a8   :  { %v3215_v17 = vadd.f32 %v3185_v51, %v3076_v15 }
 0x5aa   :  { %v3190_v32 = vpop.f32.mrf.mxu3  ;;  %v3354_v20 = vadd.f32 %v3324_v6, %v3215_v17 }
 0x5ac   :  { %v3370_v54 = vadd.f32 %v7244_v33, %v3354_v20 }
 0x5ad   :  { %v3048_v50 = vpop.f32.mrf.mxu2 }
 0x5ae   :  { %v3077_v62 = vadd.f32 %v3048_v50, %v2922_v35  ;;  %v3382_v43 = vmax.f32 %v3370_v54, 0.0 }
 0x5b0   :  { %v3216_v39 = vadd.f32 %v3187_v13, %v3077_v62  ;;  %v7249_v44 = vrot.slane %v3382_v43, 1 }
 0x5b2   :  { %v3355_v1 = vadd.f32 %v3326_v52, %v3216_v39  ;;  %v3192_v55 = vpop.f32.mrf.mxu3 }
 0x5b4   :  { %v3371_v58 = vadd.f32 %v7244_v33, %v3355_v1 }
 0x5b5   :  { %v3051_v11 = vpop.f32.mrf.mxu2 }
 0x5b6   :  { %v3078_v42 = vadd.f32 %v3051_v11, %v2925_v3  ;;  %v3383_v41 = vmax.f32 %v3371_v58, 0.0 }
 0x5b8   :  { %v3217_v57 = vadd.f32 %v3190_v32, %v3078_v42  ;;  %v3395_v22 = vrot.slane %v3383_v41, 1 }
 0x5ba   :  { %v3356_v36 = vadd.f32 %v3329_v31, %v3217_v57  ;;  %v3195_v63 = vpop.f32.mrf.mxu3  ;;  %v3416_v3 = vsel %vm130_vm1, %v7249_v44, %v3395_v22 }
 0x5bb   :  { %v7256_v2 = vmax.f32 %v3382_v43, %v3416_v3 }
 0x5bc   :  { %v3372_v5 = vadd.f32 %v7244_v33, %v3356_v36 }
 0x5bd   :  { %v3053_v37 = vpop.f32.mrf.mxu2 }
 0x5be   :  { %v3384_v16 = vmax.f32 %v3372_v5, 0.0  ;;  %v3079_v38 = vadd.f32 %v3053_v37, %v2927_v59 }
 0x5c0   :  { %v3218_v30 = vadd.f32 %v3192_v55, %v3079_v38  ;;  %v3396_v49 = vrot.slane %v3384_v16, 1  ;;  %v3341_v55 = vpop.f32.mrf.mxu0 }
 0x5c2   :  { %v3357_v60 = vadd.f32 %v3331_v8, %v3218_v30  ;;  %v3415_v56 = vsel %vm130_vm1, %v3395_v22, %v3396_v49  ;;  %v3197_v10 = vpop.f32.mrf.mxu3 }
 0x5c3   :  { %v7258_v46 = vmax.f32 %v3383_v41, %v3415_v56 }
 0x5c4   :  { %v3373_v25 = vadd.f32 %v7244_v33, %v3357_v60 }
 0x5c5   :  { %v3056_v21 = vpop.f32.mrf.mxu2  ;;  %v4819_v34 = vpack.i.bf16 %v7258_v46, %v7256_v2 }
 0x5c6   :  { %v3080_v0 = vadd.f32 %v3056_v21, %v7223_v7  ;;  %v3385_v18 = vmax.f32 %v3373_v25, 0.0 }
 0x5c7   :  { %4820 = vrot.lane.b32.xlu0 %v4819_v34, %s4881_s7 }
 0x5c8   :  { %v3219_v28 = vadd.f32 %v3195_v63, %v3080_v0  ;;  %v3397_v6 = vrot.slane %v3385_v18, 1  ;;  %v3344_v5 = vpop.f32.mrf.mxu0 }
 0x5ca   :  { %v3358_v53 = vadd.f32 %v3334_v23, %v3219_v28  ;;  %v3200_v51 = vpop.f32.mrf.mxu3  ;;  %v3414_v7 = vsel %vm130_vm1, %v3396_v49, %v3397_v6 }
 0x5cb   :  { %v7272_v50 = vmax.f32 %v3384_v16, %v3414_v7 }
 0x5cc   :  { %v3374_v4 = vadd.f32 %v7244_v33, %v3358_v53 }
 0x5cd   :  { %v3058_v52 = vpop.f32.mrf.mxu2 }
 0x5ce   :  { %v3386_v29 = vmax.f32 %v3374_v4, 0.0  ;;  %v3081_v13 = vadd.f32 %v3058_v52, %v2932_v26 }
 0x5d0   :  { %v3398_v31 = vrot.slane %v3386_v29, 1  ;;  %v3220_v15 = vadd.f32 %v3197_v10, %v3081_v13  ;;  %v3346_v34 = vpop.f32.mrf.mxu0 }
 0x5d2   :  { %v3359_v32 = vadd.f32 %v3336_v48, %v3220_v15  ;;  %v3413_v35 = vsel %vm130_vm1, %v3397_v6, %v3398_v31  ;;  %v3202_v8 = vpop.f32.mrf.mxu3  ;;  %v4786_v6 = vld [vmem:[%s7480_s9 + $0x30] sm:$0xff] }
 0x5d3   :  { %v7274_v9 = vmax.f32 %v3385_v18, %v3413_v35 }
 0x5d4   :  { %v3375_v27 = vadd.f32 %v7244_v33, %v3359_v32 }
 0x5d5   :  { %v3061_v17 = vpop.f32.mrf.mxu2  ;;  %v4824_v62 = vpack.i.bf16 %v7274_v9, %v7272_v50 }
 0x5d6   :  { %v3082_v39 = vadd.f32 %v3061_v17, %v7229_v14  ;;  %v3387_v1 = vmax.f32 %v3375_v27, 0.0  ;;  %v4784_v17 = vld [vmem:[%s7480_s9 + $0x20] sm:$0xff] }
 0x5d7   :  { %4825 = vrot.lane.b32.xlu0 %v4824_v62, %s4881_s7 }
 0x5d8   :  { %v3221_v20 = vadd.f32 %v3200_v51, %v3082_v39  ;;  %v3399_v42 = vrot.slane %v3387_v1, 1  ;;  %v3349_v32 = vpop.f32.mrf.mxu0 }
 0x5da   :  { %v3360_v58 = vadd.f32 %v3339_v12, %v3221_v20  ;;  %v3412_v43 = vsel %vm130_vm1, %v3398_v31, %v3399_v42  ;;  %v3205_v14 = vpop.f32.mrf.mxu3  ;;  %v4785_v31 = vld [vmem:[%s7480_s9 + $0x28] sm:$0xff] }
 0x5db   :  { %v7287_v22 = vmax.f32 %v3386_v29, %v3412_v43 }
 0x5dc   :  { %v3376_v11 = vadd.f32 %v7244_v33, %v3360_v58 }
 0x5dd   :  { %v3063_v54 = vpop.f32.mrf.mxu2 }
 0x5de   :  { %v3388_v57 = vmax.f32 %v3376_v11, 0.0  ;;  %v3083_v41 = vadd.f32 %v3063_v54, %v7231_v61 }
 0x5e0   :  { %v3222_v36 = vadd.f32 %v3202_v8, %v3083_v41  ;;  %v3400_v63 = vrot.slane %v3388_v57, 1  ;;  %v4782_v41 = vld [vmem:[%s7480_s9 + $0x10] sm:$0xff] }
 0x5e2   :  { %v3361_v23 = vadd.f32 %v3341_v55, %v3222_v36  ;;  %v3411_v59 = vsel %vm130_vm1, %v3399_v42, %v3400_v63  ;;  %v3207_v25 = vpop.f32.mrf.mxu3 }
 0x5e3   :  { %v7289_v37 = vmax.f32 %v3387_v1, %v3411_v59  ;;  %v4783_v1 = vld [vmem:[%s7480_s9 + $0x18] sm:$0xff] }
 0x5e4   :  { %v3377_v16 = vadd.f32 %v7244_v33, %v3361_v23 }
 0x5e5   :  { %v3066_v38 = vpop.f32.mrf.mxu2  ;;  %v4829_v61 = vpack.i.bf16 %v7289_v37, %v7287_v22 }
 0x5e6   :  { %v3389_v30 = vmax.f32 %v3377_v16, 0.0  ;;  %v3084_v49 = vadd.f32 %v3066_v38, %v7233_v19  ;;  %v4787_v19 = vld [vmem:[%s7480_s9 + $0x38] sm:$0xff] }
 0x5e7   :  { %4830 = vrot.lane.b32.xlu1 %v4829_v61, %s4881_s7  ;;  %3536 = vmatpush.bf16.msra.mxu1 %v4787_v19 }
 0x5e8   :  { %v3401_v3 = vrot.slane %v3389_v30, 1  ;;  %v3223_v60 = vadd.f32 %v3205_v14, %v3084_v49  ;;  %v4780_v49 = vld [vmem:[%s7480_s9] sm:$0xff] }
 0x5ea   :  { %v3362_v56 = vadd.f32 %v3344_v5, %v3223_v60  ;;  %v3410_v10 = vsel %vm130_vm1, %v3400_v63, %v3401_v3 }
 0x5eb   :  { %v7298_v48 = vmax.f32 %v3388_v57, %v3410_v10  ;;  %3537 = vmatpush.bf16.msra.mxu1 %v4786_v6  ;;  %v3351_v57 = vpop.f32.mrf.mxu0 }
 0x5ec   :  { %v3378_v21 = vadd.f32 %v7244_v33, %v3362_v56 }
 0x5ed   :  { %v3068_v0 = vpop.f32.mrf.mxu2 }
 0x5ee   :  { %v3390_v18 = vmax.f32 %v3378_v21, 0.0  ;;  %v3085_v28 = vadd.f32 %v3068_v0, %v7235_v40  ;;  %v3210_v40 = vpop.f32.mrf.mxu3 }
 0x5ef   :  { %3538 = vmatpush.bf16.msra.mxu1 %v4785_v31 }
 0x5f0   :  { %v3402_v53 = vrot.slane %v3390_v18, 1  ;;  %v3224_v26 = vadd.f32 %v3207_v25, %v3085_v28 }
 0x5f2   :  { %v3363_v4 = vadd.f32 %v3346_v34, %v3224_v26  ;;  %v3409_v51 = vsel %vm130_vm1, %v3401_v3, %v3402_v53 }
 0x5f3   :  { %v7310_v52 = vmax.f32 %v3389_v30, %v3409_v51  ;;  %3539 = vmatpush.bf16.msra.mxu1 %v4784_v17 }
 0x5f4   :  { %v3379_v29 = vadd.f32 %v7244_v33, %v3363_v4 }
 0x5f5   :  { %v3071_v13 = vpop.f32.mrf.mxu2  ;;  %v4834_v12 = vpack.i.bf16 %v7310_v52, %v7298_v48 }
 0x5f6   :  { %v3086_v15 = vadd.f32 %v3071_v13, %v7237_v24  ;;  %v3391_v7 = vmax.f32 %v3379_v29, 0.0  ;;  %v3212_v11 = vpop.f32.mrf.mxu3 }
 0x5f7   :  { %4835 = vrot.lane.b32.xlu1 %v4834_v12, %s4881_s7  ;;  %3540 = vmatpush.bf16.msra.mxu1 %v4783_v1 }
 0x5f8   :  { %v3225_v35 = vadd.f32 %v3210_v40, %v3086_v15  ;;  %v3403_v27 = vrot.slane %v3391_v7, 1 }
 0x5fa   :  { %v3364_v62 = vadd.f32 %v3349_v32, %v3225_v35  ;;  %v3408_v39 = vsel %vm130_vm1, %v3402_v53, %v3403_v27 }
 0x5fb   :  { %v7325_v8 = vmax.f32 %v3390_v18, %v3408_v39  ;;  %3541 = vmatpush.bf16.msra.mxu1 %v4782_v41 }
 0x5fc   :  { %v3380_v20 = vadd.f32 %v7244_v33, %v3364_v62 }
 0x5fd   :  { %v3073_v24 = vpop.f32.mrf.mxu2 }
 0x5fe   :  { %v3392_v55 = vmax.f32 %v3380_v20, 0.0  ;;  %v3087_v58 = vadd.f32 %v3073_v24, %v7239_v45  ;;  %v4781_v45 = vld [vmem:[%s7480_s9 + $0x8] sm:$0xff] }
 0x5ff   :  { %3542 = vmatpush.bf16.msra.mxu1 %v4781_v45  ;;  %v4805_v45 = vld [vmem:[%s7481_s10 + $0x78] sm:$0xff] }
 0x600   :  { %v3226_v42 = vadd.f32 %v3212_v11, %v3087_v58  ;;  %v3404_v54 = vrot.slane %v3392_v55, 1 }
 0x602   :  { %v3365_v36 = vadd.f32 %v3351_v57, %v3226_v42  ;;  %v3407_v63 = vsel %vm130_vm1, %v3403_v27, %v3404_v54 }
 0x603   :  { %v3427_v43 = vmax.f32 %v3391_v7, %v3407_v63  ;;  %3543 = vmatpush.bf16.msra.mxu1 %v4780_v49  ;;  %v4794_v49 = vld [vmem:[%s7481_s10 + $0x20] sm:$0xff] }
 0x604   :  { %v3381_v14 = vadd.f32 %v7244_v33, %v3365_v36 }
 0x605   :  { %v4839_v23 = vpack.i.bf16 %v3427_v43, %v7325_v8 }
 0x606   :  { %v3393_v59 = vmax.f32 %v3381_v14, 0.0  ;;  %v4797_v14 = vld [vmem:[%s7481_s10 + $0x38] sm:$0xff] }
 0x607   :  { %4840 = vrot.lane.b32.xlu2 %v4839_v23, %s4881_s7  ;;  %v4801_v23 = vld [vmem:[%s7481_s10 + $0x58] sm:$0xff]  ;;  %3673 = vmatpush.bf16.msra.mxu3 %v4797_v14 }
 0x608   :  { %v3405_v5 = vrot.slane %v3393_v59, 1  ;;  %3762 = vmatpush.bf16.msrb.mxu0 %v4801_v23  ;;  %3812 = vmatpush.bf16.msrb.mxu1 %v4805_v45 }
 0x60a   :  { %v3406_v16 = vsel %vm130_vm1, %v3404_v54, %v3405_v5  ;;  %v3417_v38 = vsel %vm130_vm1, %v3405_v5, %v7249_v44  ;;  %v4800_v5 = vld [vmem:[%s7481_s10 + $0x50] sm:$0xff] }
 0x60b   :  { %v3428_v33 = vmax.f32 %v3392_v55, %v3406_v16  ;;  %v3429_v61 = vmax.f32 %v3393_v59, %v3417_v38  ;;  %v4796_v59 = vld [vmem:[%s7481_s10 + $0x30] sm:$0xff] }
 0x60c   :  { %v4804_v38 = vld [vmem:[%s7481_s10 + $0x70] sm:$0xff]  ;;  %3674 = vmatpush.bf16.msra.mxu3 %v4796_v59  ;;  %3763 = vmatpush.bf16.msrb.mxu0 %v4800_v5  ;;  %v4852_v5 = vld [vmem:[%s7487_s15] ss:$0 sm:$0xff] }
 0x60d   :  { %v4844_v30 = vpack.i.bf16 %v3429_v61, %v3428_v33  ;;  %3813 = vmatpush.bf16.msrb.mxu1 %v4804_v38 }
 0x60f   :  { %4845 = vrot.lane.b32.xlu2 %v4844_v30, %s4881_s7  ;;  %v4789_v30 = vld [vmem:[%s7482_s8 + $0x8] sm:$0xff] }
 0x639   :  { %v4821_v3 = vpop.permute.xlu0 %4820 }
 0x63a   :  { %v4823_v60 = vunpack.i.h.bf16 %v4821_v3  ;;  %v4822_v56 = vunpack.i.l.bf16 %v4821_v3  ;;  %v4793_v3 = vld [vmem:[%s7481_s10 + $0x18] sm:$0xff] }
 0x63c   :  { %v3455_v10 = vmax.f32 %v7258_v46, %v4823_v60  ;;  %v3454_v25 = vmax.f32 %v7256_v2, %v4822_v56  ;;  %v4799_v60 = vld [vmem:[%s7481_s10 + $0x48] sm:$0xff] }
 0x63d   :  { %v4803_v56 = vld [vmem:[%s7481_s10 + $0x68] sm:$0xff]  ;;  %3764 = vmatpush.bf16.msrb.mxu0 %v4799_v60 }
 0x63e   :  { %v3466_v21 = vpack.c.bf16 %v3455_v10, %v3454_v25  ;;  %v4792_v10 = vld [vmem:[%s7481_s10 + $0x10] sm:$0xff]  ;;  %3814 = vmatpush.bf16.msrb.mxu1 %v4803_v56  ;;  %v4791_v25 = vld [vmem:[%s7481_s10 + $0x8] sm:$0xff] }
 0x640   :  { %3544 = vmatmul.bf16.vlgmr.msra.gmra.mxu1 %v3466_v21  ;;  %v4798_v21 = vld [vmem:[%s7481_s10 + $0x40] sm:$0xff] }
 0x641   :  { %3765 = vmatpush.bf16.msrb.mxu0 %v4798_v21 }
 0x649   :  { %v4826_v47 = vpop.permute.xlu0 %4825 }
 0x64a   :  { %v4828_v44 = vunpack.i.h.bf16 %v4826_v47  ;;  %v4827_v34 = vunpack.i.l.bf16 %v4826_v47  ;;  %v4790_v47 = vld [vmem:[%s7481_s10] sm:$0xff] }
 0x64c   :  { %v3457_v0 = vmax.f32 %v7274_v9, %v4828_v44  ;;  %v3456_v18 = vmax.f32 %v7272_v50, %v4827_v34  ;;  %v4802_v44 = vld [vmem:[%s7481_s10 + $0x60] sm:$0xff]  ;;  %v3843_v34 = vld [vmem:[%s7483_s12 + $0x38] sm:$0xf] }
 0x64d   :  { %3815 = vmatpush.bf16.msrb.mxu1 %v4802_v44 }
 0x64e   :  { %v3467_v28 = vpack.c.bf16 %v3457_v0, %v3456_v18  ;;  %v3877_v0 = vunpack.c.l.b16 %v3843_v34 }
 0x650   :  { %3549 = vmatmul.bf16.gmra.mxu1 %v3467_v28  ;;  %v3885_v18 = vpack.c.b16 %v3877_v0, %v3877_v0 }
 0x659   :  { %v4831_v19 = vpop.permute.xlu1 %4830 }
 0x65a   :  { %v4833_v53 = vunpack.i.h.bf16 %v4831_v19  ;;  %v4832_v26 = vunpack.i.l.bf16 %v4831_v19  ;;  %v3898_v19 = vsel %vm2819_vm8, %v3885_v18, 0 }
 0x65c   :  { %v3459_v6 = vmax.f32 %v7289_v37, %v4833_v53  ;;  %v3458_v46 = vmax.f32 %v7287_v22, %v4832_v26 }
 0x65e   :  { %v3468_v4 = vpack.c.bf16 %v3459_v6, %v3458_v46 }
 0x660   :  { %3554 = vmatmul.bf16.gmra.mxu1 %v3468_v4 }
 0x661   :  { %v4841_v50 = vpop.permute.xlu2 %4840 }
 0x662   :  { %v4843_v12 = vunpack.i.h.bf16 %v4841_v50  ;;  %v4842_v31 = vunpack.i.l.bf16 %v4841_v50  ;;  %v4808_v50 = vld [vmem:[%s7483_s12 + $0x10] sm:$0xff] }
 0x664   :  { %v3463_v15 = vmax.f32 %v3427_v43, %v4843_v12  ;;  %v3462_v7 = vmax.f32 %v7325_v8, %v4842_v31  ;;  %v4807_v12 = vld [vmem:[%s7483_s12 + $0x8] sm:$0xff]  ;;  %v4806_v31 = vld [vmem:[%s7483_s12] sm:$0xff] }
 0x666   :  { %v3470_v37 = vpack.c.bf16 %v3463_v15, %v3462_v7  ;;  %v3925_v15 = vld [vmem:[%s7486_s14 + $0x28] sm:$0x3] }
 0x667   :  { %v3951_v7 = vunpack.c.l.b16 %v3925_v15 }
 0x669   :  { %v4836_v2 = vpop.permute.xlu1 %4835  ;;  %v4846_v22 = vpop.permute.xlu2 %4845 }
 0x66a   :  { %v4838_v51 = vunpack.i.h.bf16 %v4836_v2  ;;  %v4837_v29 = vunpack.i.l.bf16 %v4836_v2  ;;  %v4848_v32 = vunpack.i.h.bf16 %v4846_v22  ;;  %v4847_v35 = vunpack.i.l.bf16 %v4846_v22 }
 0x66b   :  { %v3957_v22 = vpack.c.b16 %v3951_v7, %v3951_v7 }
 0x66c   :  { %v3461_v40 = vmax.f32 %v7310_v52, %v4838_v51  ;;  %v3460_v9 = vmax.f32 %v7298_v48, %v4837_v29  ;;  %v3465_v27 = vmax.f32 %v3429_v61, %v4848_v32  ;;  %v3464_v17 = vmax.f32 %v3428_v33, %v4847_v35  ;;  %v4795_v33 = vld [vmem:[%s7481_s10 + $0x28] sm:$0xff]  ;;  %v4788_v61 = vld [vmem:[%s7482_s8] sm:$0xff]  ;;  %v4812_v29 = vld [vmem:[%s7483_s12 + $0x30] sm:$0xff] }
 0x66d   :  { %3675 = vmatpush.bf16.msra.mxu3 %v4795_v33  ;;  %v3969_v35 = vsel %vm3967_vm11, %v3957_v22, 0 }
 0x66e   :  { %v3469_v13 = vpack.c.bf16 %v3461_v40, %v3460_v9  ;;  %v3471_v62 = vpack.c.bf16 %v3465_v27, %v3464_v17  ;;  %v4811_v40 = vld [vmem:[%s7483_s12 + $0x28] sm:$0xff]  ;;  %v4810_v9 = vld [vmem:[%s7483_s12 + $0x20] sm:$0xff]  ;;  %v4816_v17 = vld [vmem:[%s7486_s14 + $0x18] sm:$0xff] }
 0x66f   :  { %v4817_v27 = vld [vmem:[%s7486_s14 + $0x20] sm:$0xff] }
 0x670   :  { %3559 = vmatmul.bf16.gmra.mxu1 %v3469_v13  ;;  %v4809_v13 = vld [vmem:[%s7483_s12 + $0x18] sm:$0xff] }
 0x671   :  { %3676 = vmatpush.bf16.msra.mxu3 %v4794_v49 }
 0x675   :  { %3713 = vmatpush.bf16.msrb.mxu3 %v4793_v3 }
 0x679   :  { %3714 = vmatpush.bf16.msrb.mxu3 %v4792_v10 }
 0x67d   :  { %3715 = vmatpush.bf16.msrb.mxu3 %v4791_v25 }
 0x680   :  { %3564 = vmatmul.bf16.gmra.mxu1 %v3470_v37 }
 0x681   :  { %3716 = vmatpush.bf16.msrb.mxu3 %v4790_v47 }
 0x690   :  { %3569 = vmatmul.bf16.gmra.mxu1 %v3471_v62 }
 0x6bd   :  { %v3545_v52 = vpop.f32.mrf.mxu1 }
 0x6c5   :  { %v3547_v39 = vpop.f32.mrf.mxu1 }
 0x6c6   :  { %v3579_v48 = vpack.c.bf16 %v3547_v39, %v3545_v52 }
 0x6cd   :  { %v3550_v20 = vpop.f32.mrf.mxu1 }
 0x6d5   :  { %v3552_v24 = vpop.f32.mrf.mxu1 }
 0x6d6   :  { %v3580_v1 = vpack.c.bf16 %v3552_v24, %v3550_v20 }
 0x6dd   :  { %v3555_v55 = vpop.f32.mrf.mxu1 }
 0x6e5   :  { %v3557_v58 = vpop.f32.mrf.mxu1 }
 0x6e6   :  { %v3581_v16 = vpack.c.bf16 %v3557_v58, %v3555_v55  ;;  %v4850_v58 = vld [vmem:[%s7484_s11] ss:$0 sm:$0xff] }
 0x6ed   :  { %v3560_v11 = vpop.f32.mrf.mxu1 }
 0x6f5   :  { %v3562_v42 = vpop.f32.mrf.mxu1 }
 0x6f6   :  { %v3582_v43 = vpack.c.bf16 %v3562_v42, %v3560_v11 }
 0x6fd   :  { %v3565_v8 = vpop.f32.mrf.mxu1 }
 0x705   :  { %v3567_v54 = vpop.f32.mrf.mxu1 }
 0x706   :  { %v3583_v63 = vpack.c.bf16 %v3567_v54, %v3565_v8 }
 0x70d   :  { %v3570_v57 = vpop.f32.mrf.mxu1 }
 0x715   :  { %v3572_v41 = vpop.f32.mrf.mxu1 }
 0x716   :  { %v3584_v36 = vpack.c.bf16 %v3572_v41, %v3570_v57  ;;  %v4814_v41 = vld [vmem:[%s7486_s14 + $0x8] sm:$0xff] }
 0x718   :  { %3603 = vmatpush.bf16.msra.mxu2 %v3584_v36  ;;  %v4813_v36 = vld [vmem:[%s7486_s14] sm:$0xff] }
 0x71c   :  { %3604 = vmatpush.bf16.msra.mxu2 %v3583_v63  ;;  %v4851_v63 = vld [vmem:[%s7485_s13] ss:$0 sm:$0xff] }
 0x720   :  { %3605 = vmatpush.bf16.msra.mxu2 %v3582_v43 }
 0x724   :  { %3606 = vmatpush.bf16.msra.mxu2 %v3581_v16 }
 0x728   :  { %3607 = vmatpush.bf16.msra.mxu2 %v3580_v1 }
 0x72c   :  { %3608 = vmatpush.bf16.msra.mxu2 %v3579_v48  ;;  %v4815_v48 = vld [vmem:[%s7486_s14 + $0x10] sm:$0xff] }
 0x72f   :  { %4566 = vmatmul.msk.bf16.vlgmr.msra.gmra.mxu2 %vm2621_vm7, %v4788_v61 }
 0x730   :  { %3900 = vmatpush.bf16.msrb.mxu2 %v3898_v19 }
 0x734   :  { %3901 = vmatpush.bf16.msrb.mxu2 %v4812_v29 }
 0x738   :  { %3902 = vmatpush.bf16.msrb.mxu2 %v4811_v40 }
 0x73c   :  { %3903 = vmatpush.bf16.msrb.mxu2 %v4810_v9 }
 0x73f   :  { %4567 = vmatmul.msk.bf16.gmra.mxu2 %vm2621_vm7, %v4789_v30 }
 0x740   :  { %3904 = vmatpush.bf16.msrb.mxu2 %v4809_v13 }
 0x744   :  { %3905 = vmatpush.bf16.msrb.mxu2 %v4808_v50 }
 0x748   :  { %3906 = vmatpush.bf16.msrb.mxu2 %v4807_v12 }
 0x74c   :  { %3907 = vmatpush.bf16.msrb.mxu2 %v4806_v31 }
 0x7b2   :  { %v3610_v28 = vpop.f32.mrf.mxu2 }
 0x7b3   :  { %v3620_v2 = vpack.c.bf16 %v3610_v28, %v3610_v28 }
 0x7ba   :  { %v3612_v53 = vpop.f32.mrf.mxu2 }
 0x7bb   :  { %v3621_v26 = vpack.c.bf16 %v3612_v53, %v3612_v53 }
 0x7bd   :  { %4592 = vmatmul.msk.bf16.vlgmr.msra.gmra.mxu3 %vm3665_vm10, %v3621_v26 }
 0x7be   :  { %3973 = vmatpush.bf16.msra.mxu3 %v3969_v35 }
 0x7c2   :  { %v3615_v6 = vpop.f32.mrf.mxu2  ;;  %3974 = vmatpush.bf16.msra.mxu3 %v4817_v27 }
 0x7c3   :  { %v3622_v46 = vpack.c.bf16 %v3615_v6, %v3615_v6 }
 0x7c5   :  { %4634 = vmatmul.msk.bf16.vlgmr.msrb.gmra.mxu0 %vm3665_vm10, %v3622_v46 }
 0x7c6   :  { %3975 = vmatpush.bf16.msra.mxu3 %v4816_v17 }
 0x7ca   :  { %v3617_v4 = vpop.f32.mrf.mxu2  ;;  %3976 = vmatpush.bf16.msra.mxu3 %v4815_v48 }
 0x7cb   :  { %v3623_v51 = vpack.c.bf16 %v3617_v4, %v3617_v4 }
 0x7cd   :  { %4609 = vmatmul.msk.bf16.vlgmr.msrb.gmra.mxu3 %vm3665_vm10, %v3620_v2  ;;  %4659 = vmatmul.msk.bf16.vlgmr.msrb.gmra.mxu1 %vm3665_vm10, %v3623_v51 }
 0x7ce   :  { %3977 = vmatpush.bf16.msra.mxu3 %v4814_v41 }
 0x7d2   :  { %3978 = vmatpush.bf16.msra.mxu3 %v4813_v36 }
 0x840   :  { %v3678_v37 = vpop.f32.mrf.mxu3 }
 0x842   :  { %v3767_v32 = vpop.f32.mrf.mxu0 }
 0x848   :  { %v3680_v62 = vpop.f32.mrf.mxu3 }
 0x84a   :  { %v3817_v52 = vpop.f32.mrf.mxu1  ;;  %v3769_v39 = vpop.f32.mrf.mxu0 }
 0x850   :  { %v3718_v20 = vpop.f32.mrf.mxu3 }
 0x851   :  { %v3719_v24 = vadd.f32 %v3718_v20, %v3678_v37 }
 0x852   :  { %v3819_v1 = vpop.f32.mrf.mxu1 }
 0x853   :  { %v3771_v55 = vadd.f32 %v3767_v32, %v3719_v24 }
 0x855   :  { %v3821_v11 = vadd.f32 %v3817_v52, %v3771_v55 }
 0x857   :  { %v3826_v42 = vadd.f32 %v4850_v58, %v3821_v11 }
 0x858   :  { %v3720_v8 = vpop.f32.mrf.mxu3 }
 0x859   :  { %v3827_v54 = vmax.f32 %v3826_v42, 0.0 }
 0x85b   :  { %v3828_v57 = vpack.c.bf16 %v3827_v54, %v3827_v54 }
 0x85d   :  { %4688 = vmatmul.msk.bf16.vlgmr.msrb.gmra.mxu2 %vm3893_vm12, %v3828_v57 }
 0x8e0   :  { %v3909_v43 = vpop.f32.mrf.mxu2 }
 0x8e1   :  { %v3910_v14 = vadd.f32 %v4851_v63, %v3909_v43 }
 0x8e3   :  { %v3913_v23 = vmax.f32 %v3910_v14, 0.0 }
 0x8e5   :  { %v3914_v45 = vpack.c.bf16 %v3913_v23, %v3913_v23 }
 0x8e7   :  { %4709 = vmatmul.msk.bf16.vlgmr.msra.gmra.mxu3 %vm3963_vm13, %v3914_v45 }
 0x8e8   :  { %v3911_v59 = vpop.f32.mrf.mxu2 }
 0x96a   :  { %v3980_v16 = vpop.f32.mrf.mxu3 }
 0x96b   :  { %v3981_v38 = vadd.f32 %v4852_v5, %v3980_v16 }
 0x96d   :  { %3985 = vst.msk [vmem:[%s7488_s16] sm:$0xff] %vm3984_vm14, %v3981_v38 }
 0x972   :  { %v3982_v33 = vpop.f32.mrf.mxu3 }

</bundles_post_ra>
